<compile_context>
chip_gen: v5e
topology: v5e:2x2
jax: 0.10.0
libtpu: 0.0.40
codegen_flags: <defaults>
</compile_context>

<pallas_src>
import functools

import jax
import jax.numpy as jnp
from jax.experimental import pallas as pl
from jax.experimental.pallas import tpu as pltpu

INPUT_SIZE = 3
HIDDEN_SIZE = 20
OUTPUT_SIZE = 2
N_LAYERS = 8       # hidden Linear+Tanh blocks (layers = [3, 20*8(+1), 2])

IP = 8             # input features padded to one f32 sublane tile
HP = 32            # hidden features padded to 32 sublanes
OP = 8             # output features padded to one f32 sublane tile
H24 = 24           # live hidden sublanes used on the f32 (v5e) path


def _pinn_kernel(x_ref, win_ref, bin_ref, wh_ref, bh_ref, wout_ref, bout_ref,
                 o_ref, *, use_bf16_act):
    # Input layer: bf16 matmul, f32 accumulation + bias.
    x = x_ref[...].astype(jnp.bfloat16)                               # (IP, tm)
    acc = (jnp.dot(win_ref[...], x, preferred_element_type=jnp.float32)
           + bin_ref[...])                                            # (HP, tm) f32

    if use_bf16_act:
        # v6e / v7x: bf16-resident activations; tanh on packed bf16 vregs.
        h = jnp.tanh(acc.astype(jnp.bfloat16))                        # (HP, tm) bf16
        for l in range(N_LAYERS):                                     # fully unrolled
            acc = (jnp.dot(wh_ref[l], h, preferred_element_type=jnp.float32)
                   + bh_ref[l])
            h = jnp.tanh(acc.astype(jnp.bfloat16))
        out = (jnp.dot(wout_ref[...], h, preferred_element_type=jnp.float32)
               + bout_ref[...])
    else:
        # v5e (no bf16 VPU/EUP): f32 tanh/bias, restricted to the 24 live rows
        # (rows 20..31 of every padded pre-activation are exactly zero).
        h = jnp.tanh(acc[:H24, :])                                    # (24, tm) f32
        for l in range(N_LAYERS):
            w = wh_ref[l][:H24, :H24]                                 # (24, 24) bf16
            b = bh_ref[l][:H24, :]                                    # (24, 1)  f32
            acc = (jnp.dot(w, h.astype(jnp.bfloat16),
                           preferred_element_type=jnp.float32) + b)
            h = jnp.tanh(acc)
        out = (jnp.dot(wout_ref[...][:, :H24], h.astype(jnp.bfloat16),
                       preferred_element_type=jnp.float32) + bout_ref[...])

    o_ref[...] = out                                                  # (OP, tm) f32


@functools.partial(jax.jit, static_argnames=("tm", "use_bf16_act"))
def pinn_forward_fm(x_fm, params, tm, use_bf16_act):
    """Feature-major core: x_fm is (IP, n_pad) f32, returns (OP, n_pad) f32."""
    win, bin_, wh, bh, wout, bout = params
    n_pad = x_fm.shape[1]
    grid = (n_pad // tm,)
    kernel = functools.partial(_pinn_kernel, use_bf16_act=use_bf16_act)
    return pl.pallas_call(
        kernel,
        out_shape=jax.ShapeDtypeStruct((OP, n_pad), jnp.float32),
        grid_spec=pltpu.PrefetchScalarGridSpec(
            num_scalar_prefetch=0,
            grid=grid,
            in_specs=[
                pl.BlockSpec((IP, tm), lambda i: (0, i)),               # x tile
                pl.BlockSpec((HP, IP), lambda i: (0, 0)),               # W_in  (bf16)
                pl.BlockSpec((HP, 1), lambda i: (0, 0)),                # b_in  (f32)
                pl.BlockSpec((N_LAYERS, HP, HP), lambda i: (0, 0, 0)),  # W_hid (bf16)
                pl.BlockSpec((N_LAYERS, HP, 1), lambda i: (0, 0, 0)),   # b_hid (f32)
                pl.BlockSpec((OP, HP), lambda i: (0, 0)),               # W_out (bf16)
                pl.BlockSpec((OP, 1), lambda i: (0, 0)),                # b_out (f32)
            ],
            out_specs=pl.BlockSpec((OP, tm), lambda i: (0, i)),
        ),
        compiler_params=pltpu.CompilerParams(
            dimension_semantics=("parallel",),
        ),
    )(x_fm, win, bin_, wh, bh, wout, bout)


def _device_kind():
    try:
        return jax.devices()[0].device_kind.lower()
    except Exception:
        return ""


def pinn_forward(x, params, tm=None, use_bf16_act=None):
    """x: (N, INPUT_SIZE) float32 (PyTorch layout). Returns (N, OUTPUT_SIZE) f32."""
    kind = _device_kind()
    if use_bf16_act is None:
        # bf16 VPU/EUP exists on v6e and newer; fall back to f32 tanh on older gens.
        use_bf16_act = not any(v in kind for v in ("v2", "v3", "v4", "v5"))
    n = x.shape[0]
    if tm is None:
        n_pad0 = pl.cdiv(n, 256) * 256
        # v7x: keep >=2 (even) grid steps so both TensorCores get work;
        # v5e/v6e: minimize grid steps (per-step overhead dominates at small N).
        tm = min(512 if "v7" in kind else 1024, n_pad0)

    n_pad = pl.cdiv(n, tm) * tm
    # Single fused pad of the feature-major slab (rows -> IP sublanes, cols -> n_pad).
    x_fm = jnp.pad(x.astype(jnp.float32).T,
                   ((0, IP - INPUT_SIZE), (0, n_pad - n)))
    out_fm = pinn_forward_fm(x_fm, params, tm, use_bf16_act)
    return out_fm[:OUTPUT_SIZE, :n].T


def init_params(key):
    """Deterministic synthetic parameters (PyTorch layout), padded feature-major."""
    ks = jax.random.split(key, 2 * (N_LAYERS + 2))

    def dense(kw, kb, din, dout):
        # PyTorch Linear default init: U(-1/sqrt(fan_in), 1/sqrt(fan_in)),
        # weight stored (out_features, in_features) like nn.Linear.
        bound = 1.0 / jnp.sqrt(jnp.float32(din))
        w = jax.random.uniform(kw, (dout, din), jnp.float32, -bound, bound)
        b = jax.random.uniform(kb, (dout,), jnp.float32, -bound, bound)
        return w, b

    w_in, b_in = dense(ks[0], ks[1], INPUT_SIZE, HIDDEN_SIZE)
    whs, bhs = [], []
    for i in range(N_LAYERS):
        w, b = dense(ks[2 + 2 * i], ks[3 + 2 * i], HIDDEN_SIZE, HIDDEN_SIZE)
        whs.append(w)
        bhs.append(b)
    w_out, b_out = dense(ks[2 + 2 * N_LAYERS], ks[3 + 2 * N_LAYERS],
                         HIDDEN_SIZE, OUTPUT_SIZE)

    def padw(w, rows, cols, dtype):
        out = jnp.zeros((rows, cols), jnp.float32)
        return out.at[: w.shape[0], : w.shape[1]].set(w).astype(dtype)

    def padb(b, rows):
        out = jnp.zeros((rows, 1), jnp.float32)
        return out.at[: b.shape[0], 0].set(b)

    win_p = padw(w_in, HP, IP, jnp.bfloat16)                              # (HP, IP)
    bin_p = padb(b_in, HP)                                                # (HP, 1)
    wh_p = jnp.stack([padw(w, HP, HP, jnp.bfloat16) for w in whs], 0)     # (L, HP, HP)
    bh_p = jnp.stack([padb(b, HP) for b in bhs], 0)                       # (L, HP, 1)
    wout_p = padw(w_out, OP, HP, jnp.bfloat16)                            # (OP, HP)
    bout_p = padb(b_out, OP)                                              # (OP, 1)

    padded = (win_p, bin_p, wh_p, bh_p, wout_p, bout_p)
    unpadded = (w_in, b_in, whs, bhs, w_out, b_out)
    return padded, unpadded


def reference_forward(x, unpadded):
    # Pure-f32 reference with PyTorch semantics: Linear(x) = x @ W.T + b.
    w_in, b_in, whs, bhs, w_out, b_out = unpadded
    h = jnp.tanh(x @ w_in.T + b_in)
    for w, b in zip(whs, bhs):
        h = jnp.tanh(h @ w.T + b)
    return h @ w_out.T + b_out


if __name__ == "__main__":
    key = jax.random.PRNGKey(0)
    kp, kx = jax.random.split(key)

    padded, unpadded = init_params(kp)

    N = 1000  # flattened collocation points (x, y, t) -> (N, 3); exercises ragged pad
    x = jax.random.normal(kx, (N, INPUT_SIZE), jnp.float32)

    out = pinn_forward(x, padded)
    out = jax.block_until_ready(out)

    ref = reference_forward(x, unpadded)
    assert out.shape == (N, OUTPUT_SIZE)
    # bf16 weights (+ bf16 tanh on v6e/v7x) with f32 accumulation -> loose tolerance
    assert jnp.allclose(out, ref, atol=5e-2, rtol=5e-2), "mismatch vs reference"

    print("KERNEL_OK")
</pallas_src>

<mosaic_0001>
module attributes {stable_mosaic.version = 11 : i64} {
  func.func @_pinn_kernel(%arg0: i32, %arg1: memref<8x1024xf32, #tpu.memory_space<vmem>>, %arg2: memref<32x8xbf16, #tpu.memory_space<vmem>>, %arg3: memref<32x1xf32, #tpu.memory_space<vmem>>, %arg4: memref<8x32x32xbf16, #tpu.memory_space<vmem>>, %arg5: memref<8x32x1xf32, #tpu.memory_space<vmem>>, %arg6: memref<8x32xbf16, #tpu.memory_space<vmem>>, %arg7: memref<8x1xf32, #tpu.memory_space<vmem>>, %arg8: memref<8x1024xf32, #tpu.memory_space<vmem>>) attributes {dimension_semantics = [#tpu.dimension_semantics<parallel>], iteration_bounds = array<i64: 1>, scalar_prefetch = 0 : i64, scratch_operands = 0 : i64, tpu.core_type = #tpu.core_type<tc>, window_params = [{transform_indices = @transform_0, window_bounds = array<i64: 8, 1024>}, {pipeline_mode = #tpu.pipeline_mode<synchronous>, transform_indices = @transform_1, window_bounds = array<i64: 32, 8>}, {pipeline_mode = #tpu.pipeline_mode<synchronous>, transform_indices = @transform_2, window_bounds = array<i64: 32, 1>}, {pipeline_mode = #tpu.pipeline_mode<synchronous>, transform_indices = @transform_3, window_bounds = array<i64: 8, 32, 32>}, {pipeline_mode = #tpu.pipeline_mode<synchronous>, transform_indices = @transform_4, window_bounds = array<i64: 8, 32, 1>}, {pipeline_mode = #tpu.pipeline_mode<synchronous>, transform_indices = @transform_5, window_bounds = array<i64: 8, 32>}, {pipeline_mode = #tpu.pipeline_mode<synchronous>, transform_indices = @transform_6, window_bounds = array<i64: 8, 1>}, {transform_indices = @transform_7, window_bounds = array<i64: 8, 1024>}]} {
    %c0 = arith.constant 0 : index
    %c0_0 = arith.constant 0 : index
    %0 = vector.load %arg1[%c0, %c0_0] : memref<8x1024xf32, #tpu.memory_space<vmem>>, vector<8x1024xf32>
    %1 = arith.truncf %0 : vector<8x1024xf32> to vector<8x1024xbf16>
    %c0_1 = arith.constant 0 : index
    %c0_2 = arith.constant 0 : index
    %2 = vector.load %arg2[%c0_1, %c0_2] : memref<32x8xbf16, #tpu.memory_space<vmem>>, vector<32x8xbf16>
    %cst = arith.constant dense<0.000000e+00> : vector<32x1024xf32>
    %3 = tpu.matmul %2, %1, %cst {dimension_numbers = #tpu.dot_dimension_numbers<[1], [0], [0], [1], [0, 0, 1, 1], [], []>} : vector<32x8xbf16>, vector<8x1024xbf16>, vector<32x1024xf32> -> vector<32x1024xf32>
    %c0_3 = arith.constant 0 : index
    %c0_4 = arith.constant 0 : index
    %4 = vector.load %arg3[%c0_3, %c0_4] : memref<32x1xf32, #tpu.memory_space<vmem>>, vector<32x1xf32>
    %5 = vector.broadcast %4 : vector<32x1xf32> to vector<32x1024xf32>
    %6 = arith.addf %3, %5 : vector<32x1024xf32>
    %7 = arith.truncf %6 : vector<32x1024xf32> to vector<32x1024xbf16>
    %8 = math.tanh %7 : vector<32x1024xbf16>
    %c0_5 = arith.constant 0 : index
    %c0_6 = arith.constant 0 : index
    %c0_7 = arith.constant 0 : index
    %9 = vector.load %arg4[%c0_5, %c0_6, %c0_7] : memref<8x32x32xbf16, #tpu.memory_space<vmem>>, vector<1x32x32xbf16>
    %10 = vector.shape_cast %9 : vector<1x32x32xbf16> to vector<32x32xbf16>
    %cst_8 = arith.constant dense<0.000000e+00> : vector<32x1024xf32>
    %11 = tpu.matmul %10, %8, %cst_8 {dimension_numbers = #tpu.dot_dimension_numbers<[1], [0], [0], [1], [0, 0, 1, 1], [], []>} : vector<32x32xbf16>, vector<32x1024xbf16>, vector<32x1024xf32> -> vector<32x1024xf32>
    %c0_9 = arith.constant 0 : index
    %c0_10 = arith.constant 0 : index
    %c0_11 = arith.constant 0 : index
    %12 = vector.load %arg5[%c0_9, %c0_10, %c0_11] : memref<8x32x1xf32, #tpu.memory_space<vmem>>, vector<1x32x1xf32>
    %13 = vector.shape_cast %12 : vector<1x32x1xf32> to vector<32x1xf32>
    %14 = vector.broadcast %13 : vector<32x1xf32> to vector<32x1024xf32>
    %15 = arith.addf %11, %14 : vector<32x1024xf32>
    %16 = arith.truncf %15 : vector<32x1024xf32> to vector<32x1024xbf16>
    %17 = math.tanh %16 : vector<32x1024xbf16>
    %c1 = arith.constant 1 : index
    %c0_12 = arith.constant 0 : index
    %c0_13 = arith.constant 0 : index
    %18 = vector.load %arg4[%c1, %c0_12, %c0_13] : memref<8x32x32xbf16, #tpu.memory_space<vmem>>, vector<1x32x32xbf16>
    %19 = vector.shape_cast %18 : vector<1x32x32xbf16> to vector<32x32xbf16>
    %cst_14 = arith.constant dense<0.000000e+00> : vector<32x1024xf32>
    %20 = tpu.matmul %19, %17, %cst_14 {dimension_numbers = #tpu.dot_dimension_numbers<[1], [0], [0], [1], [0, 0, 1, 1], [], []>} : vector<32x32xbf16>, vector<32x1024xbf16>, vector<32x1024xf32> -> vector<32x1024xf32>
    %c1_15 = arith.constant 1 : index
    %c0_16 = arith.constant 0 : index
    %c0_17 = arith.constant 0 : index
    %21 = vector.load %arg5[%c1_15, %c0_16, %c0_17] : memref<8x32x1xf32, #tpu.memory_space<vmem>>, vector<1x32x1xf32>
    %22 = vector.shape_cast %21 : vector<1x32x1xf32> to vector<32x1xf32>
    %23 = vector.broadcast %22 : vector<32x1xf32> to vector<32x1024xf32>
    %24 = arith.addf %20, %23 : vector<32x1024xf32>
    %25 = arith.truncf %24 : vector<32x1024xf32> to vector<32x1024xbf16>
    %26 = math.tanh %25 : vector<32x1024xbf16>
    %c2 = arith.constant 2 : index
    %c0_18 = arith.constant 0 : index
    %c0_19 = arith.constant 0 : index
    %27 = vector.load %arg4[%c2, %c0_18, %c0_19] : memref<8x32x32xbf16, #tpu.memory_space<vmem>>, vector<1x32x32xbf16>
    %28 = vector.shape_cast %27 : vector<1x32x32xbf16> to vector<32x32xbf16>
    %cst_20 = arith.constant dense<0.000000e+00> : vector<32x1024xf32>
    %29 = tpu.matmul %28, %26, %cst_20 {dimension_numbers = #tpu.dot_dimension_numbers<[1], [0], [0], [1], [0, 0, 1, 1], [], []>} : vector<32x32xbf16>, vector<32x1024xbf16>, vector<32x1024xf32> -> vector<32x1024xf32>
    %c2_21 = arith.constant 2 : index
    %c0_22 = arith.constant 0 : index
    %c0_23 = arith.constant 0 : index
    %30 = vector.load %arg5[%c2_21, %c0_22, %c0_23] : memref<8x32x1xf32, #tpu.memory_space<vmem>>, vector<1x32x1xf32>
    %31 = vector.shape_cast %30 : vector<1x32x1xf32> to vector<32x1xf32>
    %32 = vector.broadcast %31 : vector<32x1xf32> to vector<32x1024xf32>
    %33 = arith.addf %29, %32 : vector<32x1024xf32>
    %34 = arith.truncf %33 : vector<32x1024xf32> to vector<32x1024xbf16>
    %35 = math.tanh %34 : vector<32x1024xbf16>
    %c3 = arith.constant 3 : index
    %c0_24 = arith.constant 0 : index
    %c0_25 = arith.constant 0 : index
    %36 = vector.load %arg4[%c3, %c0_24, %c0_25] : memref<8x32x32xbf16, #tpu.memory_space<vmem>>, vector<1x32x32xbf16>
    %37 = vector.shape_cast %36 : vector<1x32x32xbf16> to vector<32x32xbf16>
    %cst_26 = arith.constant dense<0.000000e+00> : vector<32x1024xf32>
    %38 = tpu.matmul %37, %35, %cst_26 {dimension_numbers = #tpu.dot_dimension_numbers<[1], [0], [0], [1], [0, 0, 1, 1], [], []>} : vector<32x32xbf16>, vector<32x1024xbf16>, vector<32x1024xf32> -> vector<32x1024xf32>
    %c3_27 = arith.constant 3 : index
    %c0_28 = arith.constant 0 : index
    %c0_29 = arith.constant 0 : index
    %39 = vector.load %arg5[%c3_27, %c0_28, %c0_29] : memref<8x32x1xf32, #tpu.memory_space<vmem>>, vector<1x32x1xf32>
    %40 = vector.shape_cast %39 : vector<1x32x1xf32> to vector<32x1xf32>
    %41 = vector.broadcast %40 : vector<32x1xf32> to vector<32x1024xf32>
    %42 = arith.addf %38, %41 : vector<32x1024xf32>
    %43 = arith.truncf %42 : vector<32x1024xf32> to vector<32x1024xbf16>
    %44 = math.tanh %43 : vector<32x1024xbf16>
    %c4 = arith.constant 4 : index
    %c0_30 = arith.constant 0 : index
    %c0_31 = arith.constant 0 : index
    %45 = vector.load %arg4[%c4, %c0_30, %c0_31] : memref<8x32x32xbf16, #tpu.memory_space<vmem>>, vector<1x32x32xbf16>
    %46 = vector.shape_cast %45 : vector<1x32x32xbf16> to vector<32x32xbf16>
    %cst_32 = arith.constant dense<0.000000e+00> : vector<32x1024xf32>
    %47 = tpu.matmul %46, %44, %cst_32 {dimension_numbers = #tpu.dot_dimension_numbers<[1], [0], [0], [1], [0, 0, 1, 1], [], []>} : vector<32x32xbf16>, vector<32x1024xbf16>, vector<32x1024xf32> -> vector<32x1024xf32>
    %c4_33 = arith.constant 4 : index
    %c0_34 = arith.constant 0 : index
    %c0_35 = arith.constant 0 : index
    %48 = vector.load %arg5[%c4_33, %c0_34, %c0_35] : memref<8x32x1xf32, #tpu.memory_space<vmem>>, vector<1x32x1xf32>
    %49 = vector.shape_cast %48 : vector<1x32x1xf32> to vector<32x1xf32>
    %50 = vector.broadcast %49 : vector<32x1xf32> to vector<32x1024xf32>
    %51 = arith.addf %47, %50 : vector<32x1024xf32>
    %52 = arith.truncf %51 : vector<32x1024xf32> to vector<32x1024xbf16>
    %53 = math.tanh %52 : vector<32x1024xbf16>
    %c5 = arith.constant 5 : index
    %c0_36 = arith.constant 0 : index
    %c0_37 = arith.constant 0 : index
    %54 = vector.load %arg4[%c5, %c0_36, %c0_37] : memref<8x32x32xbf16, #tpu.memory_space<vmem>>, vector<1x32x32xbf16>
    %55 = vector.shape_cast %54 : vector<1x32x32xbf16> to vector<32x32xbf16>
    %cst_38 = arith.constant dense<0.000000e+00> : vector<32x1024xf32>
    %56 = tpu.matmul %55, %53, %cst_38 {dimension_numbers = #tpu.dot_dimension_numbers<[1], [0], [0], [1], [0, 0, 1, 1], [], []>} : vector<32x32xbf16>, vector<32x1024xbf16>, vector<32x1024xf32> -> vector<32x1024xf32>
    %c5_39 = arith.constant 5 : index
    %c0_40 = arith.constant 0 : index
    %c0_41 = arith.constant 0 : index
    %57 = vector.load %arg5[%c5_39, %c0_40, %c0_41] : memref<8x32x1xf32, #tpu.memory_space<vmem>>, vector<1x32x1xf32>
    %58 = vector.shape_cast %57 : vector<1x32x1xf32> to vector<32x1xf32>
    %59 = vector.broadcast %58 : vector<32x1xf32> to vector<32x1024xf32>
    %60 = arith.addf %56, %59 : vector<32x1024xf32>
    %61 = arith.truncf %60 : vector<32x1024xf32> to vector<32x1024xbf16>
    %62 = math.tanh %61 : vector<32x1024xbf16>
    %c6 = arith.constant 6 : index
    %c0_42 = arith.constant 0 : index
    %c0_43 = arith.constant 0 : index
    %63 = vector.load %arg4[%c6, %c0_42, %c0_43] : memref<8x32x32xbf16, #tpu.memory_space<vmem>>, vector<1x32x32xbf16>
    %64 = vector.shape_cast %63 : vector<1x32x32xbf16> to vector<32x32xbf16>
    %cst_44 = arith.constant dense<0.000000e+00> : vector<32x1024xf32>
    %65 = tpu.matmul %64, %62, %cst_44 {dimension_numbers = #tpu.dot_dimension_numbers<[1], [0], [0], [1], [0, 0, 1, 1], [], []>} : vector<32x32xbf16>, vector<32x1024xbf16>, vector<32x1024xf32> -> vector<32x1024xf32>
    %c6_45 = arith.constant 6 : index
    %c0_46 = arith.constant 0 : index
    %c0_47 = arith.constant 0 : index
    %66 = vector.load %arg5[%c6_45, %c0_46, %c0_47] : memref<8x32x1xf32, #tpu.memory_space<vmem>>, vector<1x32x1xf32>
    %67 = vector.shape_cast %66 : vector<1x32x1xf32> to vector<32x1xf32>
    %68 = vector.broadcast %67 : vector<32x1xf32> to vector<32x1024xf32>
    %69 = arith.addf %65, %68 : vector<32x1024xf32>
    %70 = arith.truncf %69 : vector<32x1024xf32> to vector<32x1024xbf16>
    %71 = math.tanh %70 : vector<32x1024xbf16>
    %c7 = arith.constant 7 : index
    %c0_48 = arith.constant 0 : index
    %c0_49 = arith.constant 0 : index
    %72 = vector.load %arg4[%c7, %c0_48, %c0_49] : memref<8x32x32xbf16, #tpu.memory_space<vmem>>, vector<1x32x32xbf16>
    %73 = vector.shape_cast %72 : vector<1x32x32xbf16> to vector<32x32xbf16>
    %cst_50 = arith.constant dense<0.000000e+00> : vector<32x1024xf32>
    %74 = tpu.matmul %73, %71, %cst_50 {dimension_numbers = #tpu.dot_dimension_numbers<[1], [0], [0], [1], [0, 0, 1, 1], [], []>} : vector<32x32xbf16>, vector<32x1024xbf16>, vector<32x1024xf32> -> vector<32x1024xf32>
    %c7_51 = arith.constant 7 : index
    %c0_52 = arith.constant 0 : index
    %c0_53 = arith.constant 0 : index
    %75 = vector.load %arg5[%c7_51, %c0_52, %c0_53] : memref<8x32x1xf32, #tpu.memory_space<vmem>>, vector<1x32x1xf32>
    %76 = vector.shape_cast %75 : vector<1x32x1xf32> to vector<32x1xf32>
    %77 = vector.broadcast %76 : vector<32x1xf32> to vector<32x1024xf32>
    %78 = arith.addf %74, %77 : vector<32x1024xf32>
    %79 = arith.truncf %78 : vector<32x1024xf32> to vector<32x1024xbf16>
    %80 = math.tanh %79 : vector<32x1024xbf16>
    %c0_54 = arith.constant 0 : index
    %c0_55 = arith.constant 0 : index
    %81 = vector.load %arg6[%c0_54, %c0_55] : memref<8x32xbf16, #tpu.memory_space<vmem>>, vector<8x32xbf16>
    %cst_56 = arith.constant dense<0.000000e+00> : vector<8x1024xf32>
    %82 = tpu.matmul %81, %80, %cst_56 {dimension_numbers = #tpu.dot_dimension_numbers<[1], [0], [0], [1], [0, 0, 1, 1], [], []>} : vector<8x32xbf16>, vector<32x1024xbf16>, vector<8x1024xf32> -> vector<8x1024xf32>
    %c0_57 = arith.constant 0 : index
    %c0_58 = arith.constant 0 : index
    %83 = vector.load %arg7[%c0_57, %c0_58] : memref<8x1xf32, #tpu.memory_space<vmem>>, vector<8x1xf32>
    %84 = vector.broadcast %83 : vector<8x1xf32> to vector<8x1024xf32>
    %85 = arith.addf %82, %84 : vector<8x1024xf32>
    %c0_59 = arith.constant 0 : index
    %c0_60 = arith.constant 0 : index
    %86 = vector.load %arg8[%c0_59, %c0_60] : memref<8x1024xf32, #tpu.memory_space<vmem>>, vector<8x1024xf32>
    tpu.vector_store %arg8[%c0_59, %c0_60], %85 {strides = array<i32>} : memref<8x1024xf32, #tpu.memory_space<vmem>>, vector<8x1024xf32>,
    return
  }
  func.func @transform_0(%arg0: i32) -> (i32, i32) {
    %c0_i32 = arith.constant 0 : i32
    %c0_i32_0 = arith.constant 0 : i32
    return %c0_i32, %arg0 : i32, i32
  }
  func.func @transform_1(%arg0: i32) -> (i32, i32) {
    %c0_i32 = arith.constant 0 : i32
    %c0_i32_0 = arith.constant 0 : i32
    %c0_i32_1 = arith.constant 0 : i32
    return %c0_i32, %c0_i32_0 : i32, i32
  }
  func.func @transform_2(%arg0: i32) -> (i32, i32) {
    %c0_i32 = arith.constant 0 : i32
    %c0_i32_0 = arith.constant 0 : i32
    %c0_i32_1 = arith.constant 0 : i32
    return %c0_i32, %c0_i32_0 : i32, i32
  }
  func.func @transform_3(%arg0: i32) -> (i32, i32, i32) {
    %c0_i32 = arith.constant 0 : i32
    %c0_i32_0 = arith.constant 0 : i32
    %c0_i32_1 = arith.constant 0 : i32
    %c0_i32_2 = arith.constant 0 : i32
    return %c0_i32, %c0_i32_0, %c0_i32_1 : i32, i32, i32
  }
  func.func @transform_4(%arg0: i32) -> (i32, i32, i32) {
    %c0_i32 = arith.constant 0 : i32
    %c0_i32_0 = arith.constant 0 : i32
    %c0_i32_1 = arith.constant 0 : i32
    %c0_i32_2 = arith.constant 0 : i32
    return %c0_i32, %c0_i32_0, %c0_i32_1 : i32, i32, i32
  }
  func.func @transform_5(%arg0: i32) -> (i32, i32) {
    %c0_i32 = arith.constant 0 : i32
    %c0_i32_0 = arith.constant 0 : i32
    %c0_i32_1 = arith.constant 0 : i32
    return %c0_i32, %c0_i32_0 : i32, i32
  }
  func.func @transform_6(%arg0: i32) -> (i32, i32) {
    %c0_i32 = arith.constant 0 : i32
    %c0_i32_0 = arith.constant 0 : i32
    %c0_i32_1 = arith.constant 0 : i32
    return %c0_i32, %c0_i32_0 : i32, i32
  }
  func.func @transform_7(%arg0: i32) -> (i32, i32) {
    %c0_i32 = arith.constant 0 : i32
    %c0_i32_0 = arith.constant 0 : i32
    return %c0_i32, %arg0 : i32, i32
  }
}

</mosaic_0001>

<bundles_post_ra>
// kernel: pinn_forward_fm.1
= control target key start
LH: loop header
LB: loop body
LE: loop exit
PB: predicated region body
PF: predicated region fallthrough
CT: control target
= control target key end

     0   :  { %vm89_vm0 = vcmask 1043456   ;;  %v3756_v3 = vmov 0   ;;  %vm82_vm1 = vcmask 64512   ;;  %s4716_s0 = inlined_call_operand.vmem [shape: f32[8,1024], index: 0, kind: input, shape index: {}]   ;;  %s4717_s1 = inlined_call_operand.vmem [shape: bf16[32,8], index: 1, kind: input, shape index: {}]   ;;  %s4718_s2 = inlined_call_operand.vmem [shape: f32[32,1], index: 2, kind: input, shape index: {}]   ;;  %s4719_s3 = inlined_call_operand.vmem [shape: bf16[8,32,32], index: 3, kind: input, shape index: {}]   ;;  %s4720_s4 = inlined_call_operand.vmem [shape: f32[8,32,1], index: 4, kind: input, shape index: {}]   ;;  %s4721_s5 = inlined_call_operand.vmem [shape: bf16[8,32], index: 5, kind: input, shape index: {}]   ;;  %s4722_s6 = inlined_call_operand.vmem [shape: f32[8,1], index: 6, kind: input, shape index: {}]   ;;  %s4723_s7 = inlined_call_operand.hbm [shape: f32[8,1024], index: 7, kind: output, shape index: {}]  }
   0x1   :  { %v50_v0 = vld [vmem:[%s4718_s2 + $0x10] sm:$0xff]  ;;  %v48_v1 = vld [vmem:[%s4718_s2] sm:$0xff]  ;;  %3152 = vset.pattern.permute.xlu1 %v3756_v3  ;;  %3151 = vset.pattern.permute.xlu0 %v3756_v3  ;;  %v29_v5 = vld [vmem:[%s4716_s0 + $0x8] sm:$0xff] }
   0x2   :  { %v28_v2 = vld [vmem:[%s4716_s0] sm:$0xff]  ;;  %v30_v6 = vld [vmem:[%s4716_s0 + $0x10] sm:$0xff]  ;;  %v31_v7 = vld [vmem:[%s4716_s0 + $0x18] sm:$0xff]  ;;  %64 = vperm.xlu0 %3151, %v50_v0   ;;  %54 = vperm.xlu1 %3152, %v48_v1   ;;  %v37_v8 = vpack.c.bf16 %v29_v5, %v29_v5 }
   0x3   :  { %v36_v4 = vpack.c.bf16 %v28_v2, %v28_v2  ;;  %v38_v9 = vpack.c.bf16 %v30_v6, %v30_v6  ;;  %v39_v10 = vpack.c.bf16 %v31_v7, %v31_v7  ;;  %v3131_v12 = vld [vmem:[%s4717_s1] sm:$0xff]  ;;  %3153 = vset.pattern.permute.xlu2 %v3756_v3  ;;  %v34_v16 = vld [vmem:[%s4716_s0 + $0x30] sm:$0xff]  ;;  %v35_v18 = vld [vmem:[%s4716_s0 + $0x38] sm:$0xff] }
   0x4   :  { %v94_v13 = vsel %vm89_vm0, %v37_v8, 0  ;;  %v42_v17 = vpack.c.bf16 %v34_v16, %v34_v16  ;;  %v43_v19 = vpack.c.bf16 %v35_v18, %v35_v18  ;;  %v32_v20 = vld [vmem:[%s4716_s0 + $0x20] sm:$0xff]  ;;  %v33_v21 = vld [vmem:[%s4716_s0 + $0x28] sm:$0xff] }
   0x5   :  { %v91_v11 = vsel %vm89_vm0, %v36_v4, 0  ;;  %v97_v14 = vsel %vm89_vm0, %v38_v9, 0  ;;  %v100_v15 = vsel %vm89_vm0, %v39_v10, 0  ;;  %140 = vmatpush.bf16.msra.mxu1 %v94_v13 }
   0x6   :  { %121 = vmatpush.bf16.msra.mxu0 %v91_v11  ;;  %159 = vmatpush.bf16.msra.mxu2 %v97_v14 }
   0x7   :  { %178 = vmatpush.bf16.msra.mxu3 %v100_v15 }
   0x8   :  { %12 = vsyncpa [#allocation3], 0  ;;  %v51_v22 = vld [vmem:[%s4718_s2 + $0x18] sm:$0xff]  ;;  %v49_v23 = vld [vmem:[%s4718_s2 + $0x8] sm:$0xff]  ;;  %v109_v24 = vsel %vm89_vm0, %v42_v17, 0  ;;  %v40_v25 = vpack.c.bf16 %v32_v20, %v32_v20  ;;  %v41_v26 = vpack.c.bf16 %v33_v21, %v33_v21  ;;  %2861 = vmatmul.msk.bf16.vlgmr.msra.gmra.mxu1 %vm82_vm1, %v3131_v12  ;;  %v112_v27 = vsel %vm89_vm0, %v43_v19, 0 }
   0x9   :  { %2859 = vmatmul.msk.bf16.vlgmr.msra.gmra.mxu0 %vm82_vm1, %v3131_v12  ;;  %2863 = vmatmul.msk.bf16.vlgmr.msra.gmra.mxu2 %vm82_vm1, %v3131_v12  ;;  %v366_v30 = vld [vmem:[%s4720_s4] sm:$0xff]  ;;  %v367_v31 = vld [vmem:[%s4720_s4 + $0x8] sm:$0xff]  ;;  %v2906_v33 = vld [vmem:[%s4720_s4 + $0x38] sm:$0xff]  ;;  %vm400_vm2 = vcmask 261120   ;;  %s2842_s23 = sshll.u32 %s4723_s7, 4  ;;  %s2843_s23 = int_to_ptr.hbm [resolvable:$true] %s2842_s23 }
   0xa   :  { %2865 = vmatmul.msk.bf16.vlgmr.msra.gmra.mxu3 %vm82_vm1, %v3131_v12  ;;  %235 = vmatpush.bf16.msrb.mxu2 %v109_v24  ;;  %v103_v28 = vsel %vm89_vm0, %v40_v25, 0  ;;  %v106_v29 = vsel %vm89_vm0, %v41_v26, 0  ;;  %v3132_v32 = vld [vmem:[%s4717_s1 + $0x8] sm:$0xff]  ;;  %v2903_v34 = vld [vmem:[%s4720_s4 + $0x20] sm:$0xff]  ;;  %v2937_v35 = vld [vmem:[%s4720_s4 + $0x50] sm:$0xff] }
   0xb   :  { %69 = vperm.xlu0 %3151, %v51_v22   ;;  %59 = vperm.xlu1 %3152, %v49_v23   ;;  %v2938_v36 = vld [vmem:[%s4720_s4 + $0x58] sm:$0xff]  ;;  %v2936_v37 = vld [vmem:[%s4720_s4 + $0x48] sm:$0xff]  ;;  %v2969_v38 = vld [vmem:[%s4720_s4 + $0x70] sm:$0xff] }
   0xc   :  { %254 = vmatpush.bf16.msrb.mxu3 %v112_v27  ;;  %197 = vmatpush.bf16.msrb.mxu0 %v103_v28  ;;  %v2967_v39 = vld [vmem:[%s4720_s4 + $0x60] sm:$0xff]  ;;  %v2968_v40 = vld [vmem:[%s4720_s4 + $0x68] sm:$0xff]  ;;  %v3002_v41 = vld [vmem:[%s4720_s4 + $0x98] sm:$0xff] }
   0xd   :  { %216 = vmatpush.bf16.msrb.mxu1 %v106_v29  ;;  %v2999_v42 = vld [vmem:[%s4720_s4 + $0x80] sm:$0xff]  ;;  %v3033_v43 = vld [vmem:[%s4720_s4 + $0xb0] sm:$0xff]  ;;  %v3034_v44 = vld [vmem:[%s4720_s4 + $0xb8] sm:$0xff] }
   0xe   :  { %v3032_v45 = vld [vmem:[%s4720_s4 + $0xa8] sm:$0xff]  ;;  %v3065_v46 = vld [vmem:[%s4720_s4 + $0xd0] sm:$0xff]  ;;  %v3063_v47 = vld [vmem:[%s4720_s4 + $0xc0] sm:$0xff] }
   0xf   :  { %v3064_v48 = vld [vmem:[%s4720_s4 + $0xc8] sm:$0xff]  ;;  %v3098_v49 = vld [vmem:[%s4720_s4 + $0xf8] sm:$0xff]  ;;  %v3095_v50 = vld [vmem:[%s4720_s4 + $0xe0] sm:$0xff] }
  0x10   :  { %v2714_v51 = vld [vmem:[%s4722_s6] sm:$0xff]  ;;  %v368_v52 = vld [vmem:[%s4720_s4 + $0x10] sm:$0xff]  ;;  %v369_v55 = vld [vmem:[%s4720_s4 + $0x18] sm:$0xff] }
  0x11   :  { %382 = vperm.xlu2 %3153, %v368_v52   ;;  %v2905_v60 = vld [vmem:[%s4720_s4 + $0x30] sm:$0xff]  ;;  %v2904_v5 = vld [vmem:[%s4720_s4 + $0x28] sm:$0xff]  ;;  %v2935_v18 = vld [vmem:[%s4720_s4 + $0x40] sm:$0xff] }
  0x13   :  { %372 = vperm.xlu0 %3151, %v366_v30   ;;  %377 = vperm.xlu1 %3152, %v367_v31  }
  0x18   :  { %2862 = vmatmul.msk.bf16.gmra.mxu1 %vm82_vm1, %v3132_v32 }
  0x19   :  { %2860 = vmatmul.msk.bf16.gmra.mxu0 %vm82_vm1, %v3132_v32  ;;  %2864 = vmatmul.msk.bf16.gmra.mxu2 %vm82_vm1, %v3132_v32 }
  0x1a   :  { %2866 = vmatmul.msk.bf16.gmra.mxu3 %vm82_vm1, %v3132_v32  ;;  %387 = vperm.xlu2 %3153, %v369_v55  }
  0x1b   :  { %682 = vperm.xlu0 %3151, %v2906_v33   ;;  %667 = vperm.xlu1 %3152, %v2903_v34  }
  0x22   :  { %677 = vperm.xlu2 %3153, %v2905_v60  }
  0x23   :  { %971 = vperm.xlu0 %3151, %v2937_v35   ;;  %976 = vperm.xlu1 %3152, %v2938_v36  }
  0x28   :  { %2869 = vmatmul.msk.bf16.vlgmr.msrb.gmra.mxu1 %vm82_vm1, %v3131_v12 }
  0x29   :  { %2867 = vmatmul.msk.bf16.vlgmr.msrb.gmra.mxu0 %vm82_vm1, %v3131_v12  ;;  %2871 = vmatmul.msk.bf16.vlgmr.msrb.gmra.mxu2 %vm82_vm1, %v3131_v12 }
  0x2a   :  { %2873 = vmatmul.msk.bf16.vlgmr.msrb.gmra.mxu3 %vm82_vm1, %v3131_v12  ;;  %672 = vperm.xlu2 %3153, %v2904_v5  }
  0x2b   :  { %966 = vperm.xlu0 %3151, %v2936_v37   ;;  %1265 = vperm.xlu1 %3152, %v2969_v38  }
  0x32   :  { %961 = vperm.xlu2 %3153, %v2935_v18  }
  0x33   :  { %1255 = vperm.xlu0 %3151, %v2967_v39   ;;  %1260 = vperm.xlu1 %3152, %v2968_v40  }
  0x38   :  { %2870 = vmatmul.msk.bf16.gmra.mxu1 %vm82_vm1, %v3132_v32 }
  0x39   :  { %2868 = vmatmul.msk.bf16.gmra.mxu0 %vm82_vm1, %v3132_v32  ;;  %2872 = vmatmul.msk.bf16.gmra.mxu2 %vm82_vm1, %v3132_v32 }
  0x3a   :  { %2874 = vmatmul.msk.bf16.gmra.mxu3 %vm82_vm1, %v3132_v32 }
  0x3b   :  { %1564 = vperm.xlu0 %3151, %v3002_v41   ;;  %1549 = vperm.xlu1 %3152, %v2999_v42  }
  0x43   :  { %1853 = vperm.xlu0 %3151, %v3033_v43   ;;  %1858 = vperm.xlu1 %3152, %v3034_v44  }
  0x4b   :  { %1848 = vperm.xlu0 %3151, %v3032_v45   ;;  %2147 = vperm.xlu1 %3152, %v3065_v46   ;;  %v2970_v45 = vld [vmem:[%s4720_s4 + $0x78] sm:$0xff] }
  0x4c   :  { %1270 = vperm.xlu2 %3153, %v2970_v45  }
  0x53   :  { %2137 = vperm.xlu0 %3151, %v3063_v47   ;;  %2142 = vperm.xlu1 %3152, %v3064_v48  }
  0x5b   :  { %2446 = vperm.xlu0 %3151, %v3098_v49   ;;  %2431 = vperm.xlu1 %3152, %v3095_v50  }
  0x63   :  { %2717 = vperm.xlu0 %3151, %v2714_v51  }
  0x74   :  { %v3933_v56 = vpop.permute.xlu1 %54  ;;  %v3938_v62 = vpop.permute.xlu0 %64 }
  0x7d   :  { %v3940_v63 = vpop.permute.xlu1 %59  ;;  %v3950_v15 = vpop.permute.xlu0 %69 }
  0x85   :  { %v142_v54 = vpop.f32.mrf.mxu1 }
  0x86   :  { %v123_v53 = vpop.f32.mrf.mxu0  ;;  %v143_v6 = vadd.f32 %v142_v54, %v3933_v56 }
  0x87   :  { %v124_v1 = vadd.f32 %v123_v53, %v3933_v56 }
  0x8c   :  { %v161_v57 = vpop.f32.mrf.mxu2 }
  0x8d   :  { %v180_v58 = vpop.f32.mrf.mxu3  ;;  %v144_v61 = vpop.f32.mrf.mxu1  ;;  %v162_v19 = vadd.f32 %v161_v57, %v3933_v56 }
  0x8e   :  { %v125_v59 = vpop.f32.mrf.mxu0  ;;  %v145_v7 = vadd.f32 %v144_v61, %v3940_v63  ;;  %v181_v33 = vadd.f32 %v180_v58, %v3933_v56 }
  0x8f   :  { %v126_v2 = vadd.f32 %v125_v59, %v3940_v63 }
  0x90   :  { %v267_v10 = vpack.c.bf16 %v145_v7, %v143_v6  ;;  %v3001_v7 = vld [vmem:[%s4720_s4 + $0x90] sm:$0xff] }
  0x91   :  { %v266_v9 = vpack.c.bf16 %v126_v2, %v124_v1  ;;  %1559 = vperm.xlu2 %3153, %v3001_v7  }
  0x92   :  { %v283_v20 = vunpack.c.l.bf16 %v267_v10  ;;  %v291_v24 = vunpack.c.h.bf16 %v267_v10 }
  0x93   :  { %v282_v12 = vunpack.c.l.bf16 %v266_v9  ;;  %v290_v16 = vunpack.c.h.bf16 %v266_v9 }
  0x94   :  { %v163_v0 = vpop.f32.mrf.mxu2 }
  0x95   :  { %v182_v3 = vpop.f32.mrf.mxu3  ;;  %v147_v8 = vpop.f32.mrf.mxu1  ;;  %v164_v13 = vadd.f32 %v163_v0, %v3940_v63  ;;  %3154 = vtanh.f32 %v282_v12 }
  0x96   :  { %v128_v4 = vpop.f32.mrf.mxu0  ;;  %v148_v25 = vadd.f32 %v147_v8, %v3938_v62  ;;  %3156 = vtanh.f32 %v290_v16  ;;  %v183_v30 = vadd.f32 %v182_v3, %v3940_v63  ;;  %v3981_v16 = vld [vmem:[%s4719_s3] sm:$0xff] }
  0x97   :  { %v129_v21 = vadd.f32 %v128_v4, %v3938_v62  ;;  %v268_v27 = vpack.c.bf16 %v164_v13, %v162_v19  ;;  %3158 = vtanh.f32 %v283_v20 }
  0x98   :  { %3160 = vtanh.f32 %v291_v24  ;;  %v269_v47 = vpack.c.bf16 %v183_v30, %v181_v33 }
  0x99   :  { %v284_v37 = vunpack.c.l.bf16 %v268_v27  ;;  %v292_v41 = vunpack.c.h.bf16 %v268_v27 }
  0x9a   :  { %v285_v60 = vunpack.c.l.bf16 %v269_v47  ;;  %v293_v0 = vunpack.c.h.bf16 %v269_v47 }
  0x9b   :  { %v3155_v46 = vpop.eup %3154 }
  0x9c   :  { %v166_v11 = vpop.f32.mrf.mxu2  ;;  %v3157_v50 = vpop.eup %3156 }
  0x9d   :  { %v185_v14 = vpop.f32.mrf.mxu3  ;;  %v149_v23 = vpop.f32.mrf.mxu1  ;;  %v167_v38 = vadd.f32 %v166_v11, %v3938_v62  ;;  %v346_v13 = vpack.c.bf16 %v3157_v50, %v3155_v46 }
  0x9e   :  { %v130_v17 = vpop.f32.mrf.mxu0  ;;  %v150_v26 = vadd.f32 %v149_v23, %v3950_v15  ;;  %v186_v42 = vadd.f32 %v185_v14, %v3938_v62  ;;  %v3159_v52 = vpop.eup %3158 }
  0x9f   :  { %v131_v22 = vadd.f32 %v130_v17, %v3950_v15  ;;  %v3161_v55 = vpop.eup %3160 }
  0xa0   :  { %v275_v29 = vpack.c.bf16 %v150_v26, %v148_v25  ;;  %v347_v18 = vpack.c.bf16 %v3161_v55, %v3159_v52  ;;  %v3000_v26 = vld [vmem:[%s4720_s4 + $0x88] sm:$0xff] }
  0xa1   :  { %v274_v28 = vpack.c.bf16 %v131_v22, %v129_v21  ;;  %1554 = vperm.xlu2 %3153, %v3000_v26   ;;  %v4012_v55 = vld [vmem:[%s4719_s3 + $0x8] sm:$0xff]  ;;  %v3097_v26 = vld [vmem:[%s4720_s4 + $0xf0] sm:$0xff] }
  0xa2   :  { %v299_v34 = vunpack.c.l.bf16 %v275_v29  ;;  %v307_v35 = vunpack.c.h.bf16 %v275_v29 }
  0xa3   :  { %v298_v31 = vunpack.c.l.bf16 %v274_v28  ;;  %v306_v32 = vunpack.c.h.bf16 %v274_v28 }
  0xa4   :  { %v168_v36 = vpop.f32.mrf.mxu2 }
  0xa5   :  { %3162 = vtanh.f32 %v298_v31  ;;  %v169_v39 = vadd.f32 %v168_v36, %v3950_v15  ;;  %v187_v40 = vpop.f32.mrf.mxu3  ;;  %v3971_v49 = vpop.f32.mrf.mxu1 }
  0xa6   :  { %3164 = vtanh.f32 %v306_v32  ;;  %v188_v43 = vadd.f32 %v187_v40, %v3950_v15  ;;  %v3966_v44 = vpop.f32.mrf.mxu0  ;;  %v219_v33 = vadd.f32 %v3971_v49, %v3933_v56 }
  0xa7   :  { %3166 = vtanh.f32 %v299_v34  ;;  %v276_v48 = vpack.c.bf16 %v169_v39, %v167_v38  ;;  %v200_v29 = vadd.f32 %v3966_v44, %v3933_v56 }
  0xa8   :  { %3168 = vtanh.f32 %v307_v35  ;;  %v277_v51 = vpack.c.bf16 %v188_v43, %v186_v42  ;;  %v3031_v43 = vld [vmem:[%s4720_s4 + $0xa0] sm:$0xff] }
  0xa9   :  { %3170 = vtanh.f32 %v284_v37  ;;  %v300_v53 = vunpack.c.l.bf16 %v276_v48  ;;  %v308_v54 = vunpack.c.h.bf16 %v276_v48  ;;  %1843 = vperm.xlu2 %3153, %v3031_v43  }
  0xaa   :  { %3172 = vtanh.f32 %v292_v41  ;;  %v301_v57 = vunpack.c.l.bf16 %v277_v51  ;;  %v309_v58 = vunpack.c.h.bf16 %v277_v51 }
  0xab   :  { %v3163_v59 = vpop.eup %3162  ;;  %3174 = vtanh.f32 %v300_v53 }
  0xac   :  { %v3165_v61 = vpop.eup %3164  ;;  %3176 = vtanh.f32 %v308_v54  ;;  %v237_v1 = vpop.f32.mrf.mxu2 }
  0xad   :  { %v3167_v2 = vpop.eup %3166  ;;  %3178 = vtanh.f32 %v301_v57  ;;  %v3973_v3 = vpop.f32.mrf.mxu3  ;;  %v354_v4 = vpack.c.bf16 %v3165_v61, %v3163_v59  ;;  %v238_v44 = vadd.f32 %v237_v1, %v3933_v56 }
  0xae   :  { %v3169_v5 = vpop.eup %3168  ;;  %3180 = vtanh.f32 %v309_v58  ;;  %v201_v6 = vpop.f32.mrf.mxu0 }
  0xaf   :  { %v3171_v8 = vpop.eup %3170  ;;  %3182 = vtanh.f32 %v285_v60  ;;  %v220_v9 = vpop.f32.mrf.mxu1  ;;  %413 = vmatpush.bf16.msra.mxu0 %v354_v4  ;;  %v355_v10 = vpack.c.bf16 %v3169_v5, %v3167_v2  ;;  %v202_v23 = vadd.f32 %v201_v6, %v3940_v63  ;;  %v257_v60 = vadd.f32 %v3973_v3, %v3933_v56  ;;  %v3066_v2 = vld [vmem:[%s4720_s4 + $0xd8] sm:$0xff] }
  0xb0   :  { %v3173_v11 = vpop.eup %3172  ;;  %3184 = vtanh.f32 %v293_v0  ;;  %v221_v30 = vadd.f32 %v220_v9, %v3940_v63 }
  0xb1   :  { %v3175_v12 = vpop.eup %3174  ;;  %432 = vmatpush.bf16.msra.mxu1 %v355_v10  ;;  %v348_v32 = vpack.c.bf16 %v3173_v11, %v3171_v8  ;;  %v270_v34 = vpack.c.bf16 %v202_v23, %v200_v29  ;;  %2152 = vperm.xlu2 %3153, %v3066_v2  }
  0xb2   :  { %v3177_v14 = vpop.eup %3176  ;;  %v271_v36 = vpack.c.bf16 %v221_v30, %v219_v33 }
  0xb3   :  { %v3179_v17 = vpop.eup %3178  ;;  %414 = vmatpush.bf16.msra.mxu0 %v346_v13  ;;  %v356_v19 = vpack.c.bf16 %v3177_v14, %v3175_v12  ;;  %v286_v38 = vunpack.c.l.bf16 %v270_v34  ;;  %v294_v41 = vunpack.c.h.bf16 %v270_v34 }
  0xb4   :  { %v3181_v20 = vpop.eup %3180  ;;  %v239_v21 = vpop.f32.mrf.mxu2  ;;  %v287_v45 = vunpack.c.l.bf16 %v271_v36  ;;  %v295_v49 = vunpack.c.h.bf16 %v271_v36 }
  0xb5   :  { %v3183_v22 = vpop.eup %3182  ;;  %433 = vmatpush.bf16.msra.mxu1 %v347_v18  ;;  %v258_v24 = vpop.f32.mrf.mxu3  ;;  %451 = vmatpush.bf16.msra.mxu2 %v356_v19  ;;  %v357_v25 = vpack.c.bf16 %v3181_v20, %v3179_v17  ;;  %v240_v39 = vadd.f32 %v239_v21, %v3940_v63  ;;  %3186 = vtanh.f32 %v286_v38 }
  0xb6   :  { %v3185_v27 = vpop.eup %3184  ;;  %2883 = vmatmul.msk.bf16.vlgmr.msra.gmra.mxu0 %vm400_vm2, %v3981_v16  ;;  %v204_v28 = vpop.f32.mrf.mxu0  ;;  %3188 = vtanh.f32 %v294_v41  ;;  %v259_v57 = vadd.f32 %v258_v24, %v3940_v63 }
  0xb7   :  { %470 = vmatpush.bf16.msra.mxu3 %v357_v25  ;;  %v223_v31 = vpop.f32.mrf.mxu1  ;;  %v349_v35 = vpack.c.bf16 %v3185_v27, %v3183_v22  ;;  %v205_v46 = vadd.f32 %v204_v28, %v3938_v62  ;;  %v272_v52 = vpack.c.bf16 %v240_v39, %v238_v44  ;;  %3190 = vtanh.f32 %v287_v45 }
  0xb8   :  { %2885 = vmatmul.msk.bf16.vlgmr.msra.gmra.mxu1 %vm400_vm2, %v3981_v16  ;;  %v224_v50 = vadd.f32 %v223_v31, %v3938_v62  ;;  %3192 = vtanh.f32 %v295_v49  ;;  %v273_v9 = vpack.c.bf16 %v259_v57, %v257_v60 }
  0xb9   :  { %452 = vmatpush.bf16.msra.mxu2 %v348_v32  ;;  %v288_v4 = vunpack.c.l.bf16 %v272_v52  ;;  %v296_v7 = vunpack.c.h.bf16 %v272_v52  ;;  %2441 = vperm.xlu2 %3153, %v3097_v26  }
  0xba   :  { %v289_v20 = vunpack.c.l.bf16 %v273_v9  ;;  %v297_v22 = vunpack.c.h.bf16 %v273_v9 }
  0xbb   :  { %471 = vmatpush.bf16.msra.mxu3 %v349_v35  ;;  %v3187_v3 = vpop.eup %3186 }
  0xbc   :  { %2887 = vmatmul.msk.bf16.vlgmr.msra.gmra.mxu2 %vm400_vm2, %v3981_v16  ;;  %v242_v37 = vpop.f32.mrf.mxu2  ;;  %v3189_v11 = vpop.eup %3188 }
  0xbd   :  { %v261_v40 = vpop.f32.mrf.mxu3  ;;  %v243_v5 = vadd.f32 %v242_v37, %v3938_v62  ;;  %v3191_v13 = vpop.eup %3190  ;;  %v350_v31 = vpack.c.bf16 %v3189_v11, %v3187_v3  ;;  %v3096_v37 = vld [vmem:[%s4720_s4 + $0xe8] sm:$0xff] }
  0xbe   :  { %2889 = vmatmul.msk.bf16.vlgmr.msra.gmra.mxu3 %vm400_vm2, %v3981_v16  ;;  %v206_v42 = vpop.f32.mrf.mxu0  ;;  %v262_v8 = vadd.f32 %v261_v40, %v3938_v62  ;;  %v3193_v17 = vpop.eup %3192 }
  0xbf   :  { %v207_v47 = vadd.f32 %v206_v42, %v3950_v15  ;;  %v225_v48 = vpop.f32.mrf.mxu1  ;;  %v351_v34 = vpack.c.bf16 %v3193_v17, %v3191_v13 }
  0xc0   :  { %v226_v51 = vadd.f32 %v225_v48, %v3950_v15  ;;  %v4054_v48 = vpop.permute.xlu2 %382 }
  0xc1   :  { %v278_v53 = vpack.c.bf16 %v207_v47, %v205_v46  ;;  %2436 = vperm.xlu2 %3153, %v3096_v37  }
  0xc2   :  { %v279_v54 = vpack.c.bf16 %v226_v51, %v224_v50  ;;  %v4056_v50 = vpop.permute.xlu1 %377 }
  0xc3   :  { %v302_v58 = vunpack.c.l.bf16 %v278_v53  ;;  %v310_v59 = vunpack.c.h.bf16 %v278_v53  ;;  %v4059_v53 = vpop.permute.xlu0 %372 }
  0xc4   :  { %v303_v61 = vunpack.c.l.bf16 %v279_v54  ;;  %v311_v0 = vunpack.c.h.bf16 %v279_v54  ;;  %v244_v1 = vpop.f32.mrf.mxu2 }
  0xc5   :  { %3194 = vtanh.f32 %v302_v58  ;;  %v245_v6 = vadd.f32 %v244_v1, %v3950_v15  ;;  %v263_v63 = vpop.f32.mrf.mxu3 }
  0xc6   :  { %3196 = vtanh.f32 %v310_v59  ;;  %v264_v56 = vadd.f32 %v263_v63, %v3950_v15  ;;  %2884 = vmatmul.msk.bf16.gmra.mxu0 %vm400_vm2, %v4012_v55 }
  0xc7   :  { %3198 = vtanh.f32 %v303_v61  ;;  %v280_v10 = vpack.c.bf16 %v245_v6, %v243_v5 }
  0xc8   :  { %3200 = vtanh.f32 %v311_v0  ;;  %v281_v12 = vpack.c.bf16 %v264_v56, %v262_v8  ;;  %2886 = vmatmul.msk.bf16.gmra.mxu1 %vm400_vm2, %v4012_v55  ;;  %v4063_v60 = vpop.permute.xlu2 %387 }
  0xc9   :  { %3202 = vtanh.f32 %v288_v4  ;;  %v304_v62 = vunpack.c.l.bf16 %v280_v10  ;;  %v312_v14 = vunpack.c.h.bf16 %v280_v10 }
  0xca   :  { %3204 = vtanh.f32 %v296_v7  ;;  %v305_v15 = vunpack.c.l.bf16 %v281_v12  ;;  %v313_v18 = vunpack.c.h.bf16 %v281_v12 }
  0xcb   :  { %v3195_v19 = vpop.eup %3194  ;;  %3206 = vtanh.f32 %v304_v62 }
  0xcc   :  { %v3197_v21 = vpop.eup %3196  ;;  %3208 = vtanh.f32 %v312_v14  ;;  %2888 = vmatmul.msk.bf16.gmra.mxu2 %vm400_vm2, %v4012_v55 }
  0xcd   :  { %v3199_v23 = vpop.eup %3198  ;;  %3210 = vtanh.f32 %v305_v15  ;;  %v358_v24 = vpack.c.bf16 %v3197_v21, %v3195_v19 }
  0xce   :  { %v3201_v25 = vpop.eup %3200  ;;  %3212 = vtanh.f32 %v313_v18  ;;  %2890 = vmatmul.msk.bf16.gmra.mxu3 %vm400_vm2, %v4012_v55 }
  0xcf   :  { %v3203_v27 = vpop.eup %3202  ;;  %3214 = vtanh.f32 %v289_v20  ;;  %489 = vmatpush.bf16.msrb.mxu0 %v358_v24  ;;  %v359_v28 = vpack.c.bf16 %v3201_v25, %v3199_v23 }
  0xd0   :  { %v3205_v29 = vpop.eup %3204  ;;  %3216 = vtanh.f32 %v297_v22 }
  0xd1   :  { %v3207_v30 = vpop.eup %3206  ;;  %508 = vmatpush.bf16.msrb.mxu1 %v359_v28  ;;  %v352_v41 = vpack.c.bf16 %v3205_v29, %v3203_v27 }
  0xd2   :  { %v3209_v32 = vpop.eup %3208 }
  0xd3   :  { %v3211_v33 = vpop.eup %3210  ;;  %490 = vmatpush.bf16.msrb.mxu0 %v350_v31  ;;  %v360_v35 = vpack.c.bf16 %v3209_v32, %v3207_v30 }
  0xd4   :  { %v3213_v36 = vpop.eup %3212 }
  0xd5   :  { %v3215_v38 = vpop.eup %3214  ;;  %509 = vmatpush.bf16.msrb.mxu1 %v351_v34  ;;  %527 = vmatpush.bf16.msrb.mxu2 %v360_v35  ;;  %v361_v39 = vpack.c.bf16 %v3213_v36, %v3211_v33 }
  0xd6   :  { %v3217_v40 = vpop.eup %3216  ;;  %2891 = vmatmul.msk.bf16.vlgmr.msrb.gmra.mxu0 %vm400_vm2, %v3981_v16 }
  0xd7   :  { %546 = vmatpush.bf16.msrb.mxu3 %v361_v39  ;;  %v353_v42 = vpack.c.bf16 %v3217_v40, %v3215_v38 }
  0xd8   :  { %2893 = vmatmul.msk.bf16.vlgmr.msrb.gmra.mxu1 %vm400_vm2, %v3981_v16 }
  0xd9   :  { %528 = vmatpush.bf16.msrb.mxu2 %v352_v41 }
  0xdb   :  { %547 = vmatpush.bf16.msrb.mxu3 %v353_v42 }
  0xdc   :  { %2895 = vmatmul.msk.bf16.vlgmr.msrb.gmra.mxu2 %vm400_vm2, %v3981_v16 }
  0xde   :  { %2897 = vmatmul.msk.bf16.vlgmr.msrb.gmra.mxu3 %vm400_vm2, %v3981_v16 }
  0xe6   :  { %2892 = vmatmul.msk.bf16.gmra.mxu0 %vm400_vm2, %v4012_v55 }
  0xe8   :  { %2894 = vmatmul.msk.bf16.gmra.mxu1 %vm400_vm2, %v4012_v55 }
  0xec   :  { %2896 = vmatmul.msk.bf16.gmra.mxu2 %vm400_vm2, %v4012_v55 }
  0xee   :  { %2898 = vmatmul.msk.bf16.gmra.mxu3 %vm400_vm2, %v4012_v55 }
 0x133   :  { %v416_v43 = vpop.f32.mrf.mxu0 }
 0x134   :  { %v417_v54 = vadd.f32 %v416_v43, %v4059_v53 }
 0x135   :  { %v435_v44 = vpop.f32.mrf.mxu1 }
 0x136   :  { %v436_v2 = vadd.f32 %v435_v44, %v4059_v53 }
 0x13b   :  { %v418_v45 = vpop.f32.mrf.mxu0 }
 0x13c   :  { %v419_v51 = vadd.f32 %v418_v45, %v4056_v50 }
 0x13d   :  { %v437_v46 = vpop.f32.mrf.mxu1 }
 0x13e   :  { %v559_v55 = vpack.c.bf16 %v419_v51, %v417_v54  ;;  %v438_v61 = vadd.f32 %v437_v46, %v4056_v50 }
 0x13f   :  { %v454_v47 = vpop.f32.mrf.mxu2 }
 0x140   :  { %v575_v4 = vunpack.c.l.bf16 %v559_v55  ;;  %v560_v7 = vpack.c.bf16 %v438_v61, %v436_v2  ;;  %v583_v3 = vunpack.c.h.bf16 %v559_v55  ;;  %v455_v62 = vadd.f32 %v454_v47, %v4059_v53 }
 0x141   :  { %v473_v16 = vpop.f32.mrf.mxu3 }
 0x142   :  { %3218 = vtanh.f32 %v575_v4  ;;  %v576_v14 = vunpack.c.l.bf16 %v560_v7  ;;  %v584_v19 = vunpack.c.h.bf16 %v560_v7  ;;  %v474_v24 = vadd.f32 %v473_v16, %v4059_v53 }
 0x143   :  { %v421_v49 = vpop.f32.mrf.mxu0 }
 0x144   :  { %v422_v59 = vadd.f32 %v421_v49, %v4054_v48 }
 0x145   :  { %v440_v52 = vpop.f32.mrf.mxu1 }
 0x146   :  { %v441_v5 = vadd.f32 %v440_v52, %v4054_v48 }
 0x147   :  { %v456_v57 = vpop.f32.mrf.mxu2 }
 0x148   :  { %v457_v9 = vadd.f32 %v456_v57, %v4056_v50  ;;  %v3219_v23 = vpop.eup %3218 }
 0x149   :  { %v475_v58 = vpop.f32.mrf.mxu3 }
 0x14a   :  { %v561_v20 = vpack.c.bf16 %v457_v9, %v455_v62  ;;  %v476_v21 = vadd.f32 %v475_v58, %v4056_v50  ;;  %v4085_v58 = vld [vmem:[%s4719_s3 + $0x10] sm:$0xff] }
 0x14b   :  { %v423_v0 = vpop.f32.mrf.mxu0 }
 0x14c   :  { %v424_v1 = vadd.f32 %v423_v0, %v4063_v60  ;;  %v577_v27 = vunpack.c.l.bf16 %v561_v20  ;;  %v585_v31 = vunpack.c.h.bf16 %v561_v20  ;;  %v562_v32 = vpack.c.bf16 %v476_v21, %v474_v24 }
 0x14d   :  { %v442_v6 = vpop.f32.mrf.mxu1 }
 0x14e   :  { %v567_v63 = vpack.c.bf16 %v424_v1, %v422_v59  ;;  %v443_v8 = vadd.f32 %v442_v6, %v4063_v60  ;;  %v578_v51 = vunpack.c.l.bf16 %v562_v32  ;;  %v586_v57 = vunpack.c.h.bf16 %v562_v32 }
 0x14f   :  { %v459_v56 = vpop.f32.mrf.mxu2 }
 0x150   :  { %v591_v10 = vunpack.c.l.bf16 %v567_v63  ;;  %v599_v11 = vunpack.c.h.bf16 %v567_v63  ;;  %v568_v12 = vpack.c.bf16 %v443_v8, %v441_v5  ;;  %v460_v28 = vadd.f32 %v459_v56, %v4054_v48 }
 0x151   :  { %v478_v13 = vpop.f32.mrf.mxu3 }
 0x152   :  { %3220 = vtanh.f32 %v591_v10  ;;  %v592_v17 = vunpack.c.l.bf16 %v568_v12  ;;  %v600_v15 = vunpack.c.h.bf16 %v568_v12  ;;  %v479_v35 = vadd.f32 %v478_v13, %v4054_v48 }
 0x153   :  { %3222 = vtanh.f32 %v599_v11  ;;  %v4072_v18 = vpop.f32.mrf.mxu0 }
 0x154   :  { %3224 = vtanh.f32 %v583_v3  ;;  %v493_v3 = vadd.f32 %v4072_v18, %v4059_v53 }
 0x155   :  { %3226 = vtanh.f32 %v592_v17  ;;  %v4075_v22 = vpop.f32.mrf.mxu1 }
 0x156   :  { %3228 = vtanh.f32 %v600_v15  ;;  %v512_v18 = vadd.f32 %v4075_v22, %v4059_v53 }
 0x157   :  { %3230 = vtanh.f32 %v576_v14  ;;  %v461_v25 = vpop.f32.mrf.mxu2 }
 0x158   :  { %v3221_v26 = vpop.eup %3220  ;;  %3232 = vtanh.f32 %v584_v19  ;;  %v462_v29 = vadd.f32 %v461_v25, %v4063_v60 }
 0x159   :  { %v3223_v30 = vpop.eup %3222  ;;  %v480_v33 = vpop.f32.mrf.mxu3  ;;  %3234 = vtanh.f32 %v577_v27 }
 0x15a   :  { %v3225_v34 = vpop.eup %3224  ;;  %v569_v36 = vpack.c.bf16 %v462_v29, %v460_v28  ;;  %v481_v37 = vadd.f32 %v480_v33, %v4063_v60  ;;  %v647_v38 = vpack.c.bf16 %v3223_v30, %v3221_v26  ;;  %3236 = vtanh.f32 %v585_v31  ;;  %v4108_v30 = vld [vmem:[%s4719_s3 + $0x18] sm:$0xff] }
 0x15b   :  { %v3227_v39 = vpop.eup %3226  ;;  %v494_v40 = vpop.f32.mrf.mxu0  ;;  %v639_v16 = vpack.c.bf16 %v3225_v34, %v3219_v23 }
 0x15c   :  { %v3229_v41 = vpop.eup %3228  ;;  %v593_v42 = vunpack.c.l.bf16 %v569_v36  ;;  %v601_v43 = vunpack.c.h.bf16 %v569_v36  ;;  %v570_v44 = vpack.c.bf16 %v481_v37, %v479_v35  ;;  %707 = vmatpush.bf16.msra.mxu0 %v647_v38  ;;  %v495_v6 = vadd.f32 %v494_v40, %v4056_v50 }
 0x15d   :  { %v3231_v45 = vpop.eup %3230  ;;  %v513_v46 = vpop.f32.mrf.mxu1  ;;  %v648_v47 = vpack.c.bf16 %v3229_v41, %v3227_v39 }
 0x15e   :  { %v3233_v49 = vpop.eup %3232  ;;  %3238 = vtanh.f32 %v593_v42  ;;  %v594_v52 = vunpack.c.l.bf16 %v570_v44  ;;  %v602_v54 = vunpack.c.h.bf16 %v570_v44  ;;  %v563_v13 = vpack.c.bf16 %v495_v6, %v493_v3 }
 0x15f   :  { %3240 = vtanh.f32 %v601_v43  ;;  %726 = vmatpush.bf16.msra.mxu1 %v648_v47  ;;  %v530_v55 = vpop.f32.mrf.mxu2  ;;  %v640_v61 = vpack.c.bf16 %v3233_v49, %v3231_v45  ;;  %v3235_v0 = vpop.eup %3234  ;;  %v514_v17 = vadd.f32 %v513_v46, %v4056_v50 }
 0x160   :  { %3242 = vtanh.f32 %v594_v52  ;;  %708 = vmatpush.bf16.msra.mxu0 %v639_v16  ;;  %v3237_v1 = vpop.eup %3236  ;;  %v579_v23 = vunpack.c.l.bf16 %v563_v13  ;;  %v587_v31 = vunpack.c.h.bf16 %v563_v13  ;;  %v531_v36 = vadd.f32 %v530_v55, %v4059_v53 }
 0x161   :  { %3244 = vtanh.f32 %v602_v54  ;;  %v4087_v59 = vpop.f32.mrf.mxu3  ;;  %v641_v14 = vpack.c.bf16 %v3237_v1, %v3235_v0  ;;  %v564_v26 = vpack.c.bf16 %v514_v17, %v512_v18 }
 0x162   :  { %3246 = vtanh.f32 %v578_v51  ;;  %v550_v44 = vadd.f32 %v4087_v59, %v4059_v53 }
 0x163   :  { %3248 = vtanh.f32 %v586_v57  ;;  %727 = vmatpush.bf16.msra.mxu1 %v640_v61  ;;  %2915 = vmatmul.msk.bf16.vlgmr.msra.gmra.mxu0 %vm400_vm2, %v4085_v58  ;;  %v497_v2 = vpop.f32.mrf.mxu0  ;;  %v580_v37 = vunpack.c.l.bf16 %v564_v26  ;;  %v588_v40 = vunpack.c.h.bf16 %v564_v26 }
 0x164   :  { %v3239_v4 = vpop.eup %3238  ;;  %v498_v19 = vadd.f32 %v497_v2, %v4054_v48  ;;  %3250 = vtanh.f32 %v579_v23 }
 0x165   :  { %v3241_v5 = vpop.eup %3240  ;;  %v516_v63 = vpop.f32.mrf.mxu1 }
 0x166   :  { %v3243_v7 = vpop.eup %3242  ;;  %2917 = vmatmul.msk.bf16.vlgmr.msra.gmra.mxu1 %vm400_vm2, %v4085_v58  ;;  %v649_v8 = vpack.c.bf16 %v3241_v5, %v3239_v4  ;;  %v517_v27 = vadd.f32 %v516_v63, %v4054_v48 }
 0x167   :  { %v3245_v56 = vpop.eup %3244  ;;  %v532_v9 = vpop.f32.mrf.mxu2 }
 0x168   :  { %v3247_v10 = vpop.eup %3246  ;;  %745 = vmatpush.bf16.msra.mxu2 %v649_v8  ;;  %v650_v11 = vpack.c.bf16 %v3245_v56, %v3243_v7  ;;  %v533_v22 = vadd.f32 %v532_v9, %v4056_v50 }
 0x169   :  { %v3249_v12 = vpop.eup %3248  ;;  %v551_v62 = vpop.f32.mrf.mxu3 }
 0x16a   :  { %764 = vmatpush.bf16.msra.mxu3 %v650_v11  ;;  %v642_v21 = vpack.c.bf16 %v3249_v12, %v3247_v10  ;;  %v565_v41 = vpack.c.bf16 %v533_v22, %v531_v36  ;;  %v552_v42 = vadd.f32 %v551_v62, %v4056_v50  ;;  %v3251_v43 = vpop.eup %3250  ;;  %v4150_v22 = vpop.permute.xlu1 %667 }
 0x16b   :  { %v499_v15 = vpop.f32.mrf.mxu0 }
 0x16c   :  { %v500_v20 = vadd.f32 %v499_v15, %v4063_v60  ;;  %746 = vmatpush.bf16.msra.mxu2 %v641_v14  ;;  %v581_v47 = vunpack.c.l.bf16 %v565_v41  ;;  %v589_v50 = vunpack.c.h.bf16 %v565_v41  ;;  %v566_v52 = vpack.c.bf16 %v552_v42, %v550_v44 }
 0x16d   :  { %v518_v24 = vpop.f32.mrf.mxu1 }
 0x16e   :  { %v571_v25 = vpack.c.bf16 %v500_v20, %v498_v19  ;;  %765 = vmatpush.bf16.msra.mxu3 %v642_v21  ;;  %v519_v28 = vadd.f32 %v518_v24, %v4063_v60  ;;  %v582_v56 = vunpack.c.l.bf16 %v566_v52  ;;  %v590_v9 = vunpack.c.h.bf16 %v566_v52 }
 0x16f   :  { %2919 = vmatmul.msk.bf16.vlgmr.msra.gmra.mxu2 %vm400_vm2, %v4085_v58  ;;  %v535_v29 = vpop.f32.mrf.mxu2 }
 0x170   :  { %v595_v32 = vunpack.c.l.bf16 %v571_v25  ;;  %v603_v33 = vunpack.c.h.bf16 %v571_v25  ;;  %v572_v34 = vpack.c.bf16 %v519_v28, %v517_v27  ;;  %v536_v16 = vadd.f32 %v535_v29, %v4054_v48  ;;  %v4145_v25 = vpop.permute.xlu2 %677 }
 0x171   :  { %2921 = vmatmul.msk.bf16.vlgmr.msra.gmra.mxu3 %vm400_vm2, %v4085_v58  ;;  %v554_v35 = vpop.f32.mrf.mxu3 }
 0x172   :  { %3252 = vtanh.f32 %v595_v32  ;;  %v596_v38 = vunpack.c.l.bf16 %v572_v34  ;;  %v604_v39 = vunpack.c.h.bf16 %v572_v34  ;;  %v555_v55 = vadd.f32 %v554_v35, %v4054_v48  ;;  %v4155_v35 = vpop.permute.xlu0 %682 }
 0x173   :  { %3254 = vtanh.f32 %v603_v33  ;;  %2916 = vmatmul.msk.bf16.gmra.mxu0 %vm400_vm2, %v4108_v30 }
 0x174   :  { %3256 = vtanh.f32 %v587_v31 }
 0x175   :  { %3258 = vtanh.f32 %v596_v38 }
 0x176   :  { %3260 = vtanh.f32 %v604_v39  ;;  %2918 = vmatmul.msk.bf16.gmra.mxu1 %vm400_vm2, %v4108_v30 }
 0x177   :  { %3262 = vtanh.f32 %v580_v37  ;;  %v537_v45 = vpop.f32.mrf.mxu2 }
 0x178   :  { %v3253_v46 = vpop.eup %3252  ;;  %3264 = vtanh.f32 %v588_v40  ;;  %v538_v49 = vadd.f32 %v537_v45, %v4063_v60 }
 0x179   :  { %v3255_v51 = vpop.eup %3254  ;;  %v556_v54 = vpop.f32.mrf.mxu3  ;;  %3266 = vtanh.f32 %v581_v47 }
 0x17a   :  { %v3257_v57 = vpop.eup %3256  ;;  %v573_v61 = vpack.c.bf16 %v538_v49, %v536_v16  ;;  %v557_v0 = vadd.f32 %v556_v54, %v4063_v60  ;;  %v651_v1 = vpack.c.bf16 %v3255_v51, %v3253_v46  ;;  %3268 = vtanh.f32 %v589_v50 }
 0x17b   :  { %v3259_v53 = vpop.eup %3258  ;;  %v643_v7 = vpack.c.bf16 %v3257_v57, %v3251_v43 }
 0x17c   :  { %v3261_v59 = vpop.eup %3260  ;;  %v597_v2 = vunpack.c.l.bf16 %v573_v61  ;;  %v605_v4 = vunpack.c.h.bf16 %v573_v61  ;;  %v574_v5 = vpack.c.bf16 %v557_v0, %v555_v55  ;;  %783 = vmatpush.bf16.msrb.mxu0 %v651_v1 }
 0x17d   :  { %v3263_v6 = vpop.eup %3262  ;;  %v652_v63 = vpack.c.bf16 %v3261_v59, %v3259_v53 }
 0x17e   :  { %v3265_v8 = vpop.eup %3264  ;;  %3270 = vtanh.f32 %v597_v2  ;;  %v598_v3 = vunpack.c.l.bf16 %v574_v5  ;;  %v606_v48 = vunpack.c.h.bf16 %v574_v5 }
 0x17f   :  { %3272 = vtanh.f32 %v605_v4  ;;  %802 = vmatpush.bf16.msrb.mxu1 %v652_v63  ;;  %2920 = vmatmul.msk.bf16.gmra.mxu2 %vm400_vm2, %v4108_v30  ;;  %v644_v60 = vpack.c.bf16 %v3265_v8, %v3263_v6  ;;  %v3267_v10 = vpop.eup %3266 }
 0x180   :  { %3274 = vtanh.f32 %v598_v3  ;;  %784 = vmatpush.bf16.msrb.mxu0 %v643_v7  ;;  %v3269_v11 = vpop.eup %3268 }
 0x181   :  { %3276 = vtanh.f32 %v606_v48  ;;  %2922 = vmatmul.msk.bf16.gmra.mxu3 %vm400_vm2, %v4108_v30  ;;  %v645_v21 = vpack.c.bf16 %v3269_v11, %v3267_v10 }
 0x182   :  { %3278 = vtanh.f32 %v582_v56 }
 0x183   :  { %3280 = vtanh.f32 %v590_v9  ;;  %803 = vmatpush.bf16.msrb.mxu1 %v644_v60  ;;  %2923 = vmatmul.msk.bf16.vlgmr.msrb.gmra.mxu0 %vm400_vm2, %v4085_v58 }
 0x184   :  { %v3271_v12 = vpop.eup %3270 }
 0x185   :  { %v3273_v13 = vpop.eup %3272 }
 0x186   :  { %v3275_v62 = vpop.eup %3274  ;;  %2925 = vmatmul.msk.bf16.vlgmr.msrb.gmra.mxu1 %vm400_vm2, %v4085_v58  ;;  %v653_v14 = vpack.c.bf16 %v3273_v13, %v3271_v12 }
 0x187   :  { %v3277_v17 = vpop.eup %3276 }
 0x188   :  { %v3279_v15 = vpop.eup %3278  ;;  %821 = vmatpush.bf16.msrb.mxu2 %v653_v14  ;;  %v654_v19 = vpack.c.bf16 %v3277_v17, %v3275_v62 }
 0x189   :  { %v3281_v20 = vpop.eup %3280 }
 0x18a   :  { %840 = vmatpush.bf16.msrb.mxu3 %v654_v19  ;;  %v646_v18 = vpack.c.bf16 %v3281_v20, %v3279_v15  ;;  %v4173_v20 = vld [vmem:[%s4719_s3 + $0x20] sm:$0xff] }
 0x18c   :  { %822 = vmatpush.bf16.msrb.mxu2 %v645_v21 }
 0x18e   :  { %841 = vmatpush.bf16.msrb.mxu3 %v646_v18 }
 0x18f   :  { %2927 = vmatmul.msk.bf16.vlgmr.msrb.gmra.mxu2 %vm400_vm2, %v4085_v58 }
 0x191   :  { %2929 = vmatmul.msk.bf16.vlgmr.msrb.gmra.mxu3 %vm400_vm2, %v4085_v58  ;;  %v4147_v58 = vpop.permute.xlu2 %672 }
 0x193   :  { %2924 = vmatmul.msk.bf16.gmra.mxu0 %vm400_vm2, %v4108_v30 }
 0x196   :  { %2926 = vmatmul.msk.bf16.gmra.mxu1 %vm400_vm2, %v4108_v30 }
 0x19f   :  { %2928 = vmatmul.msk.bf16.gmra.mxu2 %vm400_vm2, %v4108_v30 }
 0x1a1   :  { %2930 = vmatmul.msk.bf16.gmra.mxu3 %vm400_vm2, %v4108_v30 }
 0x1e0   :  { %v710_v23 = vpop.f32.mrf.mxu0 }
 0x1e1   :  { %v711_v33 = vadd.f32 %v710_v23, %v4150_v22 }
 0x1e3   :  { %v729_v24 = vpop.f32.mrf.mxu1 }
 0x1e4   :  { %v730_v40 = vadd.f32 %v729_v24, %v4150_v22 }
 0x1e8   :  { %v712_v26 = vpop.f32.mrf.mxu0 }
 0x1e9   :  { %v713_v29 = vadd.f32 %v712_v26, %v4147_v58 }
 0x1eb   :  { %v731_v27 = vpop.f32.mrf.mxu1  ;;  %v853_v30 = vpack.c.bf16 %v713_v29, %v711_v33 }
 0x1ec   :  { %v732_v36 = vadd.f32 %v731_v27, %v4147_v58 }
 0x1ed   :  { %v869_v41 = vunpack.c.l.bf16 %v853_v30  ;;  %v877_v49 = vunpack.c.h.bf16 %v853_v30 }
 0x1ee   :  { %v854_v45 = vpack.c.bf16 %v732_v36, %v730_v40 }
 0x1ef   :  { %3282 = vtanh.f32 %v869_v41 }
 0x1f0   :  { %v715_v28 = vpop.f32.mrf.mxu0  ;;  %v870_v54 = vunpack.c.l.bf16 %v854_v45  ;;  %v878_v0 = vunpack.c.h.bf16 %v854_v45 }
 0x1f1   :  { %v716_v38 = vadd.f32 %v715_v28, %v4145_v25 }
 0x1f2   :  { %v748_v31 = vpop.f32.mrf.mxu2 }
 0x1f3   :  { %v734_v32 = vpop.f32.mrf.mxu1  ;;  %v749_v7 = vadd.f32 %v748_v31, %v4150_v22 }
 0x1f4   :  { %v4153_v34 = vpop.f32.mrf.mxu3  ;;  %v735_v46 = vadd.f32 %v734_v32, %v4145_v25 }
 0x1f5   :  { %v3283_v59 = vpop.eup %3282  ;;  %v768_v26 = vadd.f32 %v4153_v34, %v4150_v22 }
 0x1f8   :  { %v717_v37 = vpop.f32.mrf.mxu0 }
 0x1f9   :  { %v718_v39 = vadd.f32 %v717_v37, %v4155_v35 }
 0x1fa   :  { %v750_v42 = vpop.f32.mrf.mxu2 }
 0x1fb   :  { %v861_v43 = vpack.c.bf16 %v718_v39, %v716_v38  ;;  %v736_v44 = vpop.f32.mrf.mxu1  ;;  %v751_v5 = vadd.f32 %v750_v42, %v4147_v58 }
 0x1fc   :  { %v737_v47 = vadd.f32 %v736_v44, %v4155_v35  ;;  %v769_v16 = vpop.f32.mrf.mxu3 }
 0x1fd   :  { %v885_v51 = vunpack.c.l.bf16 %v861_v43  ;;  %v893_v50 = vunpack.c.h.bf16 %v861_v43  ;;  %v855_v9 = vpack.c.bf16 %v751_v5, %v749_v7  ;;  %v770_v15 = vadd.f32 %v769_v16, %v4147_v58  ;;  %v4199_v7 = vld [vmem:[%s4719_s3 + $0x28] sm:$0xff] }
 0x1fe   :  { %v862_v52 = vpack.c.bf16 %v737_v47, %v735_v46 }
 0x1ff   :  { %3284 = vtanh.f32 %v885_v51  ;;  %v871_v21 = vunpack.c.l.bf16 %v855_v9  ;;  %v879_v28 = vunpack.c.h.bf16 %v855_v9  ;;  %v856_v32 = vpack.c.bf16 %v770_v15, %v768_v26 }
 0x200   :  { %3286 = vtanh.f32 %v893_v50  ;;  %v886_v57 = vunpack.c.l.bf16 %v862_v52  ;;  %v894_v55 = vunpack.c.h.bf16 %v862_v52  ;;  %v786_v61 = vpop.f32.mrf.mxu0 }
 0x201   :  { %3288 = vtanh.f32 %v877_v49  ;;  %v872_v40 = vunpack.c.l.bf16 %v856_v32  ;;  %v787_v41 = vadd.f32 %v786_v61, %v4150_v22  ;;  %v880_v43 = vunpack.c.h.bf16 %v856_v32 }
 0x202   :  { %3290 = vtanh.f32 %v886_v57  ;;  %v753_v1 = vpop.f32.mrf.mxu2 }
 0x203   :  { %3292 = vtanh.f32 %v894_v55  ;;  %v4163_v53 = vpop.f32.mrf.mxu1  ;;  %v754_v13 = vadd.f32 %v753_v1, %v4145_v25 }
 0x204   :  { %3294 = vtanh.f32 %v870_v54  ;;  %v772_v2 = vpop.f32.mrf.mxu3  ;;  %v806_v54 = vadd.f32 %v4163_v53, %v4150_v22 }
 0x205   :  { %v3285_v4 = vpop.eup %3284  ;;  %3296 = vtanh.f32 %v878_v0  ;;  %v773_v18 = vadd.f32 %v772_v2, %v4145_v25 }
 0x206   :  { %v3287_v6 = vpop.eup %3286  ;;  %3298 = vtanh.f32 %v871_v21 }
 0x207   :  { %v3289_v63 = vpop.eup %3288  ;;  %v941_v8 = vpack.c.bf16 %v3287_v6, %v3285_v4 }
 0x208   :  { %v3291_v56 = vpop.eup %3290  ;;  %v788_v3 = vpop.f32.mrf.mxu0  ;;  %v933_v17 = vpack.c.bf16 %v3289_v63, %v3283_v59 }
 0x209   :  { %v3293_v48 = vpop.eup %3292  ;;  %1001 = vmatpush.bf16.msra.mxu0 %v941_v8  ;;  %v789_v37 = vadd.f32 %v788_v3, %v4147_v58 }
 0x20a   :  { %v3295_v60 = vpop.eup %3294  ;;  %v942_v10 = vpack.c.bf16 %v3293_v48, %v3291_v56  ;;  %v755_v11 = vpop.f32.mrf.mxu2 }
 0x20b   :  { %v3297_v12 = vpop.eup %3296  ;;  %v807_v62 = vpop.f32.mrf.mxu1  ;;  %v756_v14 = vadd.f32 %v755_v11, %v4155_v35  ;;  %v857_v44 = vpack.c.bf16 %v789_v37, %v787_v41 }
 0x20c   :  { %1020 = vmatpush.bf16.msra.mxu1 %v942_v10  ;;  %v774_v19 = vpop.f32.mrf.mxu3  ;;  %v934_v27 = vpack.c.bf16 %v3297_v12, %v3295_v60  ;;  %v3299_v45 = vpop.eup %3298  ;;  %v808_v47 = vadd.f32 %v807_v62, %v4147_v58 }
 0x20d   :  { %v863_v23 = vpack.c.bf16 %v756_v14, %v754_v13  ;;  %v775_v24 = vadd.f32 %v774_v19, %v4155_v35  ;;  %1002 = vmatpush.bf16.msra.mxu0 %v933_v17  ;;  %v873_v57 = vunpack.c.l.bf16 %v857_v44  ;;  %v881_v8 = vunpack.c.h.bf16 %v857_v44 }
 0x20e   :  { %v858_v4 = vpack.c.bf16 %v808_v47, %v806_v54 }
 0x20f   :  { %v887_v29 = vunpack.c.l.bf16 %v863_v23  ;;  %v864_v31 = vpack.c.bf16 %v775_v24, %v773_v18  ;;  %v895_v33 = vunpack.c.h.bf16 %v863_v23 }
 0x210   :  { %1021 = vmatpush.bf16.msra.mxu1 %v934_v27  ;;  %2947 = vmatmul.msk.bf16.vlgmr.msra.gmra.mxu0 %vm400_vm2, %v4173_v20  ;;  %v791_v30 = vpop.f32.mrf.mxu0  ;;  %v874_v11 = vunpack.c.l.bf16 %v858_v4  ;;  %v882_v62 = vunpack.c.h.bf16 %v858_v4 }
 0x211   :  { %v888_v36 = vunpack.c.l.bf16 %v864_v31  ;;  %3300 = vtanh.f32 %v887_v29  ;;  %v896_v38 = vunpack.c.h.bf16 %v864_v31  ;;  %v792_v51 = vadd.f32 %v791_v30, %v4145_v25 }
 0x212   :  { %v4182_v39 = vpop.f32.mrf.mxu2  ;;  %3302 = vtanh.f32 %v879_v28 }
 0x213   :  { %2949 = vmatmul.msk.bf16.vlgmr.msra.gmra.mxu1 %vm400_vm2, %v4173_v20  ;;  %v810_v34 = vpop.f32.mrf.mxu1  ;;  %3304 = vtanh.f32 %v895_v33  ;;  %v825_v23 = vadd.f32 %v4182_v39, %v4150_v22 }
 0x214   :  { %v4187_v42 = vpop.f32.mrf.mxu3  ;;  %3306 = vtanh.f32 %v888_v36  ;;  %v811_v5 = vadd.f32 %v810_v34, %v4145_v25 }
 0x215   :  { %3308 = vtanh.f32 %v896_v38  ;;  %v844_v30 = vadd.f32 %v4187_v42, %v4150_v22 }
 0x216   :  { %3310 = vtanh.f32 %v872_v40 }
 0x217   :  { %v3301_v46 = vpop.eup %3300  ;;  %3312 = vtanh.f32 %v880_v43 }
 0x218   :  { %v793_v16 = vpop.f32.mrf.mxu0  ;;  %v3303_v49 = vpop.eup %3302  ;;  %3314 = vtanh.f32 %v873_v57 }
 0x219   :  { %v794_v50 = vadd.f32 %v793_v16, %v4155_v35  ;;  %v3305_v52 = vpop.eup %3304  ;;  %v935_v10 = vpack.c.bf16 %v3303_v49, %v3299_v45 }
 0x21a   :  { %v826_v55 = vpop.f32.mrf.mxu2  ;;  %v3307_v61 = vpop.eup %3306  ;;  %v943_v59 = vpack.c.bf16 %v3305_v52, %v3301_v46 }
 0x21b   :  { %v865_v0 = vpack.c.bf16 %v794_v50, %v792_v51  ;;  %v812_v1 = vpop.f32.mrf.mxu1  ;;  %v3309_v2 = vpop.eup %3308  ;;  %v827_v15 = vadd.f32 %v826_v55, %v4147_v58 }
 0x21c   :  { %v813_v6 = vadd.f32 %v812_v1, %v4155_v35  ;;  %v845_v63 = vpop.f32.mrf.mxu3  ;;  %1039 = vmatpush.bf16.msra.mxu2 %v943_v59  ;;  %v3311_v3 = vpop.eup %3310  ;;  %v944_v9 = vpack.c.bf16 %v3309_v2, %v3307_v61 }
 0x21d   :  { %v889_v53 = vunpack.c.l.bf16 %v865_v0  ;;  %v897_v56 = vunpack.c.h.bf16 %v865_v0  ;;  %v3313_v60 = vpop.eup %3312  ;;  %v859_v27 = vpack.c.bf16 %v827_v15, %v825_v23  ;;  %v846_v32 = vadd.f32 %v845_v63, %v4147_v58 }
 0x21e   :  { %v866_v48 = vpack.c.bf16 %v813_v6, %v811_v5  ;;  %1058 = vmatpush.bf16.msra.mxu3 %v944_v9  ;;  %v936_v14 = vpack.c.bf16 %v3313_v60, %v3311_v3  ;;  %v3315_v19 = vpop.eup %3314 }
 0x21f   :  { %3316 = vtanh.f32 %v889_v53  ;;  %v875_v39 = vunpack.c.l.bf16 %v859_v27  ;;  %v883_v43 = vunpack.c.h.bf16 %v859_v27  ;;  %v860_v45 = vpack.c.bf16 %v846_v32, %v844_v30  ;;  %v4239_v53 = vpop.permute.xlu0 %971 }
 0x220   :  { %3318 = vtanh.f32 %v897_v56  ;;  %v890_v12 = vunpack.c.l.bf16 %v866_v48  ;;  %v898_v13 = vunpack.c.h.bf16 %v866_v48  ;;  %2948 = vmatmul.msk.bf16.gmra.mxu0 %vm400_vm2, %v4199_v7  ;;  %1040 = vmatpush.bf16.msra.mxu2 %v935_v10  ;;  %v4244_v10 = vpop.permute.xlu2 %961 }
 0x221   :  { %3320 = vtanh.f32 %v881_v8  ;;  %v876_v51 = vunpack.c.l.bf16 %v860_v45  ;;  %v884_v54 = vunpack.c.h.bf16 %v860_v45 }
 0x222   :  { %3322 = vtanh.f32 %v890_v12  ;;  %v829_v17 = vpop.f32.mrf.mxu2  ;;  %1059 = vmatpush.bf16.msra.mxu3 %v936_v14 }
 0x223   :  { %3324 = vtanh.f32 %v898_v13  ;;  %2950 = vmatmul.msk.bf16.gmra.mxu1 %vm400_vm2, %v4199_v7  ;;  %2951 = vmatmul.msk.bf16.vlgmr.msra.gmra.mxu2 %vm400_vm2, %v4173_v20  ;;  %v830_v34 = vadd.f32 %v829_v17, %v4145_v25  ;;  %v4247_v13 = vpop.permute.xlu1 %976 }
 0x224   :  { %3326 = vtanh.f32 %v874_v11  ;;  %v848_v21 = vpop.f32.mrf.mxu3 }
 0x225   :  { %v3317_v18 = vpop.eup %3316  ;;  %3328 = vtanh.f32 %v882_v62  ;;  %2953 = vmatmul.msk.bf16.vlgmr.msra.gmra.mxu3 %vm400_vm2, %v4173_v20  ;;  %v849_v58 = vadd.f32 %v848_v21, %v4145_v25 }
 0x226   :  { %v3319_v24 = vpop.eup %3318  ;;  %3330 = vtanh.f32 %v875_v39 }
 0x227   :  { %v3321_v26 = vpop.eup %3320  ;;  %v945_v28 = vpack.c.bf16 %v3319_v24, %v3317_v18  ;;  %3332 = vtanh.f32 %v883_v43  ;;  %v4241_v9 = vpop.permute.xlu0 %966 }
 0x228   :  { %v3323_v29 = vpop.eup %3322  ;;  %v937_v41 = vpack.c.bf16 %v3321_v26, %v3315_v19 }
 0x229   :  { %v3325_v31 = vpop.eup %3324  ;;  %1077 = vmatpush.bf16.msrb.mxu0 %v945_v28 }
 0x22a   :  { %v3327_v33 = vpop.eup %3326  ;;  %v946_v36 = vpack.c.bf16 %v3325_v31, %v3323_v29  ;;  %v831_v37 = vpop.f32.mrf.mxu2 }
 0x22b   :  { %v3329_v38 = vpop.eup %3328  ;;  %v832_v40 = vadd.f32 %v831_v37, %v4155_v35 }
 0x22c   :  { %1096 = vmatpush.bf16.msrb.mxu1 %v946_v36  ;;  %v850_v44 = vpop.f32.mrf.mxu3  ;;  %v938_v22 = vpack.c.bf16 %v3329_v38, %v3327_v33  ;;  %v3331_v25 = vpop.eup %3330 }
 0x22d   :  { %v867_v46 = vpack.c.bf16 %v832_v40, %v830_v34  ;;  %v851_v47 = vadd.f32 %v850_v44, %v4155_v35  ;;  %1078 = vmatpush.bf16.msrb.mxu0 %v937_v41  ;;  %v3333_v35 = vpop.eup %3332 }
 0x22e   :  { %v939_v5 = vpack.c.bf16 %v3333_v35, %v3331_v25 }
 0x22f   :  { %v891_v42 = vunpack.c.l.bf16 %v867_v46  ;;  %v899_v16 = vunpack.c.h.bf16 %v867_v46  ;;  %v868_v49 = vpack.c.bf16 %v851_v47, %v849_v58 }
 0x230   :  { %1097 = vmatpush.bf16.msrb.mxu1 %v938_v22  ;;  %2955 = vmatmul.msk.bf16.vlgmr.msrb.gmra.mxu0 %vm400_vm2, %v4173_v20 }
 0x231   :  { %3334 = vtanh.f32 %v891_v42  ;;  %v892_v50 = vunpack.c.l.bf16 %v868_v49  ;;  %v900_v52 = vunpack.c.h.bf16 %v868_v49 }
 0x232   :  { %3336 = vtanh.f32 %v899_v16 }
 0x233   :  { %3338 = vtanh.f32 %v892_v50  ;;  %2957 = vmatmul.msk.bf16.vlgmr.msrb.gmra.mxu1 %vm400_vm2, %v4173_v20  ;;  %2952 = vmatmul.msk.bf16.gmra.mxu2 %vm400_vm2, %v4199_v7 }
 0x234   :  { %3340 = vtanh.f32 %v900_v52 }
 0x235   :  { %3342 = vtanh.f32 %v876_v51  ;;  %2954 = vmatmul.msk.bf16.gmra.mxu3 %vm400_vm2, %v4199_v7 }
 0x236   :  { %3344 = vtanh.f32 %v884_v54 }
 0x237   :  { %v3335_v57 = vpop.eup %3334 }
 0x238   :  { %v3337_v55 = vpop.eup %3336 }
 0x239   :  { %v3339_v61 = vpop.eup %3338  ;;  %v947_v0 = vpack.c.bf16 %v3337_v55, %v3335_v57  ;;  %v4261_v55 = vld [vmem:[%s4719_s3 + $0x30] sm:$0xff] }
 0x23a   :  { %v3341_v1 = vpop.eup %3340 }
 0x23b   :  { %v3343_v59 = vpop.eup %3342  ;;  %1115 = vmatpush.bf16.msrb.mxu2 %v947_v0  ;;  %v948_v2 = vpack.c.bf16 %v3341_v1, %v3339_v61 }
 0x23c   :  { %v3345_v4 = vpop.eup %3344 }
 0x23d   :  { %1134 = vmatpush.bf16.msrb.mxu3 %v948_v2  ;;  %v940_v6 = vpack.c.bf16 %v3345_v4, %v3343_v59 }
 0x23f   :  { %1116 = vmatpush.bf16.msrb.mxu2 %v939_v5 }
 0x240   :  { %2956 = vmatmul.msk.bf16.gmra.mxu0 %vm400_vm2, %v4199_v7 }
 0x241   :  { %1135 = vmatpush.bf16.msrb.mxu3 %v940_v6 }
 0x243   :  { %2958 = vmatmul.msk.bf16.gmra.mxu1 %vm400_vm2, %v4199_v7  ;;  %2959 = vmatmul.msk.bf16.vlgmr.msrb.gmra.mxu2 %vm400_vm2, %v4173_v20 }
 0x245   :  { %2961 = vmatmul.msk.bf16.vlgmr.msrb.gmra.mxu3 %vm400_vm2, %v4173_v20 }
 0x253   :  { %2960 = vmatmul.msk.bf16.gmra.mxu2 %vm400_vm2, %v4199_v7 }
 0x255   :  { %2962 = vmatmul.msk.bf16.gmra.mxu3 %vm400_vm2, %v4199_v7 }
 0x28d   :  { %v1004_v63 = vpop.f32.mrf.mxu0 }
 0x28e   :  { %v1005_v11 = vadd.f32 %v1004_v63, %v4244_v10 }
 0x290   :  { %v1023_v8 = vpop.f32.mrf.mxu1 }
 0x291   :  { %v1024_v15 = vadd.f32 %v1023_v8, %v4244_v10 }
 0x295   :  { %v1006_v56 = vpop.f32.mrf.mxu0 }
 0x296   :  { %v1007_v60 = vadd.f32 %v1006_v56, %v4241_v9 }
 0x298   :  { %v1025_v3 = vpop.f32.mrf.mxu1  ;;  %v1147_v12 = vpack.c.bf16 %v1007_v60, %v1005_v11 }
 0x299   :  { %v1026_v7 = vadd.f32 %v1025_v3, %v4241_v9 }
 0x29a   :  { %v1163_v19 = vunpack.c.l.bf16 %v1147_v12  ;;  %v1171_v28 = vunpack.c.h.bf16 %v1147_v12 }
 0x29b   :  { %v1148_v24 = vpack.c.bf16 %v1026_v7, %v1024_v15 }
 0x29c   :  { %3346 = vtanh.f32 %v1163_v19 }
 0x29d   :  { %v1009_v48 = vpop.f32.mrf.mxu0  ;;  %v1164_v30 = vunpack.c.l.bf16 %v1148_v24  ;;  %v1172_v39 = vunpack.c.h.bf16 %v1148_v24 }
 0x29e   :  { %v1010_v14 = vadd.f32 %v1009_v48, %v4239_v53 }
 0x2a0   :  { %v1028_v20 = vpop.f32.mrf.mxu1 }
 0x2a1   :  { %v1029_v26 = vadd.f32 %v1028_v20, %v4239_v53 }
 0x2a2   :  { %v3347_v41 = vpop.eup %3346 }
 0x2a5   :  { %v1011_v62 = vpop.f32.mrf.mxu0 }
 0x2a6   :  { %v1012_v17 = vadd.f32 %v1011_v62, %v4247_v13  ;;  %v1042_v21 = vpop.f32.mrf.mxu2 }
 0x2a7   :  { %v1043_v35 = vadd.f32 %v1042_v21, %v4244_v10 }
 0x2a8   :  { %v1155_v18 = vpack.c.bf16 %v1012_v17, %v1010_v14  ;;  %v1030_v23 = vpop.f32.mrf.mxu1  ;;  %v1061_v32 = vpop.f32.mrf.mxu3 }
 0x2a9   :  { %v1031_v27 = vadd.f32 %v1030_v23, %v4247_v13  ;;  %v1062_v0 = vadd.f32 %v1061_v32, %v4244_v10 }
 0x2aa   :  { %v1179_v29 = vunpack.c.l.bf16 %v1155_v18  ;;  %v1187_v31 = vunpack.c.h.bf16 %v1155_v18 }
 0x2ab   :  { %v1156_v33 = vpack.c.bf16 %v1031_v27, %v1029_v26 }
 0x2ac   :  { %3348 = vtanh.f32 %v1179_v29 }
 0x2ad   :  { %3350 = vtanh.f32 %v1187_v31  ;;  %v1180_v36 = vunpack.c.l.bf16 %v1156_v33  ;;  %v1188_v37 = vunpack.c.h.bf16 %v1156_v33  ;;  %v1080_v38 = vpop.f32.mrf.mxu0 }
 0x2ae   :  { %3352 = vtanh.f32 %v1171_v28  ;;  %v1044_v34 = vpop.f32.mrf.mxu2  ;;  %v1081_v20 = vadd.f32 %v1080_v38, %v4244_v10 }
 0x2af   :  { %3354 = vtanh.f32 %v1180_v36  ;;  %v1045_v49 = vadd.f32 %v1044_v34, %v4241_v9  ;;  %v4285_v34 = vld [vmem:[%s4719_s3 + $0x38] sm:$0xff] }
 0x2b0   :  { %3356 = vtanh.f32 %v1188_v37  ;;  %v1099_v40 = vpop.f32.mrf.mxu1  ;;  %v1063_v44 = vpop.f32.mrf.mxu3 }
 0x2b1   :  { %3358 = vtanh.f32 %v1164_v30  ;;  %v1064_v57 = vadd.f32 %v1063_v44, %v4241_v9  ;;  %v1149_v1 = vpack.c.bf16 %v1045_v49, %v1043_v35  ;;  %v1100_v24 = vadd.f32 %v1099_v40, %v4244_v10 }
 0x2b2   :  { %v3349_v43 = vpop.eup %3348  ;;  %3360 = vtanh.f32 %v1172_v39 }
 0x2b3   :  { %v3351_v45 = vpop.eup %3350  ;;  %v1150_v2 = vpack.c.bf16 %v1064_v57, %v1062_v0  ;;  %v1165_v5 = vunpack.c.l.bf16 %v1149_v1  ;;  %v1173_v8 = vunpack.c.h.bf16 %v1149_v1 }
 0x2b4   :  { %v3353_v58 = vpop.eup %3352  ;;  %v1235_v46 = vpack.c.bf16 %v3351_v45, %v3349_v43 }
 0x2b5   :  { %v3355_v47 = vpop.eup %3354  ;;  %v1082_v22 = vpop.f32.mrf.mxu0  ;;  %v1227_v25 = vpack.c.bf16 %v3353_v58, %v3347_v41  ;;  %v1166_v60 = vunpack.c.l.bf16 %v1150_v2  ;;  %3362 = vtanh.f32 %v1165_v5  ;;  %v1174_v17 = vunpack.c.h.bf16 %v1150_v2 }
 0x2b6   :  { %v3357_v42 = vpop.eup %3356  ;;  %1295 = vmatpush.bf16.msra.mxu0 %v1235_v46  ;;  %v1047_v51 = vpop.f32.mrf.mxu2  ;;  %v1083_v6 = vadd.f32 %v1082_v22, %v4241_v9  ;;  %3364 = vtanh.f32 %v1173_v8 }
 0x2b7   :  { %v3359_v16 = vpop.eup %3358  ;;  %v1236_v50 = vpack.c.bf16 %v3357_v42, %v3355_v47  ;;  %v1048_v56 = vadd.f32 %v1047_v51, %v4239_v53  ;;  %3366 = vtanh.f32 %v1166_v60 }
 0x2b8   :  { %v3361_v52 = vpop.eup %3360  ;;  %v1101_v54 = vpop.f32.mrf.mxu1  ;;  %v1151_v62 = vpack.c.bf16 %v1083_v6, %v1081_v20 }
 0x2b9   :  { %1314 = vmatpush.bf16.msra.mxu1 %v1236_v50  ;;  %v1066_v61 = vpop.f32.mrf.mxu3  ;;  %v1228_v59 = vpack.c.bf16 %v3361_v52, %v3359_v16  ;;  %v1102_v21 = vadd.f32 %v1101_v54, %v4241_v9 }
 0x2ba   :  { %1296 = vmatpush.bf16.msra.mxu0 %v1227_v25  ;;  %v1067_v7 = vadd.f32 %v1066_v61, %v4239_v53  ;;  %v1167_v28 = vunpack.c.l.bf16 %v1151_v62  ;;  %v1175_v41 = vunpack.c.h.bf16 %v1151_v62 }
 0x2bb   :  { %v3363_v36 = vpop.eup %3362  ;;  %v1152_v37 = vpack.c.bf16 %v1102_v21, %v1100_v24 }
 0x2bc   :  { %v3365_v40 = vpop.eup %3364 }
 0x2bd   :  { %1315 = vmatpush.bf16.msra.mxu1 %v1228_v59  ;;  %2979 = vmatmul.msk.bf16.vlgmr.msra.gmra.mxu0 %vm400_vm2, %v4261_v55  ;;  %v1085_v4 = vpop.f32.mrf.mxu0  ;;  %v3367_v58 = vpop.eup %3366  ;;  %v1168_v42 = vunpack.c.l.bf16 %v1152_v37  ;;  %v1176_v50 = vunpack.c.h.bf16 %v1152_v37  ;;  %v1229_v59 = vpack.c.bf16 %v3365_v40, %v3363_v36 }
 0x2be   :  { %v1049_v63 = vpop.f32.mrf.mxu2  ;;  %v1086_v26 = vadd.f32 %v1085_v4, %v4239_v53 }
 0x2bf   :  { %v1050_v3 = vadd.f32 %v1049_v63, %v4247_v13 }
 0x2c0   :  { %2981 = vmatmul.msk.bf16.vlgmr.msra.gmra.mxu1 %vm400_vm2, %v4261_v55  ;;  %v1104_v48 = vpop.f32.mrf.mxu1 }
 0x2c1   :  { %v1157_v11 = vpack.c.bf16 %v1050_v3, %v1048_v56  ;;  %v1068_v12 = vpop.f32.mrf.mxu3  ;;  %v1105_v38 = vadd.f32 %v1104_v48, %v4239_v53 }
 0x2c2   :  { %v1069_v14 = vadd.f32 %v1068_v12, %v4247_v13 }
 0x2c3   :  { %v1181_v15 = vunpack.c.l.bf16 %v1157_v11  ;;  %v1189_v19 = vunpack.c.h.bf16 %v1157_v11 }
 0x2c4   :  { %v1158_v18 = vpack.c.bf16 %v1069_v14, %v1067_v7 }
 0x2c5   :  { %v1087_v23 = vpop.f32.mrf.mxu0  ;;  %3368 = vtanh.f32 %v1181_v15 }
 0x2c6   :  { %v1088_v27 = vadd.f32 %v1087_v23, %v4247_v13  ;;  %3370 = vtanh.f32 %v1189_v19  ;;  %v1182_v29 = vunpack.c.l.bf16 %v1158_v18  ;;  %v1190_v31 = vunpack.c.h.bf16 %v1158_v18  ;;  %v4278_v32 = vpop.f32.mrf.mxu2 }
 0x2c7   :  { %3372 = vtanh.f32 %v1174_v17  ;;  %v1119_v7 = vadd.f32 %v4278_v32, %v4244_v10 }
 0x2c8   :  { %v1159_v33 = vpack.c.bf16 %v1088_v27, %v1086_v26  ;;  %v1106_v30 = vpop.f32.mrf.mxu1  ;;  %3374 = vtanh.f32 %v1182_v29 }
 0x2c9   :  { %v1107_v39 = vadd.f32 %v1106_v30, %v4247_v13  ;;  %3376 = vtanh.f32 %v1190_v31  ;;  %v1137_v45 = vpop.f32.mrf.mxu3 }
 0x2ca   :  { %v1183_v43 = vunpack.c.l.bf16 %v1159_v33  ;;  %v1191_v44 = vunpack.c.h.bf16 %v1159_v33  ;;  %3378 = vtanh.f32 %v1167_v28  ;;  %v1138_v18 = vadd.f32 %v1137_v45, %v4244_v10 }
 0x2cb   :  { %v1160_v46 = vpack.c.bf16 %v1107_v39, %v1105_v38  ;;  %v3369_v47 = vpop.eup %3368 }
 0x2cc   :  { %3380 = vtanh.f32 %v1183_v43  ;;  %v3371_v22 = vpop.eup %3370 }
 0x2cd   :  { %3382 = vtanh.f32 %v1191_v44  ;;  %v1184_v16 = vunpack.c.l.bf16 %v1160_v46  ;;  %v1192_v49 = vunpack.c.h.bf16 %v1160_v46  ;;  %2980 = vmatmul.msk.bf16.gmra.mxu0 %vm400_vm2, %v4285_v34  ;;  %v3373_v51 = vpop.eup %3372  ;;  %v1237_v52 = vpack.c.bf16 %v3371_v22, %v3369_v47 }
 0x2ce   :  { %3384 = vtanh.f32 %v1175_v41  ;;  %v3375_v54 = vpop.eup %3374  ;;  %v1120_v25 = vpop.f32.mrf.mxu2  ;;  %v1230_v63 = vpack.c.bf16 %v3373_v51, %v3367_v58 }
 0x2cf   :  { %3386 = vtanh.f32 %v1184_v16  ;;  %v3377_v35 = vpop.eup %3376  ;;  %1333 = vmatpush.bf16.msra.mxu2 %v1237_v52  ;;  %v1121_v11 = vadd.f32 %v1120_v25, %v4241_v9  ;;  %v4324_v16 = vpop.permute.xlu1 %1265 }
 0x2d0   :  { %3388 = vtanh.f32 %v1192_v49  ;;  %2982 = vmatmul.msk.bf16.gmra.mxu1 %vm400_vm2, %v4285_v34  ;;  %v3379_v57 = vpop.eup %3378  ;;  %v1238_v61 = vpack.c.bf16 %v3377_v35, %v3375_v54  ;;  %v4329_v25 = vpop.permute.xlu0 %1255 }
 0x2d1   :  { %3390 = vtanh.f32 %v1168_v42  ;;  %v1139_v1 = vpop.f32.mrf.mxu3  ;;  %v1153_v14 = vpack.c.bf16 %v1121_v11, %v1119_v7 }
 0x2d2   :  { %v3381_v0 = vpop.eup %3380  ;;  %3392 = vtanh.f32 %v1176_v50  ;;  %1352 = vmatpush.bf16.msra.mxu3 %v1238_v61  ;;  %v1140_v17 = vadd.f32 %v1139_v1, %v4241_v9  ;;  %v4332_v61 = vpop.permute.xlu2 %1270 }
 0x2d3   :  { %v3383_v2 = vpop.eup %3382  ;;  %1334 = vmatpush.bf16.msra.mxu2 %v1229_v59  ;;  %v1169_v23 = vunpack.c.l.bf16 %v1153_v14  ;;  %v1177_v31 = vunpack.c.h.bf16 %v1153_v14 }
 0x2d4   :  { %v3385_v4 = vpop.eup %3384  ;;  %v1239_v5 = vpack.c.bf16 %v3383_v2, %v3381_v0  ;;  %v1154_v27 = vpack.c.bf16 %v1140_v17, %v1138_v18 }
 0x2d5   :  { %v3387_v6 = vpop.eup %3386  ;;  %v1231_v20 = vpack.c.bf16 %v3385_v4, %v3379_v57  ;;  %3394 = vtanh.f32 %v1169_v23 }
 0x2d6   :  { %v3389_v8 = vpop.eup %3388  ;;  %1371 = vmatpush.bf16.msrb.mxu0 %v1239_v5  ;;  %1353 = vmatpush.bf16.msra.mxu3 %v1230_v63  ;;  %v1123_v3 = vpop.f32.mrf.mxu2  ;;  %v1170_v30 = vunpack.c.l.bf16 %v1154_v27  ;;  %v1178_v10 = vunpack.c.h.bf16 %v1154_v27 }
 0x2d7   :  { %v3391_v56 = vpop.eup %3390  ;;  %2983 = vmatmul.msk.bf16.vlgmr.msra.gmra.mxu2 %vm400_vm2, %v4261_v55  ;;  %v1240_v48 = vpack.c.bf16 %v3389_v8, %v3387_v6  ;;  %v1124_v19 = vadd.f32 %v1123_v3, %v4239_v53  ;;  %v4326_v52 = vpop.permute.xlu1 %1260 }
 0x2d8   :  { %v3393_v60 = vpop.eup %3392 }
 0x2d9   :  { %1390 = vmatpush.bf16.msrb.mxu1 %v1240_v48  ;;  %2985 = vmatmul.msk.bf16.vlgmr.msra.gmra.mxu3 %vm400_vm2, %v4261_v55  ;;  %v1142_v12 = vpop.f32.mrf.mxu3  ;;  %v1232_v62 = vpack.c.bf16 %v3393_v60, %v3391_v56 }
 0x2da   :  { %1372 = vmatpush.bf16.msrb.mxu0 %v1231_v20  ;;  %v1143_v28 = vadd.f32 %v1142_v12, %v4239_v53 }
 0x2db   :  { %v3395_v53 = vpop.eup %3394 }
 0x2dd   :  { %1391 = vmatpush.bf16.msrb.mxu1 %v1232_v62  ;;  %2987 = vmatmul.msk.bf16.vlgmr.msrb.gmra.mxu0 %vm400_vm2, %v4261_v55 }
 0x2de   :  { %v1125_v15 = vpop.f32.mrf.mxu2 }
 0x2df   :  { %v1126_v21 = vadd.f32 %v1125_v15, %v4247_v13 }
 0x2e0   :  { %2989 = vmatmul.msk.bf16.vlgmr.msrb.gmra.mxu1 %vm400_vm2, %v4261_v55 }
 0x2e1   :  { %v1161_v24 = vpack.c.bf16 %v1126_v21, %v1124_v19  ;;  %v1144_v26 = vpop.f32.mrf.mxu3 }
 0x2e2   :  { %v1145_v29 = vadd.f32 %v1144_v26, %v4247_v13 }
 0x2e3   :  { %v1185_v9 = vunpack.c.l.bf16 %v1161_v24  ;;  %v1193_v32 = vunpack.c.h.bf16 %v1161_v24 }
 0x2e4   :  { %v1162_v33 = vpack.c.bf16 %v1145_v29, %v1143_v28 }
 0x2e5   :  { %3396 = vtanh.f32 %v1185_v9 }
 0x2e6   :  { %3398 = vtanh.f32 %v1193_v32  ;;  %v1186_v36 = vunpack.c.l.bf16 %v1162_v33  ;;  %v1194_v37 = vunpack.c.h.bf16 %v1162_v33 }
 0x2e7   :  { %2984 = vmatmul.msk.bf16.gmra.mxu2 %vm400_vm2, %v4285_v34  ;;  %3400 = vtanh.f32 %v1177_v31 }
 0x2e8   :  { %3402 = vtanh.f32 %v1186_v36 }
 0x2e9   :  { %3404 = vtanh.f32 %v1194_v37  ;;  %2986 = vmatmul.msk.bf16.gmra.mxu3 %vm400_vm2, %v4285_v34 }
 0x2ea   :  { %3406 = vtanh.f32 %v1170_v30 }
 0x2eb   :  { %v3397_v13 = vpop.eup %3396  ;;  %3408 = vtanh.f32 %v1178_v10 }
 0x2ec   :  { %v3399_v38 = vpop.eup %3398 }
 0x2ed   :  { %2988 = vmatmul.msk.bf16.gmra.mxu0 %vm400_vm2, %v4285_v34  ;;  %v3401_v39 = vpop.eup %3400  ;;  %v1241_v40 = vpack.c.bf16 %v3399_v38, %v3397_v13 }
 0x2ee   :  { %v3403_v41 = vpop.eup %3402  ;;  %v1233_v46 = vpack.c.bf16 %v3401_v39, %v3395_v53  ;;  %v4344_v53 = vld [vmem:[%s4719_s3 + $0x40] sm:$0xff] }
 0x2ef   :  { %v3405_v43 = vpop.eup %3404  ;;  %1409 = vmatpush.bf16.msrb.mxu2 %v1241_v40 }
 0x2f0   :  { %2990 = vmatmul.msk.bf16.gmra.mxu1 %vm400_vm2, %v4285_v34  ;;  %v3407_v44 = vpop.eup %3406  ;;  %v1242_v45 = vpack.c.bf16 %v3405_v43, %v3403_v41 }
 0x2f1   :  { %v3409_v58 = vpop.eup %3408 }
 0x2f2   :  { %1428 = vmatpush.bf16.msrb.mxu3 %v1242_v45  ;;  %v1234_v47 = vpack.c.bf16 %v3409_v58, %v3407_v44 }
 0x2f3   :  { %1410 = vmatpush.bf16.msrb.mxu2 %v1233_v46 }
 0x2f6   :  { %1429 = vmatpush.bf16.msrb.mxu3 %v1234_v47 }
 0x2f7   :  { %2991 = vmatmul.msk.bf16.vlgmr.msrb.gmra.mxu2 %vm400_vm2, %v4261_v55 }
 0x2f9   :  { %2993 = vmatmul.msk.bf16.vlgmr.msrb.gmra.mxu3 %vm400_vm2, %v4261_v55 }
 0x307   :  { %2992 = vmatmul.msk.bf16.gmra.mxu2 %vm400_vm2, %v4285_v34 }
 0x309   :  { %2994 = vmatmul.msk.bf16.gmra.mxu3 %vm400_vm2, %v4285_v34 }
 0x33a   :  { %v1298_v22 = vpop.f32.mrf.mxu0 }
 0x33b   :  { %v1299_v35 = vadd.f32 %v1298_v22, %v4329_v25 }
 0x33d   :  { %v1317_v42 = vpop.f32.mrf.mxu1 }
 0x33e   :  { %v1318_v2 = vadd.f32 %v1317_v42, %v4329_v25 }
 0x342   :  { %v1300_v49 = vpop.f32.mrf.mxu0 }
 0x343   :  { %v1301_v54 = vadd.f32 %v1300_v49, %v4326_v52 }
 0x345   :  { %v1319_v51 = vpop.f32.mrf.mxu1  ;;  %v1441_v57 = vpack.c.bf16 %v1301_v54, %v1299_v35 }
 0x346   :  { %v1320_v34 = vadd.f32 %v1319_v51, %v4326_v52 }
 0x347   :  { %v1457_v4 = vunpack.c.l.bf16 %v1441_v57  ;;  %v1465_v3 = vunpack.c.h.bf16 %v1441_v57 }
 0x348   :  { %v1442_v63 = vpack.c.bf16 %v1320_v34, %v1318_v2 }
 0x349   :  { %3410 = vtanh.f32 %v1457_v4 }
 0x34a   :  { %v1303_v50 = vpop.f32.mrf.mxu0  ;;  %v1458_v11 = vunpack.c.l.bf16 %v1442_v63  ;;  %v1466_v17 = vunpack.c.h.bf16 %v1442_v63 }
 0x34b   :  { %v1304_v1 = vadd.f32 %v1303_v50, %v4324_v16 }
 0x34d   :  { %v1322_v55 = vpop.f32.mrf.mxu1 }
 0x34e   :  { %v1323_v8 = vadd.f32 %v1322_v55, %v4324_v16 }
 0x34f   :  { %v3411_v21 = vpop.eup %3410 }
 0x352   :  { %v1305_v0 = vpop.f32.mrf.mxu0 }
 0x353   :  { %v1306_v59 = vadd.f32 %v1305_v0, %v4332_v61 }
 0x355   :  { %v1449_v5 = vpack.c.bf16 %v1306_v59, %v1304_v1  ;;  %v1324_v6 = vpop.f32.mrf.mxu1 }
 0x356   :  { %v1325_v56 = vadd.f32 %v1324_v6, %v4332_v61 }
 0x357   :  { %v1473_v48 = vunpack.c.l.bf16 %v1449_v5  ;;  %v1481_v60 = vunpack.c.h.bf16 %v1449_v5 }
 0x358   :  { %v1450_v20 = vpack.c.bf16 %v1325_v56, %v1323_v8 }
 0x359   :  { %3412 = vtanh.f32 %v1473_v48 }
 0x35a   :  { %3414 = vtanh.f32 %v1481_v60  ;;  %v1474_v12 = vunpack.c.l.bf16 %v1450_v20  ;;  %v1482_v7 = vunpack.c.h.bf16 %v1450_v20  ;;  %v1336_v62 = vpop.f32.mrf.mxu2  ;;  %v1374_v14 = vpop.f32.mrf.mxu0 }
 0x35b   :  { %3416 = vtanh.f32 %v1465_v3  ;;  %v1337_v13 = vadd.f32 %v1336_v62, %v4329_v25  ;;  %v1375_v43 = vadd.f32 %v1374_v14, %v4329_v25 }
 0x35c   :  { %3418 = vtanh.f32 %v1474_v12  ;;  %v1355_v15 = vpop.f32.mrf.mxu3 }
 0x35d   :  { %3420 = vtanh.f32 %v1482_v7  ;;  %v1393_v19 = vpop.f32.mrf.mxu1  ;;  %v1356_v58 = vadd.f32 %v1355_v15, %v4329_v25 }
 0x35e   :  { %3422 = vtanh.f32 %v1458_v11  ;;  %v1394_v2 = vadd.f32 %v1393_v19, %v4329_v25  ;;  %v4368_v11 = vld [vmem:[%s4719_s3 + $0x48] sm:$0xff] }
 0x35f   :  { %v3413_v18 = vpop.eup %3412  ;;  %3424 = vtanh.f32 %v1466_v17 }
 0x360   :  { %v3415_v23 = vpop.eup %3414 }
 0x361   :  { %v3417_v24 = vpop.eup %3416  ;;  %v1529_v26 = vpack.c.bf16 %v3415_v23, %v3413_v18 }
 0x362   :  { %v3419_v27 = vpop.eup %3418  ;;  %v1338_v28 = vpop.f32.mrf.mxu2  ;;  %v1521_v10 = vpack.c.bf16 %v3417_v24, %v3411_v21 }
 0x363   :  { %v1376_v29 = vpop.f32.mrf.mxu0  ;;  %v3421_v31 = vpop.eup %3420  ;;  %1589 = vmatpush.bf16.msra.mxu0 %v1529_v26  ;;  %v1339_v30 = vadd.f32 %v1338_v28, %v4326_v52 }
 0x364   :  { %v3423_v9 = vpop.eup %3422  ;;  %v1530_v32 = vpack.c.bf16 %v3421_v31, %v3419_v27  ;;  %v1357_v36 = vpop.f32.mrf.mxu3  ;;  %v1377_v38 = vadd.f32 %v1376_v29, %v4326_v52 }
 0x365   :  { %v3425_v33 = vpop.eup %3424  ;;  %v1395_v37 = vpop.f32.mrf.mxu1  ;;  %v1443_v40 = vpack.c.bf16 %v1339_v30, %v1337_v13  ;;  %v1358_v41 = vadd.f32 %v1357_v36, %v4326_v52 }
 0x366   :  { %1608 = vmatpush.bf16.msra.mxu1 %v1530_v32  ;;  %v1522_v39 = vpack.c.bf16 %v3425_v33, %v3423_v9  ;;  %v1445_v46 = vpack.c.bf16 %v1377_v38, %v1375_v43  ;;  %v1396_v5 = vadd.f32 %v1395_v37, %v4326_v52 }
 0x367   :  { %1590 = vmatpush.bf16.msra.mxu0 %v1521_v10  ;;  %v1459_v47 = vunpack.c.l.bf16 %v1443_v40  ;;  %v1444_v22 = vpack.c.bf16 %v1358_v41, %v1356_v58  ;;  %v1467_v51 = vunpack.c.h.bf16 %v1443_v40 }
 0x368   :  { %v1461_v50 = vunpack.c.l.bf16 %v1445_v46  ;;  %v1469_v4 = vunpack.c.h.bf16 %v1445_v46  ;;  %v1446_v21 = vpack.c.bf16 %v1396_v5, %v1394_v2 }
 0x369   :  { %3426 = vtanh.f32 %v1459_v47  ;;  %v1460_v54 = vunpack.c.l.bf16 %v1444_v22  ;;  %v1468_v55 = vunpack.c.h.bf16 %v1444_v22 }
 0x36a   :  { %1609 = vmatpush.bf16.msra.mxu1 %v1522_v39  ;;  %v1341_v44 = vpop.f32.mrf.mxu2  ;;  %3011 = vmatmul.msk.bf16.vlgmr.msra.gmra.mxu0 %vm400_vm2, %v4344_v53  ;;  %3428 = vtanh.f32 %v1467_v51  ;;  %v1462_v32 = vunpack.c.l.bf16 %v1446_v21  ;;  %v1470_v36 = vunpack.c.h.bf16 %v1446_v21 }
 0x36b   :  { %v1379_v45 = vpop.f32.mrf.mxu0  ;;  %v1342_v34 = vadd.f32 %v1341_v44, %v4324_v16  ;;  %3430 = vtanh.f32 %v1461_v50 }
 0x36c   :  { %v1360_v42 = vpop.f32.mrf.mxu3  ;;  %v1380_v0 = vadd.f32 %v1379_v45, %v4324_v16  ;;  %3432 = vtanh.f32 %v1460_v54 }
 0x36d   :  { %3013 = vmatmul.msk.bf16.vlgmr.msra.gmra.mxu1 %vm400_vm2, %v4344_v53  ;;  %v1398_v49 = vpop.f32.mrf.mxu1  ;;  %v1361_v3 = vadd.f32 %v1360_v42, %v4324_v16  ;;  %3434 = vtanh.f32 %v1468_v55 }
 0x36e   :  { %v1399_v48 = vadd.f32 %v1398_v49, %v4324_v16  ;;  %3436 = vtanh.f32 %v1469_v4 }
 0x36f   :  { %v3427_v12 = vpop.eup %3426 }
 0x370   :  { %v3429_v17 = vpop.eup %3428 }
 0x371   :  { %v3431_v18 = vpop.eup %3430  ;;  %v1523_v47 = vpack.c.bf16 %v3429_v17, %v3427_v12 }
 0x372   :  { %v1343_v35 = vpop.f32.mrf.mxu2  ;;  %v3433_v28 = vpop.eup %3432 }
 0x373   :  { %v1381_v57 = vpop.f32.mrf.mxu0  ;;  %v1344_v1 = vadd.f32 %v1343_v35, %v4332_v61  ;;  %v3435_v9 = vpop.eup %3434 }
 0x374   :  { %v1382_v59 = vadd.f32 %v1381_v57, %v4332_v61  ;;  %v1362_v63 = vpop.f32.mrf.mxu3  ;;  %v3437_v30 = vpop.eup %3436  ;;  %v1524_v50 = vpack.c.bf16 %v3435_v9, %v3433_v28 }
 0x375   :  { %v1451_v6 = vpack.c.bf16 %v1344_v1, %v1342_v34  ;;  %v1400_v56 = vpop.f32.mrf.mxu1  ;;  %v1363_v60 = vadd.f32 %v1362_v63, %v4332_v61  ;;  %v1525_v54 = vpack.c.bf16 %v3437_v30, %v3431_v18 }
 0x376   :  { %v1453_v8 = vpack.c.bf16 %v1382_v59, %v1380_v0  ;;  %v1401_v20 = vadd.f32 %v1400_v56, %v4332_v61 }
 0x377   :  { %v1475_v7 = vunpack.c.l.bf16 %v1451_v6  ;;  %v1483_v62 = vunpack.c.h.bf16 %v1451_v6  ;;  %v1452_v15 = vpack.c.bf16 %v1363_v60, %v1361_v3 }
 0x378   :  { %v1477_v14 = vunpack.c.l.bf16 %v1453_v8  ;;  %v1454_v19 = vpack.c.bf16 %v1401_v20, %v1399_v48  ;;  %v1485_v26 = vunpack.c.h.bf16 %v1453_v8 }
 0x379   :  { %3438 = vtanh.f32 %v1475_v7  ;;  %v1476_v23 = vunpack.c.l.bf16 %v1452_v15  ;;  %v1484_v24 = vunpack.c.h.bf16 %v1452_v15 }
 0x37a   :  { %3440 = vtanh.f32 %v1483_v62  ;;  %v1412_v27 = vpop.f32.mrf.mxu2  ;;  %3012 = vmatmul.msk.bf16.gmra.mxu0 %vm400_vm2, %v4368_v11  ;;  %v1478_v29 = vunpack.c.l.bf16 %v1454_v19  ;;  %v1486_v31 = vunpack.c.h.bf16 %v1454_v19 }
 0x37b   :  { %3442 = vtanh.f32 %v1477_v14  ;;  %v1413_v0 = vadd.f32 %v1412_v27, %v4329_v25 }
 0x37c   :  { %3444 = vtanh.f32 %v1476_v23  ;;  %v1431_v33 = vpop.f32.mrf.mxu3 }
 0x37d   :  { %3446 = vtanh.f32 %v1484_v24  ;;  %3014 = vmatmul.msk.bf16.gmra.mxu1 %vm400_vm2, %v4368_v11  ;;  %v1432_v6 = vadd.f32 %v1431_v33, %v4329_v25 }
 0x37e   :  { %3448 = vtanh.f32 %v1485_v26 }
 0x37f   :  { %v3439_v37 = vpop.eup %3438  ;;  %3450 = vtanh.f32 %v1478_v29 }
 0x380   :  { %v3441_v10 = vpop.eup %3440  ;;  %3452 = vtanh.f32 %v1486_v31 }
 0x381   :  { %v3443_v13 = vpop.eup %3442  ;;  %3454 = vtanh.f32 %v1462_v32  ;;  %v1531_v38 = vpack.c.bf16 %v3441_v10, %v3439_v37  ;;  %v4406_v32 = vpop.permute.xlu2 %1559 }
 0x382   :  { %v3445_v39 = vpop.eup %3444  ;;  %3456 = vtanh.f32 %v1470_v36  ;;  %v1414_v40 = vpop.f32.mrf.mxu2 }
 0x383   :  { %v3447_v41 = vpop.eup %3446  ;;  %1627 = vmatpush.bf16.msra.mxu2 %v1531_v38  ;;  %v1415_v57 = vadd.f32 %v1414_v40, %v4326_v52  ;;  %v4414_v40 = vpop.permute.xlu0 %1564 }
 0x384   :  { %v3449_v43 = vpop.eup %3448  ;;  %v1532_v44 = vpack.c.bf16 %v3447_v41, %v3445_v39  ;;  %v1433_v58 = vpop.f32.mrf.mxu3 }
 0x385   :  { %v3451_v45 = vpop.eup %3450  ;;  %v1533_v46 = vpack.c.bf16 %v3449_v43, %v3443_v13  ;;  %v1447_v1 = vpack.c.bf16 %v1415_v57, %v1413_v0  ;;  %v1434_v59 = vadd.f32 %v1433_v58, %v4326_v52  ;;  %v4411_v13 = vpop.permute.xlu1 %1549 }
 0x386   :  { %v3453_v22 = vpop.eup %3452  ;;  %1646 = vmatpush.bf16.msra.mxu3 %v1532_v44 }
 0x387   :  { %v3455_v42 = vpop.eup %3454  ;;  %1665 = vmatpush.bf16.msrb.mxu0 %v1533_v46  ;;  %v1534_v49 = vpack.c.bf16 %v3453_v22, %v3451_v45  ;;  %1628 = vmatpush.bf16.msra.mxu2 %v1523_v47  ;;  %v1463_v63 = vunpack.c.l.bf16 %v1447_v1  ;;  %v1448_v3 = vpack.c.bf16 %v1434_v59, %v1432_v6  ;;  %v1471_v20 = vunpack.c.h.bf16 %v1447_v1 }
 0x388   :  { %v3457_v51 = vpop.eup %3456 }
 0x389   :  { %1684 = vmatpush.bf16.msrb.mxu1 %v1534_v49  ;;  %v1526_v35 = vpack.c.bf16 %v3457_v51, %v3455_v42  ;;  %3458 = vtanh.f32 %v1463_v63  ;;  %v1464_v62 = vunpack.c.l.bf16 %v1448_v3  ;;  %v1472_v25 = vunpack.c.h.bf16 %v1448_v3  ;;  %v4408_v37 = vpop.permute.xlu2 %1554 }
 0x38a   :  { %1647 = vmatpush.bf16.msra.mxu3 %v1524_v50  ;;  %3015 = vmatmul.msk.bf16.vlgmr.msra.gmra.mxu2 %vm400_vm2, %v4344_v53  ;;  %v1417_v55 = vpop.f32.mrf.mxu2 }
 0x38b   :  { %1666 = vmatpush.bf16.msrb.mxu0 %v1525_v54  ;;  %v1418_v4 = vadd.f32 %v1417_v55, %v4324_v16 }
 0x38c   :  { %v1436_v34 = vpop.f32.mrf.mxu3 }
 0x38d   :  { %1685 = vmatpush.bf16.msrb.mxu1 %v1526_v35  ;;  %3017 = vmatmul.msk.bf16.vlgmr.msra.gmra.mxu3 %vm400_vm2, %v4344_v53  ;;  %v1437_v48 = vadd.f32 %v1436_v34, %v4324_v16 }
 0x38e   :  { %3019 = vmatmul.msk.bf16.vlgmr.msrb.gmra.mxu0 %vm400_vm2, %v4344_v53 }
 0x38f   :  { %v3459_v16 = vpop.eup %3458 }
 0x390   :  { %3021 = vmatmul.msk.bf16.vlgmr.msrb.gmra.mxu1 %vm400_vm2, %v4344_v53 }
 0x392   :  { %v1419_v2 = vpop.f32.mrf.mxu2 }
 0x393   :  { %v1420_v5 = vadd.f32 %v1419_v2, %v4332_v61 }
 0x394   :  { %v1438_v56 = vpop.f32.mrf.mxu3 }
 0x395   :  { %v1455_v8 = vpack.c.bf16 %v1420_v5, %v1418_v4  ;;  %v1439_v60 = vadd.f32 %v1438_v56, %v4332_v61 }
 0x397   :  { %v1479_v12 = vunpack.c.l.bf16 %v1455_v8  ;;  %v1487_v7 = vunpack.c.h.bf16 %v1455_v8  ;;  %v1456_v52 = vpack.c.bf16 %v1439_v60, %v1437_v48 }
 0x399   :  { %3460 = vtanh.f32 %v1479_v12  ;;  %v1480_v14 = vunpack.c.l.bf16 %v1456_v52  ;;  %v1488_v17 = vunpack.c.h.bf16 %v1456_v52 }
 0x39a   :  { %3462 = vtanh.f32 %v1487_v7  ;;  %3016 = vmatmul.msk.bf16.gmra.mxu2 %vm400_vm2, %v4368_v11 }
 0x39b   :  { %3464 = vtanh.f32 %v1471_v20 }
 0x39c   :  { %3466 = vtanh.f32 %v1480_v14 }
 0x39d   :  { %3468 = vtanh.f32 %v1488_v17  ;;  %3018 = vmatmul.msk.bf16.gmra.mxu3 %vm400_vm2, %v4368_v11 }
 0x39e   :  { %3470 = vtanh.f32 %v1464_v62  ;;  %3020 = vmatmul.msk.bf16.gmra.mxu0 %vm400_vm2, %v4368_v11  ;;  %v4425_v62 = vld [vmem:[%s4719_s3 + $0x50] sm:$0xff] }
 0x39f   :  { %v3461_v61 = vpop.eup %3460  ;;  %3472 = vtanh.f32 %v1472_v25 }
 0x3a0   :  { %v3463_v15 = vpop.eup %3462  ;;  %3022 = vmatmul.msk.bf16.gmra.mxu1 %vm400_vm2, %v4368_v11 }
 0x3a1   :  { %v3465_v19 = vpop.eup %3464  ;;  %v1535_v21 = vpack.c.bf16 %v3463_v15, %v3461_v61 }
 0x3a2   :  { %v3467_v18 = vpop.eup %3466  ;;  %v1527_v28 = vpack.c.bf16 %v3465_v19, %v3459_v16 }
 0x3a3   :  { %v3469_v23 = vpop.eup %3468  ;;  %1703 = vmatpush.bf16.msrb.mxu2 %v1535_v21 }
 0x3a4   :  { %v3471_v24 = vpop.eup %3470  ;;  %v1536_v26 = vpack.c.bf16 %v3469_v23, %v3467_v18 }
 0x3a5   :  { %v3473_v27 = vpop.eup %3472 }
 0x3a6   :  { %1722 = vmatpush.bf16.msrb.mxu3 %v1536_v26  ;;  %v1528_v29 = vpack.c.bf16 %v3473_v27, %v3471_v24 }
 0x3a7   :  { %1704 = vmatpush.bf16.msrb.mxu2 %v1527_v28 }
 0x3aa   :  { %1723 = vmatpush.bf16.msrb.mxu3 %v1528_v29  ;;  %3023 = vmatmul.msk.bf16.vlgmr.msrb.gmra.mxu2 %vm400_vm2, %v4344_v53 }
 0x3ad   :  { %3025 = vmatmul.msk.bf16.vlgmr.msrb.gmra.mxu3 %vm400_vm2, %v4344_v53 }
 0x3ba   :  { %3024 = vmatmul.msk.bf16.gmra.mxu2 %vm400_vm2, %v4368_v11 }
 0x3bd   :  { %3026 = vmatmul.msk.bf16.gmra.mxu3 %vm400_vm2, %v4368_v11 }
 0x3e7   :  { %v1592_v31 = vpop.f32.mrf.mxu0 }
 0x3e8   :  { %v1593_v38 = vadd.f32 %v1592_v31, %v4411_v13 }
 0x3ea   :  { %v1611_v9 = vpop.f32.mrf.mxu1 }
 0x3eb   :  { %v1612_v45 = vadd.f32 %v1611_v9, %v4411_v13 }
 0x3ef   :  { %v1594_v33 = vpop.f32.mrf.mxu0 }
 0x3f0   :  { %v1595_v10 = vadd.f32 %v1594_v33, %v4408_v37 }
 0x3f2   :  { %v1613_v30 = vpop.f32.mrf.mxu1  ;;  %v1735_v39 = vpack.c.bf16 %v1595_v10, %v1593_v38 }
 0x3f3   :  { %v1614_v11 = vadd.f32 %v1613_v30, %v4408_v37 }
 0x3f4   :  { %v1751_v58 = vunpack.c.l.bf16 %v1735_v39  ;;  %v1759_v51 = vunpack.c.h.bf16 %v1735_v39  ;;  %v4440_v39 = vld [vmem:[%s4719_s3 + $0x58] sm:$0xff] }
 0x3f5   :  { %v1736_v22 = vpack.c.bf16 %v1614_v11, %v1612_v45 }
 0x3f6   :  { %3474 = vtanh.f32 %v1751_v58 }
 0x3f7   :  { %v1597_v36 = vpop.f32.mrf.mxu0  ;;  %v1752_v35 = vunpack.c.l.bf16 %v1736_v22  ;;  %v1760_v0 = vunpack.c.h.bf16 %v1736_v22 }
 0x3f8   :  { %v1598_v43 = vadd.f32 %v1597_v36, %v4406_v32 }
 0x3fa   :  { %v1616_v53 = vpop.f32.mrf.mxu1 }
 0x3fb   :  { %v1617_v42 = vadd.f32 %v1616_v53, %v4406_v32 }
 0x3fc   :  { %v3475_v1 = vpop.eup %3474 }
 0x3ff   :  { %v1599_v41 = vpop.f32.mrf.mxu0 }
 0x400   :  { %v1600_v44 = vadd.f32 %v1599_v41, %v4414_v40 }
 0x402   :  { %v1743_v46 = vpack.c.bf16 %v1600_v44, %v1598_v43  ;;  %v1618_v47 = vpop.f32.mrf.mxu1 }
 0x403   :  { %v1619_v49 = vadd.f32 %v1618_v47, %v4414_v40 }
 0x404   :  { %v1767_v50 = vunpack.c.l.bf16 %v1743_v46  ;;  %v1775_v54 = vunpack.c.h.bf16 %v1743_v46 }
 0x405   :  { %v1744_v55 = vpack.c.bf16 %v1619_v49, %v1617_v42 }
 0x406   :  { %3476 = vtanh.f32 %v1767_v50 }
 0x407   :  { %3478 = vtanh.f32 %v1775_v54  ;;  %v1768_v57 = vunpack.c.l.bf16 %v1744_v55  ;;  %v1776_v34 = vunpack.c.h.bf16 %v1744_v55 }
 0x408   :  { %3480 = vtanh.f32 %v1759_v51 }
 0x409   :  { %3482 = vtanh.f32 %v1768_v57 }
 0x40a   :  { %3484 = vtanh.f32 %v1776_v34 }
 0x40b   :  { %3486 = vtanh.f32 %v1752_v35  ;;  %v1668_v59 = vpop.f32.mrf.mxu0 }
 0x40c   :  { %v3477_v2 = vpop.eup %3476  ;;  %3488 = vtanh.f32 %v1760_v0  ;;  %v1669_v61 = vadd.f32 %v1668_v59, %v4411_v13 }
 0x40d   :  { %v3479_v4 = vpop.eup %3478  ;;  %v1687_v5 = vpop.f32.mrf.mxu1 }
 0x40e   :  { %v1630_v6 = vpop.f32.mrf.mxu2  ;;  %v3481_v63 = vpop.eup %3480  ;;  %v1823_v8 = vpack.c.bf16 %v3479_v4, %v3477_v2  ;;  %v1688_v21 = vadd.f32 %v1687_v5, %v4411_v13 }
 0x40f   :  { %v3483_v56 = vpop.eup %3482  ;;  %v1815_v7 = vpack.c.bf16 %v3481_v63, %v3475_v1  ;;  %v1631_v27 = vadd.f32 %v1630_v6, %v4411_v13 }
 0x410   :  { %v3485_v3 = vpop.eup %3484  ;;  %v1649_v48 = vpop.f32.mrf.mxu3  ;;  %1883 = vmatpush.bf16.msra.mxu0 %v1823_v8 }
 0x411   :  { %v3487_v60 = vpop.eup %3486  ;;  %v1824_v20 = vpack.c.bf16 %v3485_v3, %v3483_v56  ;;  %v1650_v51 = vadd.f32 %v1649_v48, %v4411_v13 }
 0x412   :  { %v3489_v12 = vpop.eup %3488 }
 0x413   :  { %v1670_v52 = vpop.f32.mrf.mxu0  ;;  %1902 = vmatpush.bf16.msra.mxu1 %v1824_v20  ;;  %v1816_v25 = vpack.c.bf16 %v3489_v12, %v3487_v60 }
 0x414   :  { %1884 = vmatpush.bf16.msra.mxu0 %v1815_v7  ;;  %v1671_v16 = vadd.f32 %v1670_v52, %v4408_v37 }
 0x415   :  { %v1689_v14 = vpop.f32.mrf.mxu1 }
 0x416   :  { %v1632_v17 = vpop.f32.mrf.mxu2  ;;  %v1690_v15 = vadd.f32 %v1689_v14, %v4408_v37  ;;  %v1739_v18 = vpack.c.bf16 %v1671_v16, %v1669_v61 }
 0x417   :  { %1903 = vmatpush.bf16.msra.mxu1 %v1816_v25  ;;  %3043 = vmatmul.msk.bf16.vlgmr.msra.gmra.mxu0 %vm400_vm2, %v4425_v62  ;;  %v1633_v23 = vadd.f32 %v1632_v17, %v4408_v37 }
 0x418   :  { %v1651_v19 = vpop.f32.mrf.mxu3  ;;  %v1740_v26 = vpack.c.bf16 %v1690_v15, %v1688_v21  ;;  %v1755_v31 = vunpack.c.l.bf16 %v1739_v18  ;;  %v1763_v9 = vunpack.c.h.bf16 %v1739_v18 }
 0x419   :  { %v1737_v33 = vpack.c.bf16 %v1633_v23, %v1631_v27  ;;  %v1652_v44 = vadd.f32 %v1651_v19, %v4408_v37 }
 0x41a   :  { %3045 = vmatmul.msk.bf16.vlgmr.msra.gmra.mxu1 %vm400_vm2, %v4425_v62  ;;  %v1756_v30 = vunpack.c.l.bf16 %v1740_v26  ;;  %v1764_v10 = vunpack.c.h.bf16 %v1740_v26  ;;  %3490 = vtanh.f32 %v1755_v31 }
 0x41b   :  { %v1673_v24 = vpop.f32.mrf.mxu0  ;;  %3492 = vtanh.f32 %v1763_v9  ;;  %v1753_v53 = vunpack.c.l.bf16 %v1737_v33  ;;  %v1761_v43 = vunpack.c.h.bf16 %v1737_v33  ;;  %v1738_v1 = vpack.c.bf16 %v1652_v44, %v1650_v51 }
 0x41c   :  { %3494 = vtanh.f32 %v1756_v30  ;;  %v1674_v11 = vadd.f32 %v1673_v24, %v4406_v32 }
 0x41d   :  { %v1692_v28 = vpop.f32.mrf.mxu1  ;;  %3496 = vtanh.f32 %v1764_v10  ;;  %v1754_v7 = vunpack.c.l.bf16 %v1738_v1  ;;  %v1762_v14 = vunpack.c.h.bf16 %v1738_v1 }
 0x41e   :  { %v1635_v29 = vpop.f32.mrf.mxu2  ;;  %v1693_v45 = vadd.f32 %v1692_v28, %v4406_v32  ;;  %3498 = vtanh.f32 %v1753_v53 }
 0x41f   :  { %v1636_v47 = vadd.f32 %v1635_v29, %v4406_v32  ;;  %3500 = vtanh.f32 %v1761_v43 }
 0x420   :  { %v1654_v36 = vpop.f32.mrf.mxu3  ;;  %v3491_v50 = vpop.eup %3490 }
 0x421   :  { %v3493_v0 = vpop.eup %3492  ;;  %v1655_v59 = vadd.f32 %v1654_v36, %v4406_v32 }
 0x422   :  { %v3495_v4 = vpop.eup %3494  ;;  %v1819_v28 = vpack.c.bf16 %v3493_v0, %v3491_v50 }
 0x423   :  { %v1675_v38 = vpop.f32.mrf.mxu0  ;;  %v3497_v8 = vpop.eup %3496 }
 0x424   :  { %v1676_v41 = vadd.f32 %v1675_v38, %v4414_v40  ;;  %v3499_v48 = vpop.eup %3498  ;;  %v1820_v30 = vpack.c.bf16 %v3497_v8, %v3495_v4 }
 0x425   :  { %v1694_v58 = vpop.f32.mrf.mxu1  ;;  %v3501_v52 = vpop.eup %3500 }
 0x426   :  { %v1637_v46 = vpop.f32.mrf.mxu2  ;;  %v1747_v22 = vpack.c.bf16 %v1676_v41, %v1674_v11  ;;  %v1695_v42 = vadd.f32 %v1694_v58, %v4414_v40  ;;  %v1817_v10 = vpack.c.bf16 %v3501_v52, %v3499_v48 }
 0x427   :  { %v1638_v49 = vadd.f32 %v1637_v46, %v4414_v40  ;;  %3044 = vmatmul.msk.bf16.gmra.mxu0 %vm400_vm2, %v4440_v39 }
 0x428   :  { %v1771_v54 = vunpack.c.l.bf16 %v1747_v22  ;;  %v1779_v55 = vunpack.c.h.bf16 %v1747_v22  ;;  %v1748_v35 = vpack.c.bf16 %v1695_v42, %v1693_v45  ;;  %v1656_v34 = vpop.f32.mrf.mxu3 }
 0x429   :  { %v1745_v57 = vpack.c.bf16 %v1638_v49, %v1636_v47  ;;  %v1657_v2 = vadd.f32 %v1656_v34, %v4414_v40 }
 0x42a   :  { %3502 = vtanh.f32 %v1771_v54  ;;  %v1772_v5 = vunpack.c.l.bf16 %v1748_v35  ;;  %v1780_v6 = vunpack.c.h.bf16 %v1748_v35  ;;  %3046 = vmatmul.msk.bf16.gmra.mxu1 %vm400_vm2, %v4440_v39 }
 0x42b   :  { %v1769_v63 = vunpack.c.l.bf16 %v1745_v57  ;;  %3504 = vtanh.f32 %v1779_v55  ;;  %v1777_v56 = vunpack.c.h.bf16 %v1745_v57  ;;  %v1746_v3 = vpack.c.bf16 %v1657_v2, %v1655_v59 }
 0x42c   :  { %3506 = vtanh.f32 %v1772_v5 }
 0x42d   :  { %3508 = vtanh.f32 %v1780_v6  ;;  %v1770_v60 = vunpack.c.l.bf16 %v1746_v3  ;;  %v1778_v20 = vunpack.c.h.bf16 %v1746_v3 }
 0x42e   :  { %v1706_v12 = vpop.f32.mrf.mxu2  ;;  %3510 = vtanh.f32 %v1769_v63 }
 0x42f   :  { %3512 = vtanh.f32 %v1777_v56  ;;  %v1707_v43 = vadd.f32 %v1706_v12, %v4411_v13 }
 0x430   :  { %v3503_v17 = vpop.eup %3502  ;;  %3514 = vtanh.f32 %v1770_v60  ;;  %v1725_v25 = vpop.f32.mrf.mxu3 }
 0x431   :  { %v3505_v16 = vpop.eup %3504  ;;  %3516 = vtanh.f32 %v1778_v20  ;;  %v1726_v22 = vadd.f32 %v1725_v25, %v4411_v13 }
 0x432   :  { %v3507_v61 = vpop.eup %3506  ;;  %3518 = vtanh.f32 %v1754_v7  ;;  %v1827_v15 = vpack.c.bf16 %v3505_v16, %v3503_v17  ;;  %v4488_v7 = vpop.permute.xlu0 %1853 }
 0x433   :  { %v3509_v19 = vpop.eup %3508  ;;  %3520 = vtanh.f32 %v1762_v14 }
 0x434   :  { %v3511_v21 = vpop.eup %3510  ;;  %1959 = vmatpush.bf16.msrb.mxu0 %v1827_v15  ;;  %v1828_v18 = vpack.c.bf16 %v3509_v19, %v3507_v61  ;;  %v4493_v61 = vpop.permute.xlu2 %1843 }
 0x435   :  { %v3513_v23 = vpop.eup %3512 }
 0x436   :  { %v1708_v24 = vpop.f32.mrf.mxu2  ;;  %v3515_v26 = vpop.eup %3514  ;;  %1978 = vmatpush.bf16.msrb.mxu1 %v1828_v18  ;;  %v1825_v27 = vpack.c.bf16 %v3513_v23, %v3511_v21 }
 0x437   :  { %v3517_v29 = vpop.eup %3516  ;;  %v1709_v11 = vadd.f32 %v1708_v24, %v4408_v37  ;;  %v4496_v21 = vpop.permute.xlu1 %1858 }
 0x438   :  { %v3519_v31 = vpop.eup %3518  ;;  %v1727_v9 = vpop.f32.mrf.mxu3  ;;  %1921 = vmatpush.bf16.msra.mxu2 %v1825_v27  ;;  %v1826_v33 = vpack.c.bf16 %v3517_v29, %v3515_v26  ;;  %1960 = vmatpush.bf16.msrb.mxu0 %v1819_v28 }
 0x439   :  { %v3521_v36 = vpop.eup %3520  ;;  %v1741_v44 = vpack.c.bf16 %v1709_v11, %v1707_v43  ;;  %v1728_v45 = vadd.f32 %v1727_v9, %v4408_v37 }
 0x43a   :  { %1940 = vmatpush.bf16.msra.mxu3 %v1826_v33  ;;  %1979 = vmatpush.bf16.msrb.mxu1 %v1820_v30  ;;  %v1818_v53 = vpack.c.bf16 %v3521_v36, %v3519_v31  ;;  %v4490_v25 = vpop.permute.xlu0 %1848 }
 0x43b   :  { %3051 = vmatmul.msk.bf16.vlgmr.msrb.gmra.mxu0 %vm400_vm2, %v4425_v62  ;;  %v1757_v42 = vunpack.c.l.bf16 %v1741_v44  ;;  %v1742_v50 = vpack.c.bf16 %v1728_v45, %v1726_v22  ;;  %v1765_v35 = vunpack.c.h.bf16 %v1741_v44 }
 0x43c   :  { %1922 = vmatpush.bf16.msra.mxu2 %v1817_v10 }
 0x43d   :  { %3053 = vmatmul.msk.bf16.vlgmr.msrb.gmra.mxu1 %vm400_vm2, %v4425_v62  ;;  %3522 = vtanh.f32 %v1757_v42  ;;  %v1758_v0 = vunpack.c.l.bf16 %v1742_v50 }
 0x43e   :  { %v1711_v38 = vpop.f32.mrf.mxu2  ;;  %1941 = vmatpush.bf16.msra.mxu3 %v1818_v53 }
 0x43f   :  { %3047 = vmatmul.msk.bf16.vlgmr.msra.gmra.mxu2 %vm400_vm2, %v4425_v62  ;;  %v1712_v46 = vadd.f32 %v1711_v38, %v4406_v32 }
 0x440   :  { %v1730_v41 = vpop.f32.mrf.mxu3 }
 0x441   :  { %3049 = vmatmul.msk.bf16.vlgmr.msra.gmra.mxu3 %vm400_vm2, %v4425_v62  ;;  %v1731_v54 = vadd.f32 %v1730_v41, %v4406_v32  ;;  %v1766_v32 = vunpack.c.h.bf16 %v1742_v50 }
 0x446   :  { %v1713_v58 = vpop.f32.mrf.mxu2 }
 0x447   :  { %v1714_v47 = vadd.f32 %v1713_v58, %v4414_v40 }
 0x448   :  { %v1732_v51 = vpop.f32.mrf.mxu3 }
 0x449   :  { %v1749_v49 = vpack.c.bf16 %v1714_v47, %v1712_v46  ;;  %v1733_v55 = vadd.f32 %v1732_v51, %v4414_v40  ;;  %v3523_v40 = vpop.eup %3522 }
 0x44b   :  { %v1773_v57 = vunpack.c.l.bf16 %v1749_v49  ;;  %v1781_v34 = vunpack.c.h.bf16 %v1749_v49  ;;  %v1750_v37 = vpack.c.bf16 %v1733_v55, %v1731_v54  ;;  %3052 = vmatmul.msk.bf16.gmra.mxu0 %vm400_vm2, %v4440_v39 }
 0x44d   :  { %3524 = vtanh.f32 %v1773_v57  ;;  %v1774_v13 = vunpack.c.l.bf16 %v1750_v37  ;;  %v1782_v1 = vunpack.c.h.bf16 %v1750_v37  ;;  %3054 = vmatmul.msk.bf16.gmra.mxu1 %vm400_vm2, %v4440_v39 }
 0x44e   :  { %3526 = vtanh.f32 %v1781_v34  ;;  %v4507_v34 = vld [vmem:[%s4719_s3 + $0x60] sm:$0xff] }
 0x44f   :  { %3528 = vtanh.f32 %v1765_v35  ;;  %3048 = vmatmul.msk.bf16.gmra.mxu2 %vm400_vm2, %v4440_v39 }
 0x450   :  { %3530 = vtanh.f32 %v1774_v13 }
 0x451   :  { %3532 = vtanh.f32 %v1782_v1  ;;  %3050 = vmatmul.msk.bf16.gmra.mxu3 %vm400_vm2, %v4440_v39 }
 0x452   :  { %3534 = vtanh.f32 %v1758_v0 }
 0x453   :  { %v3525_v59 = vpop.eup %3524  ;;  %3536 = vtanh.f32 %v1766_v32 }
 0x454   :  { %v3527_v2 = vpop.eup %3526 }
 0x455   :  { %v3529_v4 = vpop.eup %3528  ;;  %v1829_v5 = vpack.c.bf16 %v3527_v2, %v3525_v59 }
 0x456   :  { %v3531_v6 = vpop.eup %3530  ;;  %v1821_v48 = vpack.c.bf16 %v3529_v4, %v3523_v40 }
 0x457   :  { %v3533_v63 = vpop.eup %3532  ;;  %1997 = vmatpush.bf16.msrb.mxu2 %v1829_v5 }
 0x458   :  { %v3535_v8 = vpop.eup %3534  ;;  %v1830_v56 = vpack.c.bf16 %v3533_v63, %v3531_v6 }
 0x459   :  { %v3537_v3 = vpop.eup %3536 }
 0x45a   :  { %2016 = vmatpush.bf16.msrb.mxu3 %v1830_v56  ;;  %v1822_v60 = vpack.c.bf16 %v3537_v3, %v3535_v8  ;;  %v4519_v56 = vld [vmem:[%s4719_s3 + $0x68] sm:$0xff] }
 0x45b   :  { %1998 = vmatpush.bf16.msrb.mxu2 %v1821_v48 }
 0x45e   :  { %2017 = vmatpush.bf16.msrb.mxu3 %v1822_v60 }
 0x45f   :  { %3055 = vmatmul.msk.bf16.vlgmr.msrb.gmra.mxu2 %vm400_vm2, %v4425_v62 }
 0x461   :  { %3057 = vmatmul.msk.bf16.vlgmr.msrb.gmra.mxu3 %vm400_vm2, %v4425_v62 }
 0x46f   :  { %3056 = vmatmul.msk.bf16.gmra.mxu2 %vm400_vm2, %v4440_v39 }
 0x471   :  { %3058 = vmatmul.msk.bf16.gmra.mxu3 %vm400_vm2, %v4440_v39 }
 0x494   :  { %v1886_v20 = vpop.f32.mrf.mxu0 }
 0x495   :  { %v1887_v15 = vadd.f32 %v1886_v20, %v4493_v61 }
 0x497   :  { %v1905_v12 = vpop.f32.mrf.mxu1 }
 0x498   :  { %v1906_v26 = vadd.f32 %v1905_v12, %v4493_v61 }
 0x49c   :  { %v1888_v52 = vpop.f32.mrf.mxu0 }
 0x49d   :  { %v1889_v16 = vadd.f32 %v1888_v52, %v4490_v25 }
 0x49f   :  { %v1907_v14 = vpop.f32.mrf.mxu1  ;;  %v2029_v19 = vpack.c.bf16 %v1889_v16, %v1887_v15 }
 0x4a0   :  { %v1908_v39 = vadd.f32 %v1907_v14, %v4490_v25 }
 0x4a1   :  { %v2045_v27 = vunpack.c.l.bf16 %v2029_v19  ;;  %v2053_v30 = vunpack.c.h.bf16 %v2029_v19 }
 0x4a2   :  { %v2030_v31 = vpack.c.bf16 %v1908_v39, %v1906_v26 }
 0x4a3   :  { %3538 = vtanh.f32 %v2045_v27 }
 0x4a4   :  { %v1891_v17 = vpop.f32.mrf.mxu0  ;;  %v2046_v38 = vunpack.c.l.bf16 %v2030_v31  ;;  %v2054_v43 = vunpack.c.h.bf16 %v2030_v31 }
 0x4a5   :  { %v1892_v23 = vadd.f32 %v1891_v17, %v4488_v7 }
 0x4a7   :  { %v1910_v62 = vpop.f32.mrf.mxu1 }
 0x4a8   :  { %v1911_v9 = vadd.f32 %v1910_v62, %v4488_v7 }
 0x4a9   :  { %v3539_v44 = vpop.eup %3538 }
 0x4ac   :  { %v1893_v18 = vpop.f32.mrf.mxu0 }
 0x4ad   :  { %v1894_v24 = vadd.f32 %v1893_v18, %v4496_v21 }
 0x4af   :  { %v2037_v28 = vpack.c.bf16 %v1894_v24, %v1892_v23  ;;  %v1912_v29 = vpop.f32.mrf.mxu1 }
 0x4b0   :  { %v1913_v33 = vadd.f32 %v1912_v29, %v4496_v21 }
 0x4b1   :  { %v2061_v36 = vunpack.c.l.bf16 %v2037_v28  ;;  %v2069_v10 = vunpack.c.h.bf16 %v2037_v28 }
 0x4b2   :  { %v2038_v53 = vpack.c.bf16 %v1913_v33, %v1911_v9 }
 0x4b3   :  { %3540 = vtanh.f32 %v2061_v36 }
 0x4b4   :  { %3542 = vtanh.f32 %v2069_v10  ;;  %v2062_v11 = vunpack.c.l.bf16 %v2038_v53  ;;  %v2070_v41 = vunpack.c.h.bf16 %v2038_v53 }
 0x4b5   :  { %3544 = vtanh.f32 %v2053_v30 }
 0x4b6   :  { %3546 = vtanh.f32 %v2062_v11 }
 0x4b7   :  { %3548 = vtanh.f32 %v2070_v41 }
 0x4b8   :  { %3550 = vtanh.f32 %v2046_v38  ;;  %v1962_v45 = vpop.f32.mrf.mxu0 }
 0x4b9   :  { %v3541_v58 = vpop.eup %3540  ;;  %3552 = vtanh.f32 %v2054_v43  ;;  %v1963_v4 = vadd.f32 %v1962_v45, %v4493_v61 }
 0x4ba   :  { %v3543_v46 = vpop.eup %3542  ;;  %v1981_v47 = vpop.f32.mrf.mxu1 }
 0x4bb   :  { %v3545_v22 = vpop.eup %3544  ;;  %v2117_v42 = vpack.c.bf16 %v3543_v46, %v3541_v58  ;;  %v1982_v3 = vadd.f32 %v1981_v47, %v4493_v61 }
 0x4bc   :  { %v3547_v49 = vpop.eup %3546  ;;  %v2109_v35 = vpack.c.bf16 %v3545_v22, %v3539_v44 }
 0x4bd   :  { %v3549_v51 = vpop.eup %3548  ;;  %2177 = vmatpush.bf16.msra.mxu0 %v2117_v42 }
 0x4be   :  { %v3551_v50 = vpop.eup %3550  ;;  %v2118_v54 = vpack.c.bf16 %v3549_v51, %v3547_v49 }
 0x4bf   :  { %v3553_v55 = vpop.eup %3552 }
 0x4c0   :  { %v1964_v57 = vpop.f32.mrf.mxu0  ;;  %2196 = vmatpush.bf16.msra.mxu1 %v2118_v54  ;;  %v2110_v13 = vpack.c.bf16 %v3553_v55, %v3551_v50 }
 0x4c1   :  { %2178 = vmatpush.bf16.msra.mxu0 %v2109_v35  ;;  %v1965_v40 = vadd.f32 %v1964_v57, %v4490_v25 }
 0x4c2   :  { %v1983_v37 = vpop.f32.mrf.mxu1  ;;  %v1924_v0 = vpop.f32.mrf.mxu2 }
 0x4c3   :  { %v2033_v6 = vpack.c.bf16 %v1965_v40, %v1963_v4  ;;  %v1984_v63 = vadd.f32 %v1983_v37, %v4490_v25  ;;  %v1925_v39 = vadd.f32 %v1924_v0, %v4493_v61 }
 0x4c4   :  { %v1943_v1 = vpop.f32.mrf.mxu3  ;;  %2197 = vmatpush.bf16.msra.mxu1 %v2110_v13  ;;  %3075 = vmatmul.msk.bf16.vlgmr.msra.gmra.mxu0 %vm400_vm2, %v4507_v34 }
 0x4c5   :  { %v2049_v48 = vunpack.c.l.bf16 %v2033_v6  ;;  %v2057_v12 = vunpack.c.h.bf16 %v2033_v6  ;;  %v2034_v16 = vpack.c.bf16 %v1984_v63, %v1982_v3  ;;  %v1944_v30 = vadd.f32 %v1943_v1, %v4493_v61 }
 0x4c7   :  { %3077 = vmatmul.msk.bf16.vlgmr.msra.gmra.mxu1 %vm400_vm2, %v4507_v34  ;;  %3554 = vtanh.f32 %v2049_v48  ;;  %v2050_v28 = vunpack.c.l.bf16 %v2034_v16  ;;  %v2058_v9 = vunpack.c.h.bf16 %v2034_v16 }
 0x4c8   :  { %v1967_v32 = vpop.f32.mrf.mxu0  ;;  %3556 = vtanh.f32 %v2057_v12 }
 0x4c9   :  { %v1968_v60 = vadd.f32 %v1967_v32, %v4488_v7 }
 0x4ca   :  { %v1986_v59 = vpop.f32.mrf.mxu1  ;;  %v1926_v2 = vpop.f32.mrf.mxu2 }
 0x4cb   :  { %v1927_v52 = vadd.f32 %v1926_v2, %v4490_v25  ;;  %v1987_v62 = vadd.f32 %v1986_v59, %v4488_v7 }
 0x4cc   :  { %v1945_v5 = vpop.f32.mrf.mxu3 }
 0x4cd   :  { %v2031_v27 = vpack.c.bf16 %v1927_v52, %v1925_v39  ;;  %v1946_v33 = vadd.f32 %v1945_v5, %v4490_v25  ;;  %v3555_v53 = vpop.eup %3554 }
 0x4ce   :  { %v3557_v41 = vpop.eup %3556 }
 0x4cf   :  { %v2047_v36 = vunpack.c.l.bf16 %v2031_v27  ;;  %v2055_v43 = vunpack.c.h.bf16 %v2031_v27  ;;  %v2032_v44 = vpack.c.bf16 %v1946_v33, %v1944_v30  ;;  %v2113_v2 = vpack.c.bf16 %v3557_v41, %v3555_v53 }
 0x4d0   :  { %v1969_v8 = vpop.f32.mrf.mxu0 }
 0x4d1   :  { %v1970_v20 = vadd.f32 %v1969_v8, %v4496_v21  ;;  %v2048_v57 = vunpack.c.l.bf16 %v2032_v44  ;;  %v2056_v40 = vunpack.c.h.bf16 %v2032_v44 }
 0x4d2   :  { %v1988_v14 = vpop.f32.mrf.mxu1  ;;  %v1929_v17 = vpop.f32.mrf.mxu2 }
 0x4d3   :  { %v2041_v15 = vpack.c.bf16 %v1970_v20, %v1968_v60  ;;  %v1989_v19 = vadd.f32 %v1988_v14, %v4496_v21  ;;  %v1930_v38 = vadd.f32 %v1929_v17, %v4488_v7 }
 0x4d4   :  { %v1948_v18 = vpop.f32.mrf.mxu3  ;;  %3076 = vmatmul.msk.bf16.gmra.mxu0 %vm400_vm2, %v4519_v56 }
 0x4d5   :  { %v2065_v23 = vunpack.c.l.bf16 %v2041_v15  ;;  %v2073_v24 = vunpack.c.h.bf16 %v2041_v15  ;;  %v2042_v26 = vpack.c.bf16 %v1989_v19, %v1987_v62  ;;  %v1949_v46 = vadd.f32 %v1948_v18, %v4488_v7 }
 0x4d7   :  { %3558 = vtanh.f32 %v2065_v23  ;;  %v2066_v29 = vunpack.c.l.bf16 %v2042_v26  ;;  %v2074_v31 = vunpack.c.h.bf16 %v2042_v26  ;;  %3078 = vmatmul.msk.bf16.gmra.mxu1 %vm400_vm2, %v4519_v56 }
 0x4d8   :  { %3560 = vtanh.f32 %v2073_v24 }
 0x4d9   :  { %3562 = vtanh.f32 %v2066_v29 }
 0x4da   :  { %3564 = vtanh.f32 %v2074_v31  ;;  %v1931_v10 = vpop.f32.mrf.mxu2 }
 0x4db   :  { %3566 = vtanh.f32 %v2050_v28  ;;  %v1932_v11 = vadd.f32 %v1931_v10, %v4496_v21 }
 0x4dc   :  { %3568 = vtanh.f32 %v2058_v9  ;;  %v1950_v45 = vpop.f32.mrf.mxu3 }
 0x4dd   :  { %v3559_v58 = vpop.eup %3558  ;;  %v2039_v47 = vpack.c.bf16 %v1932_v11, %v1930_v38  ;;  %v1951_v22 = vadd.f32 %v1950_v45, %v4496_v21  ;;  %3570 = vtanh.f32 %v2047_v36 }
 0x4de   :  { %v3561_v42 = vpop.eup %3560  ;;  %3572 = vtanh.f32 %v2055_v43 }
 0x4df   :  { %v3563_v49 = vpop.eup %3562  ;;  %v2063_v51 = vunpack.c.l.bf16 %v2039_v47  ;;  %v2071_v50 = vunpack.c.h.bf16 %v2039_v47  ;;  %v2040_v54 = vpack.c.bf16 %v1951_v22, %v1949_v46  ;;  %v2121_v55 = vpack.c.bf16 %v3561_v42, %v3559_v58 }
 0x4e0   :  { %v3565_v35 = vpop.eup %3564 }
 0x4e1   :  { %v3567_v37 = vpop.eup %3566  ;;  %3574 = vtanh.f32 %v2063_v51  ;;  %v2064_v0 = vunpack.c.l.bf16 %v2040_v54  ;;  %v2072_v13 = vunpack.c.h.bf16 %v2040_v54  ;;  %2253 = vmatpush.bf16.msrb.mxu0 %v2121_v55  ;;  %v2122_v1 = vpack.c.bf16 %v3565_v35, %v3563_v49 }
 0x4e2   :  { %v3569_v32 = vpop.eup %3568  ;;  %3576 = vtanh.f32 %v2071_v50  ;;  %v2000_v59 = vpop.f32.mrf.mxu2 }
 0x4e3   :  { %3578 = vtanh.f32 %v2064_v0  ;;  %2272 = vmatpush.bf16.msrb.mxu1 %v2122_v1  ;;  %v3571_v4 = vpop.eup %3570  ;;  %v2114_v6 = vpack.c.bf16 %v3569_v32, %v3567_v37  ;;  %v2001_v23 = vadd.f32 %v2000_v59, %v4493_v61  ;;  %v4570_v37 = vpop.permute.xlu1 %2147 }
 0x4e4   :  { %3580 = vtanh.f32 %v2072_v13  ;;  %v2019_v5 = vpop.f32.mrf.mxu3  ;;  %v3573_v63 = vpop.eup %3572 }
 0x4e5   :  { %3582 = vtanh.f32 %v2048_v57  ;;  %2254 = vmatpush.bf16.msrb.mxu0 %v2113_v2  ;;  %v2111_v62 = vpack.c.bf16 %v3573_v63, %v3571_v4  ;;  %v2020_v28 = vadd.f32 %v2019_v5, %v4493_v61  ;;  %v4575_v59 = vpop.permute.xlu0 %2137  ;;  %v4578_v5 = vpop.permute.xlu2 %2152 }
 0x4e6   :  { %3584 = vtanh.f32 %v2056_v40 }
 0x4e7   :  { %v3575_v8 = vpop.eup %3574  ;;  %2273 = vmatpush.bf16.msrb.mxu1 %v2114_v6 }
 0x4e8   :  { %v3577_v3 = vpop.eup %3576  ;;  %3083 = vmatmul.msk.bf16.vlgmr.msrb.gmra.mxu0 %vm400_vm2, %v4507_v34 }
 0x4e9   :  { %v3579_v48 = vpop.eup %3578  ;;  %v2119_v60 = vpack.c.bf16 %v3577_v3, %v3575_v8 }
 0x4ea   :  { %v3581_v20 = vpop.eup %3580  ;;  %3085 = vmatmul.msk.bf16.vlgmr.msrb.gmra.mxu1 %vm400_vm2, %v4507_v34  ;;  %v2002_v12 = vpop.f32.mrf.mxu2 }
 0x4eb   :  { %v3583_v52 = vpop.eup %3582  ;;  %2215 = vmatpush.bf16.msra.mxu2 %v2119_v60  ;;  %v2120_v14 = vpack.c.bf16 %v3581_v20, %v3579_v48  ;;  %v2003_v39 = vadd.f32 %v2002_v12, %v4490_v25  ;;  %v4572_v32 = vpop.permute.xlu1 %2142 }
 0x4ec   :  { %v3585_v17 = vpop.eup %3584  ;;  %v2021_v16 = vpop.f32.mrf.mxu3 }
 0x4ed   :  { %2234 = vmatpush.bf16.msra.mxu3 %v2120_v14  ;;  %v2112_v15 = vpack.c.bf16 %v3585_v17, %v3583_v52  ;;  %v2035_v24 = vpack.c.bf16 %v2003_v39, %v2001_v23  ;;  %v2022_v26 = vadd.f32 %v2021_v16, %v4490_v25 }
 0x4ef   :  { %2216 = vmatpush.bf16.msra.mxu2 %v2111_v62  ;;  %v2051_v29 = vunpack.c.l.bf16 %v2035_v24  ;;  %v2059_v33 = vunpack.c.h.bf16 %v2035_v24  ;;  %v2036_v36 = vpack.c.bf16 %v2022_v26, %v2020_v28 }
 0x4f1   :  { %2235 = vmatpush.bf16.msra.mxu3 %v2112_v15  ;;  %3586 = vtanh.f32 %v2051_v29  ;;  %v2052_v43 = vunpack.c.l.bf16 %v2036_v36  ;;  %v2060_v45 = vunpack.c.h.bf16 %v2036_v36 }
 0x4f2   :  { %3079 = vmatmul.msk.bf16.vlgmr.msra.gmra.mxu2 %vm400_vm2, %v4507_v34  ;;  %v2005_v19 = vpop.f32.mrf.mxu2  ;;  %3588 = vtanh.f32 %v2059_v33 }
 0x4f3   :  { %v2006_v31 = vadd.f32 %v2005_v19, %v4488_v7 }
 0x4f4   :  { %3081 = vmatmul.msk.bf16.vlgmr.msra.gmra.mxu3 %vm400_vm2, %v4507_v34  ;;  %v2024_v18 = vpop.f32.mrf.mxu3 }
 0x4f5   :  { %v2025_v10 = vadd.f32 %v2024_v18, %v4488_v7 }
 0x4f7   :  { %v3587_v7 = vpop.eup %3586 }
 0x4f8   :  { %3084 = vmatmul.msk.bf16.gmra.mxu0 %vm400_vm2, %v4519_v56 }
 0x4fa   :  { %3086 = vmatmul.msk.bf16.gmra.mxu1 %vm400_vm2, %v4519_v56  ;;  %v2007_v27 = vpop.f32.mrf.mxu2 }
 0x4fb   :  { %v2008_v9 = vadd.f32 %v2007_v27, %v4496_v21 }
 0x4fc   :  { %v2026_v30 = vpop.f32.mrf.mxu3 }
 0x4fd   :  { %v2043_v53 = vpack.c.bf16 %v2008_v9, %v2006_v31  ;;  %v2027_v38 = vadd.f32 %v2026_v30, %v4496_v21  ;;  %v3589_v21 = vpop.eup %3588 }
 0x4fe   :  { %v2115_v54 = vpack.c.bf16 %v3589_v21, %v3587_v7 }
 0x4ff   :  { %v2067_v25 = vunpack.c.l.bf16 %v2043_v53  ;;  %v2075_v11 = vunpack.c.h.bf16 %v2043_v53  ;;  %v2044_v41 = vpack.c.bf16 %v2027_v38, %v2025_v10 }
 0x501   :  { %3590 = vtanh.f32 %v2067_v25  ;;  %v2068_v61 = vunpack.c.l.bf16 %v2044_v41  ;;  %v2076_v44 = vunpack.c.h.bf16 %v2044_v41 }
 0x502   :  { %3592 = vtanh.f32 %v2075_v11  ;;  %3080 = vmatmul.msk.bf16.gmra.mxu2 %vm400_vm2, %v4519_v56  ;;  %v4589_v11 = vld [vmem:[%s4719_s3 + $0x70] sm:$0xff] }
 0x503   :  { %3594 = vtanh.f32 %v2068_v61 }
 0x504   :  { %3596 = vtanh.f32 %v2076_v44  ;;  %3082 = vmatmul.msk.bf16.gmra.mxu3 %vm400_vm2, %v4519_v56 }
 0x505   :  { %3598 = vtanh.f32 %v2052_v43 }
 0x506   :  { %3600 = vtanh.f32 %v2060_v45 }
 0x507   :  { %v3591_v58 = vpop.eup %3590 }
 0x508   :  { %v3593_v46 = vpop.eup %3592 }
 0x509   :  { %v3595_v47 = vpop.eup %3594  ;;  %v2123_v22 = vpack.c.bf16 %v3593_v46, %v3591_v58 }
 0x50a   :  { %v3597_v42 = vpop.eup %3596 }
 0x50b   :  { %v3599_v49 = vpop.eup %3598  ;;  %2291 = vmatpush.bf16.msrb.mxu2 %v2123_v22  ;;  %v2124_v51 = vpack.c.bf16 %v3597_v42, %v3595_v47  ;;  %v4600_v22 = vld [vmem:[%s4719_s3 + $0x78] sm:$0xff] }
 0x50c   :  { %v3601_v50 = vpop.eup %3600 }
 0x50d   :  { %2310 = vmatpush.bf16.msrb.mxu3 %v2124_v51  ;;  %v2116_v55 = vpack.c.bf16 %v3601_v50, %v3599_v49 }
 0x50f   :  { %2292 = vmatpush.bf16.msrb.mxu2 %v2115_v54 }
 0x511   :  { %2311 = vmatpush.bf16.msrb.mxu3 %v2116_v55 }
 0x512   :  { %3087 = vmatmul.msk.bf16.vlgmr.msrb.gmra.mxu2 %vm400_vm2, %v4507_v34 }
 0x514   :  { %3089 = vmatmul.msk.bf16.vlgmr.msrb.gmra.mxu3 %vm400_vm2, %v4507_v34 }
 0x522   :  { %3088 = vmatmul.msk.bf16.gmra.mxu2 %vm400_vm2, %v4519_v56 }
 0x524   :  { %3090 = vmatmul.msk.bf16.gmra.mxu3 %vm400_vm2, %v4519_v56 }
 0x541   :  { %v2180_v35 = vpop.f32.mrf.mxu0 }
 0x542   :  { %v2181_v2 = vadd.f32 %v2180_v35, %v4575_v59 }
 0x544   :  { %v2199_v57 = vpop.f32.mrf.mxu1 }
 0x545   :  { %v2200_v3 = vadd.f32 %v2199_v57, %v4575_v59 }
 0x549   :  { %v2182_v0 = vpop.f32.mrf.mxu0 }
 0x54a   :  { %v2183_v40 = vadd.f32 %v2182_v0, %v4572_v32 }
 0x54c   :  { %v2201_v13 = vpop.f32.mrf.mxu1  ;;  %v2323_v4 = vpack.c.bf16 %v2183_v40, %v2181_v2 }
 0x54d   :  { %v2202_v56 = vadd.f32 %v2201_v13, %v4572_v32 }
 0x54e   :  { %v2339_v48 = vunpack.c.l.bf16 %v2323_v4  ;;  %v2347_v17 = vunpack.c.h.bf16 %v2323_v4 }
 0x54f   :  { %v2324_v12 = vpack.c.bf16 %v2202_v56, %v2200_v3 }
 0x550   :  { %3602 = vtanh.f32 %v2339_v48 }
 0x551   :  { %v2185_v1 = vpop.f32.mrf.mxu0  ;;  %v2340_v19 = vunpack.c.l.bf16 %v2324_v12  ;;  %v2348_v23 = vunpack.c.h.bf16 %v2324_v12 }
 0x552   :  { %v2186_v63 = vadd.f32 %v2185_v1, %v4570_v37 }
 0x554   :  { %v2204_v34 = vpop.f32.mrf.mxu1 }
 0x555   :  { %v2205_v52 = vadd.f32 %v2204_v34, %v4570_v37 }
 0x556   :  { %v3603_v24 = vpop.eup %3602 }
 0x559   :  { %v2187_v6 = vpop.f32.mrf.mxu0 }
 0x55a   :  { %v2188_v8 = vadd.f32 %v2187_v6, %v4578_v5 }
 0x55c   :  { %v2331_v60 = vpack.c.bf16 %v2188_v8, %v2186_v63  ;;  %v2206_v20 = vpop.f32.mrf.mxu1 }
 0x55d   :  { %v2207_v14 = vadd.f32 %v2206_v20, %v4578_v5 }
 0x55e   :  { %v2355_v16 = vunpack.c.l.bf16 %v2331_v60  ;;  %v2363_v62 = vunpack.c.h.bf16 %v2331_v60 }
 0x55f   :  { %v2332_v15 = vpack.c.bf16 %v2207_v14, %v2205_v52 }
 0x560   :  { %3604 = vtanh.f32 %v2355_v16 }
 0x561   :  { %3606 = vtanh.f32 %v2363_v62  ;;  %v2356_v39 = vunpack.c.l.bf16 %v2332_v15  ;;  %v2364_v18 = vunpack.c.h.bf16 %v2332_v15 }
 0x562   :  { %3608 = vtanh.f32 %v2347_v17 }
 0x563   :  { %3610 = vtanh.f32 %v2356_v39 }
 0x564   :  { %3612 = vtanh.f32 %v2364_v18 }
 0x565   :  { %3614 = vtanh.f32 %v2340_v19  ;;  %v2256_v26 = vpop.f32.mrf.mxu0 }
 0x566   :  { %v3605_v27 = vpop.eup %3604  ;;  %3616 = vtanh.f32 %v2348_v23  ;;  %v2257_v58 = vadd.f32 %v2256_v26, %v4575_v59 }
 0x567   :  { %v3607_v28 = vpop.eup %3606  ;;  %v2275_v29 = vpop.f32.mrf.mxu1 }
 0x568   :  { %v3609_v31 = vpop.eup %3608  ;;  %v2411_v9 = vpack.c.bf16 %v3607_v28, %v3605_v27  ;;  %v2276_v13 = vadd.f32 %v2275_v29, %v4575_v59 }
 0x569   :  { %v3611_v33 = vpop.eup %3610  ;;  %v2403_v38 = vpack.c.bf16 %v3609_v31, %v3603_v24 }
 0x56a   :  { %v3613_v30 = vpop.eup %3612  ;;  %2471 = vmatpush.bf16.msra.mxu0 %v2411_v9 }
 0x56b   :  { %v3615_v36 = vpop.eup %3614  ;;  %v2412_v10 = vpack.c.bf16 %v3613_v30, %v3611_v33 }
 0x56c   :  { %v3617_v53 = vpop.eup %3616 }
 0x56d   :  { %v2258_v25 = vpop.f32.mrf.mxu0  ;;  %2490 = vmatpush.bf16.msra.mxu1 %v2412_v10  ;;  %v2404_v43 = vpack.c.bf16 %v3617_v53, %v3615_v36 }
 0x56e   :  { %2472 = vmatpush.bf16.msra.mxu0 %v2403_v38  ;;  %v2259_v21 = vadd.f32 %v2258_v25, %v4572_v32 }
 0x56f   :  { %v2277_v41 = vpop.f32.mrf.mxu1 }
 0x570   :  { %v2327_v42 = vpack.c.bf16 %v2259_v21, %v2257_v58  ;;  %v2278_v55 = vadd.f32 %v2277_v41, %v4572_v32 }
 0x571   :  { %2491 = vmatpush.bf16.msra.mxu1 %v2404_v43  ;;  %3107 = vmatmul.msk.bf16.vlgmr.msra.gmra.mxu0 %vm400_vm2, %v4589_v11 }
 0x572   :  { %v2343_v1 = vunpack.c.l.bf16 %v2327_v42  ;;  %v2351_v40 = vunpack.c.h.bf16 %v2327_v42  ;;  %v2328_v2 = vpack.c.bf16 %v2278_v55, %v2276_v13 }
 0x574   :  { %3109 = vmatmul.msk.bf16.vlgmr.msra.gmra.mxu1 %vm400_vm2, %v4589_v11  ;;  %3618 = vtanh.f32 %v2343_v1  ;;  %v2344_v20 = vunpack.c.l.bf16 %v2328_v2  ;;  %v2352_v12 = vunpack.c.h.bf16 %v2328_v2 }
 0x575   :  { %v2218_v61 = vpop.f32.mrf.mxu2  ;;  %v2261_v44 = vpop.f32.mrf.mxu0  ;;  %3620 = vtanh.f32 %v2351_v40 }
 0x576   :  { %v2262_v49 = vadd.f32 %v2261_v44, %v4570_v37  ;;  %v2219_v3 = vadd.f32 %v2218_v61, %v4575_v59 }
 0x577   :  { %v2237_v45 = vpop.f32.mrf.mxu3  ;;  %v2280_v7 = vpop.f32.mrf.mxu1 }
 0x578   :  { %v2281_v0 = vadd.f32 %v2280_v7, %v4570_v37  ;;  %v2238_v62 = vadd.f32 %v2237_v45, %v4575_v59 }
 0x57a   :  { %v3619_v17 = vpop.eup %3618 }
 0x57b   :  { %v3621_v16 = vpop.eup %3620 }
 0x57c   :  { %v2407_v61 = vpack.c.bf16 %v3621_v16, %v3619_v17 }
 0x57d   :  { %v2220_v46 = vpop.f32.mrf.mxu2  ;;  %v2263_v47 = vpop.f32.mrf.mxu0 }
 0x57e   :  { %v2264_v51 = vadd.f32 %v2263_v47, %v4578_v5  ;;  %v2221_v56 = vadd.f32 %v2220_v46, %v4572_v32 }
 0x57f   :  { %v2239_v50 = vpop.f32.mrf.mxu3  ;;  %v2282_v54 = vpop.f32.mrf.mxu1 }
 0x580   :  { %v2335_v35 = vpack.c.bf16 %v2264_v51, %v2262_v49  ;;  %v2283_v57 = vadd.f32 %v2282_v54, %v4578_v5  ;;  %v2325_v52 = vpack.c.bf16 %v2221_v56, %v2219_v3  ;;  %v2240_v14 = vadd.f32 %v2239_v50, %v4572_v32 }
 0x581   :  { %3108 = vmatmul.msk.bf16.gmra.mxu0 %vm400_vm2, %v4600_v22 }
 0x582   :  { %v2336_v34 = vpack.c.bf16 %v2283_v57, %v2281_v0  ;;  %v2359_v4 = vunpack.c.l.bf16 %v2335_v35  ;;  %v2367_v6 = vunpack.c.h.bf16 %v2335_v35  ;;  %v2341_v15 = vunpack.c.l.bf16 %v2325_v52 }
 0x583   :  { %v2349_v26 = vunpack.c.h.bf16 %v2325_v52  ;;  %v2326_v27 = vpack.c.bf16 %v2240_v14, %v2238_v62 }
 0x584   :  { %3110 = vmatmul.msk.bf16.gmra.mxu1 %vm400_vm2, %v4600_v22  ;;  %v2360_v8 = vunpack.c.l.bf16 %v2336_v34  ;;  %v2368_v48 = vunpack.c.h.bf16 %v2336_v34  ;;  %3622 = vtanh.f32 %v2359_v4 }
 0x585   :  { %v2223_v63 = vpop.f32.mrf.mxu2  ;;  %3624 = vtanh.f32 %v2367_v6  ;;  %v2342_v44 = vunpack.c.l.bf16 %v2326_v27  ;;  %v2350_v21 = vunpack.c.h.bf16 %v2326_v27 }
 0x586   :  { %3626 = vtanh.f32 %v2360_v8  ;;  %v2224_v18 = vadd.f32 %v2223_v63, %v4570_v37 }
 0x587   :  { %v2242_v60 = vpop.f32.mrf.mxu3  ;;  %3628 = vtanh.f32 %v2368_v48 }
 0x588   :  { %3630 = vtanh.f32 %v2344_v20  ;;  %v2243_v31 = vadd.f32 %v2242_v60, %v4570_v37 }
 0x589   :  { %3632 = vtanh.f32 %v2352_v12 }
 0x58a   :  { %v3623_v39 = vpop.eup %3622  ;;  %3634 = vtanh.f32 %v2341_v15 }
 0x58b   :  { %v3625_v24 = vpop.eup %3624  ;;  %3636 = vtanh.f32 %v2349_v26 }
 0x58c   :  { %v3627_v29 = vpop.eup %3626  ;;  %v2415_v30 = vpack.c.bf16 %v3625_v24, %v3623_v39 }
 0x58d   :  { %v2225_v19 = vpop.f32.mrf.mxu2  ;;  %v3629_v36 = vpop.eup %3628 }
 0x58e   :  { %v2226_v23 = vadd.f32 %v2225_v19, %v4578_v5  ;;  %v3631_v10 = vpop.eup %3630  ;;  %2547 = vmatpush.bf16.msrb.mxu0 %v2415_v30  ;;  %v2416_v41 = vpack.c.bf16 %v3629_v36, %v3627_v29 }
 0x58f   :  { %v2244_v28 = vpop.f32.mrf.mxu3  ;;  %v3633_v43 = vpop.eup %3632 }
 0x590   :  { %v2333_v9 = vpack.c.bf16 %v2226_v23, %v2224_v18  ;;  %v2245_v33 = vadd.f32 %v2244_v28, %v4578_v5  ;;  %2566 = vmatpush.bf16.msrb.mxu1 %v2416_v41  ;;  %v2408_v46 = vpack.c.bf16 %v3633_v43, %v3631_v10  ;;  %v3635_v47 = vpop.eup %3634  ;;  %v4652_v41 = vpop.permute.xlu2 %2441 }
 0x591   :  { %v3637_v49 = vpop.eup %3636 }
 0x592   :  { %v2357_v53 = vunpack.c.l.bf16 %v2333_v9  ;;  %v2365_v38 = vunpack.c.h.bf16 %v2333_v9  ;;  %v2334_v25 = vpack.c.bf16 %v2245_v33, %v2243_v31  ;;  %2548 = vmatpush.bf16.msrb.mxu0 %v2407_v61  ;;  %v2405_v34 = vpack.c.bf16 %v3637_v49, %v3635_v47  ;;  %v4660_v47 = vpop.permute.xlu0 %2446 }
 0x594   :  { %3638 = vtanh.f32 %v2357_v53  ;;  %v2358_v45 = vunpack.c.l.bf16 %v2334_v25  ;;  %v2366_v7 = vunpack.c.h.bf16 %v2334_v25  ;;  %2567 = vmatpush.bf16.msrb.mxu1 %v2408_v46 }
 0x595   :  { %3640 = vtanh.f32 %v2365_v38  ;;  %v2294_v58 = vpop.f32.mrf.mxu2  ;;  %3115 = vmatmul.msk.bf16.vlgmr.msrb.gmra.mxu0 %vm400_vm2, %v4589_v11 }
 0x596   :  { %3642 = vtanh.f32 %v2358_v45  ;;  %v2295_v63 = vadd.f32 %v2294_v58, %v4575_v59 }
 0x597   :  { %3644 = vtanh.f32 %v2366_v7  ;;  %v2313_v42 = vpop.f32.mrf.mxu3  ;;  %3117 = vmatmul.msk.bf16.vlgmr.msrb.gmra.mxu1 %vm400_vm2, %v4589_v11 }
 0x598   :  { %3646 = vtanh.f32 %v2342_v44  ;;  %v2314_v60 = vadd.f32 %v2313_v42, %v4575_v59  ;;  %v4654_v45 = vpop.permute.xlu2 %2436 }
 0x599   :  { %3648 = vtanh.f32 %v2350_v21  ;;  %v4657_v21 = vpop.permute.xlu1 %2431 }
 0x59a   :  { %v3639_v51 = vpop.eup %3638 }
 0x59b   :  { %v3641_v50 = vpop.eup %3640 }
 0x59c   :  { %v3643_v54 = vpop.eup %3642  ;;  %v2413_v55 = vpack.c.bf16 %v3641_v50, %v3639_v51 }
 0x59d   :  { %v3645_v35 = vpop.eup %3644  ;;  %v2296_v57 = vpop.f32.mrf.mxu2 }
 0x59e   :  { %v3647_v0 = vpop.eup %3646  ;;  %2509 = vmatpush.bf16.msra.mxu2 %v2413_v55  ;;  %v2414_v13 = vpack.c.bf16 %v3645_v35, %v3643_v54  ;;  %v2297_v56 = vadd.f32 %v2296_v57, %v4572_v32 }
 0x59f   :  { %v3649_v1 = vpop.eup %3648  ;;  %v2315_v40 = vpop.f32.mrf.mxu3 }
 0x5a0   :  { %2528 = vmatpush.bf16.msra.mxu3 %v2414_v13  ;;  %v2406_v2 = vpack.c.bf16 %v3649_v1, %v3647_v0  ;;  %v2329_v8 = vpack.c.bf16 %v2297_v56, %v2295_v63  ;;  %v2316_v3 = vadd.f32 %v2315_v40, %v4572_v32 }
 0x5a2   :  { %2510 = vmatpush.bf16.msra.mxu2 %v2405_v34  ;;  %v2345_v20 = vunpack.c.l.bf16 %v2329_v8  ;;  %v2353_v14 = vunpack.c.h.bf16 %v2329_v8  ;;  %v2330_v16 = vpack.c.bf16 %v2316_v3, %v2314_v60 }
 0x5a4   :  { %2529 = vmatpush.bf16.msra.mxu3 %v2406_v2  ;;  %3650 = vtanh.f32 %v2345_v20  ;;  %v2346_v23 = vunpack.c.l.bf16 %v2330_v16  ;;  %v2354_v26 = vunpack.c.h.bf16 %v2330_v16 }
 0x5a5   :  { %3111 = vmatmul.msk.bf16.vlgmr.msra.gmra.mxu2 %vm400_vm2, %v4589_v11  ;;  %v2299_v4 = vpop.f32.mrf.mxu2  ;;  %3116 = vmatmul.msk.bf16.gmra.mxu0 %vm400_vm2, %v4600_v22  ;;  %3652 = vtanh.f32 %v2353_v14 }
 0x5a6   :  { %v2300_v12 = vadd.f32 %v2299_v4, %v4570_v37 }
 0x5a7   :  { %3113 = vmatmul.msk.bf16.vlgmr.msra.gmra.mxu3 %vm400_vm2, %v4589_v11  ;;  %v2318_v6 = vpop.f32.mrf.mxu3  ;;  %3118 = vmatmul.msk.bf16.gmra.mxu1 %vm400_vm2, %v4600_v22 }
 0x5a8   :  { %v2319_v62 = vadd.f32 %v2318_v6, %v4570_v37 }
 0x5aa   :  { %v3651_v37 = vpop.eup %3650 }
 0x5ad   :  { %v2301_v48 = vpop.f32.mrf.mxu2 }
 0x5ae   :  { %v2302_v52 = vadd.f32 %v2301_v48, %v4578_v5 }
 0x5af   :  { %v2320_v17 = vpop.f32.mrf.mxu3 }
 0x5b0   :  { %v2337_v15 = vpack.c.bf16 %v2302_v52, %v2300_v12  ;;  %v2321_v19 = vadd.f32 %v2320_v17, %v4578_v5  ;;  %v3653_v5 = vpop.eup %3652 }
 0x5b1   :  { %v2409_v10 = vpack.c.bf16 %v3653_v5, %v3651_v37 }
 0x5b2   :  { %v2361_v39 = vunpack.c.l.bf16 %v2337_v15  ;;  %v2369_v18 = vunpack.c.h.bf16 %v2337_v15  ;;  %v2338_v32 = vpack.c.bf16 %v2321_v19, %v2319_v62 }
 0x5b4   :  { %3654 = vtanh.f32 %v2361_v39  ;;  %v2362_v59 = vunpack.c.l.bf16 %v2338_v32  ;;  %v2370_v24 = vunpack.c.h.bf16 %v2338_v32  ;;  %v4671_v39 = vld [vmem:[%s4721_s5] sm:$0xf]  ;;  %s3757_s5 = smov [#allocation2]  }
 0x5b5   :  { %3656 = vtanh.f32 %v2369_v18  ;;  %3112 = vmatmul.msk.bf16.gmra.mxu2 %vm400_vm2, %v4600_v22  ;;  %s2840_s20 = sshll.u32 %s3757_s5, 4  ;;  %s2841_s20 = int_to_ptr.vmem [resolvable:$true] %s2840_s20 }
 0x5b6   :  { %3658 = vtanh.f32 %v2362_v59 }
 0x5b7   :  { %3660 = vtanh.f32 %v2370_v24  ;;  %3114 = vmatmul.msk.bf16.gmra.mxu3 %vm400_vm2, %v4600_v22 }
 0x5b8   :  { %3662 = vtanh.f32 %v2346_v23 }
 0x5b9   :  { %3664 = vtanh.f32 %v2354_v26 }
 0x5ba   :  { %v3655_v27 = vpop.eup %3654 }
 0x5bb   :  { %v3657_v28 = vpop.eup %3656 }
 0x5bc   :  { %v3659_v29 = vpop.eup %3658  ;;  %v2417_v31 = vpack.c.bf16 %v3657_v28, %v3655_v27 }
 0x5bd   :  { %v3661_v9 = vpop.eup %3660 }
 0x5be   :  { %v3663_v33 = vpop.eup %3662  ;;  %2585 = vmatpush.bf16.msrb.mxu2 %v2417_v31  ;;  %v2418_v30 = vpack.c.bf16 %v3661_v9, %v3659_v29 }
 0x5bf   :  { %v3665_v36 = vpop.eup %3664 }
 0x5c0   :  { %2604 = vmatpush.bf16.msrb.mxu3 %v2418_v30  ;;  %v2410_v53 = vpack.c.bf16 %v3665_v36, %v3663_v33 }
 0x5c2   :  { %2586 = vmatpush.bf16.msrb.mxu2 %v2409_v10 }
 0x5c4   :  { %2605 = vmatpush.bf16.msrb.mxu3 %v2410_v53 }
 0x5c5   :  { %3119 = vmatmul.msk.bf16.vlgmr.msrb.gmra.mxu2 %vm400_vm2, %v4589_v11 }
 0x5c7   :  { %3121 = vmatmul.msk.bf16.vlgmr.msrb.gmra.mxu3 %vm400_vm2, %v4589_v11 }
 0x5d5   :  { %3120 = vmatmul.msk.bf16.gmra.mxu2 %vm400_vm2, %v4600_v22 }
 0x5d7   :  { %3122 = vmatmul.msk.bf16.gmra.mxu3 %vm400_vm2, %v4600_v22 }
 0x5ee   :  { %v2474_v38 = vpop.f32.mrf.mxu0 }
 0x5ef   :  { %v2475_v58 = vadd.f32 %v2474_v38, %v4657_v21 }
 0x5f1   :  { %v2493_v25 = vpop.f32.mrf.mxu1 }
 0x5f2   :  { %v2494_v50 = vadd.f32 %v2493_v25, %v4657_v21 }
 0x5f6   :  { %v2476_v43 = vpop.f32.mrf.mxu0 }
 0x5f7   :  { %v2477_v7 = vadd.f32 %v2476_v43, %v4654_v45 }
 0x5f9   :  { %v2495_v61 = vpop.f32.mrf.mxu1  ;;  %v2617_v46 = vpack.c.bf16 %v2477_v7, %v2475_v58 }
 0x5fa   :  { %v2496_v22 = vadd.f32 %v2495_v61, %v4654_v45 }
 0x5fb   :  { %v2633_v54 = vunpack.c.l.bf16 %v2617_v46  ;;  %v2641_v1 = vunpack.c.h.bf16 %v2617_v46 }
 0x5fc   :  { %v2618_v57 = vpack.c.bf16 %v2496_v22, %v2494_v50 }
 0x5fd   :  { %3666 = vtanh.f32 %v2633_v54 }
 0x5fe   :  { %v2479_v44 = vpop.f32.mrf.mxu0  ;;  %v2634_v4 = vunpack.c.l.bf16 %v2618_v57  ;;  %v2642_v63 = vunpack.c.h.bf16 %v2618_v57 }
 0x5ff   :  { %v2480_v49 = vadd.f32 %v2479_v44, %v4652_v41 }
 0x601   :  { %v2498_v11 = vpop.f32.mrf.mxu1 }
 0x602   :  { %v2499_v0 = vadd.f32 %v2498_v11, %v4652_v41 }
 0x603   :  { %v3667_v8 = vpop.eup %3666 }
 0x606   :  { %v2481_v42 = vpop.f32.mrf.mxu0 }
 0x607   :  { %v2482_v51 = vadd.f32 %v2481_v42, %v4660_v47 }
 0x609   :  { %v2625_v55 = vpack.c.bf16 %v2482_v51, %v2480_v49  ;;  %v2500_v35 = vpop.f32.mrf.mxu1 }
 0x60a   :  { %v2501_v13 = vadd.f32 %v2500_v35, %v4660_v47 }
 0x60b   :  { %v2649_v40 = vunpack.c.l.bf16 %v2625_v55  ;;  %v2657_v34 = vunpack.c.h.bf16 %v2625_v55 }
 0x60c   :  { %v2626_v2 = vpack.c.bf16 %v2501_v13, %v2499_v0 }
 0x60d   :  { %3668 = vtanh.f32 %v2649_v40 }
 0x60e   :  { %3670 = vtanh.f32 %v2657_v34  ;;  %v2650_v56 = vunpack.c.l.bf16 %v2626_v2  ;;  %v2658_v6 = vunpack.c.h.bf16 %v2626_v2 }
 0x60f   :  { %3672 = vtanh.f32 %v2641_v1 }
 0x610   :  { %3674 = vtanh.f32 %v2650_v56 }
 0x611   :  { %3676 = vtanh.f32 %v2658_v6 }
 0x612   :  { %3678 = vtanh.f32 %v2634_v4  ;;  %v2550_v52 = vpop.f32.mrf.mxu0 }
 0x613   :  { %v3669_v3 = vpop.eup %3668  ;;  %3680 = vtanh.f32 %v2642_v63  ;;  %v2551_v26 = vadd.f32 %v2550_v52, %v4657_v21 }
 0x614   :  { %v3671_v48 = vpop.eup %3670  ;;  %v2569_v16 = vpop.f32.mrf.mxu1 }
 0x615   :  { %v3673_v60 = vpop.eup %3672  ;;  %v2705_v20 = vpack.c.bf16 %v3671_v48, %v3669_v3  ;;  %v2570_v28 = vadd.f32 %v2569_v16, %v4657_v21 }
 0x616   :  { %v3675_v12 = vpop.eup %3674  ;;  %v2697_v19 = vpack.c.bf16 %v3673_v60, %v3667_v8 }
 0x617   :  { %v3677_v14 = vpop.eup %3676  ;;  %2729 = vmatpush.bf16.msra.mxu0 %v2705_v20 }
 0x618   :  { %v3679_v17 = vpop.eup %3678  ;;  %v2706_v62 = vpack.c.bf16 %v3677_v14, %v3675_v12 }
 0x619   :  { %v3681_v15 = vpop.eup %3680 }
 0x61a   :  { %2742 = vmatpush.bf16.msra.mxu1 %v2706_v62  ;;  %v2698_v18 = vpack.c.bf16 %v3681_v15, %v3679_v17  ;;  %v2552_v32 = vpop.f32.mrf.mxu0 }
 0x61b   :  { %2730 = vmatpush.bf16.msra.mxu0 %v2697_v19  ;;  %v2553_v59 = vadd.f32 %v2552_v32, %v4654_v45 }
 0x61c   :  { %v2571_v23 = vpop.f32.mrf.mxu1 }
 0x61d   :  { %v2572_v37 = vadd.f32 %v2571_v23, %v4654_v45  ;;  %v2621_v29 = vpack.c.bf16 %v2553_v59, %v2551_v26 }
 0x61e   :  { %2743 = vmatpush.bf16.msra.mxu1 %v2698_v18  ;;  %3123 = vmatmul.msk.bf16.vlgmr.msra.gmra.mxu0 %vm400_vm2, %v4671_v39 }
 0x61f   :  { %v2622_v9 = vpack.c.bf16 %v2572_v37, %v2570_v28  ;;  %v2637_v33 = vunpack.c.l.bf16 %v2621_v29  ;;  %v2645_v36 = vunpack.c.h.bf16 %v2621_v29 }
 0x621   :  { %3124 = vmatmul.msk.bf16.vlgmr.msra.gmra.mxu1 %vm400_vm2, %v4671_v39  ;;  %v2638_v38 = vunpack.c.l.bf16 %v2622_v9  ;;  %3682 = vtanh.f32 %v2637_v33  ;;  %v2646_v42 = vunpack.c.h.bf16 %v2622_v9 }
 0x622   :  { %v2555_v24 = vpop.f32.mrf.mxu0  ;;  %3684 = vtanh.f32 %v2645_v36 }
 0x623   :  { %v2556_v10 = vadd.f32 %v2555_v24, %v4652_v41  ;;  %3686 = vtanh.f32 %v2638_v38 }
 0x624   :  { %v2574_v5 = vpop.f32.mrf.mxu1 }
 0x625   :  { %v2575_v61 = vadd.f32 %v2574_v5, %v4652_v41 }
 0x627   :  { %v3683_v50 = vpop.eup %3682 }
 0x628   :  { %v2512_v27 = vpop.f32.mrf.mxu2  ;;  %v3685_v55 = vpop.eup %3684 }
 0x629   :  { %v3687_v57 = vpop.eup %3686  ;;  %v2513_v1 = vadd.f32 %v2512_v27, %v4657_v21  ;;  %v2701_v12 = vpack.c.bf16 %v3685_v55, %v3683_v50 }
 0x62a   :  { %v2531_v31 = vpop.f32.mrf.mxu3  ;;  %v2557_v30 = vpop.f32.mrf.mxu0 }
 0x62b   :  { %v2558_v53 = vadd.f32 %v2557_v30, %v4660_v47  ;;  %v2532_v3 = vadd.f32 %v2531_v31, %v4657_v21 }
 0x62c   :  { %v2576_v25 = vpop.f32.mrf.mxu1 }
 0x62d   :  { %v2629_v44 = vpack.c.bf16 %v2558_v53, %v2556_v10  ;;  %v2577_v7 = vadd.f32 %v2576_v25, %v4660_v47 }
 0x62f   :  { %v2653_v58 = vunpack.c.l.bf16 %v2629_v44  ;;  %v2661_v46 = vunpack.c.h.bf16 %v2629_v44  ;;  %v2630_v22 = vpack.c.bf16 %v2577_v7, %v2575_v61 }
 0x630   :  { %v2514_v43 = vpop.f32.mrf.mxu2 }
 0x631   :  { %3688 = vtanh.f32 %v2653_v58  ;;  %v2654_v49 = vunpack.c.l.bf16 %v2630_v22  ;;  %v2662_v51 = vunpack.c.h.bf16 %v2630_v22  ;;  %v2515_v35 = vadd.f32 %v2514_v43, %v4654_v45 }
 0x632   :  { %v2533_v11 = vpop.f32.mrf.mxu3  ;;  %3690 = vtanh.f32 %v2661_v46 }
 0x633   :  { %3692 = vtanh.f32 %v2654_v49  ;;  %v2619_v2 = vpack.c.bf16 %v2515_v35, %v2513_v1  ;;  %v2534_v63 = vadd.f32 %v2533_v11, %v4654_v45 }
 0x634   :  { %3694 = vtanh.f32 %v2662_v51 }
 0x635   :  { %3696 = vtanh.f32 %v2646_v42  ;;  %v2635_v60 = vunpack.c.l.bf16 %v2619_v2  ;;  %v2643_v14 = vunpack.c.h.bf16 %v2619_v2  ;;  %v2620_v62 = vpack.c.bf16 %v2534_v63, %v2532_v3 }
 0x637   :  { %v3689_v13 = vpop.eup %3688  ;;  %3698 = vtanh.f32 %v2635_v60  ;;  %v2636_v24 = vunpack.c.l.bf16 %v2620_v62  ;;  %v2644_v5 = vunpack.c.h.bf16 %v2620_v62  ;;  %v2718_v62 = vpop.permute.xlu0 %2717 }
 0x638   :  { %v2517_v54 = vpop.f32.mrf.mxu2  ;;  %v3691_v40 = vpop.eup %3690  ;;  %3700 = vtanh.f32 %v2643_v14 }
 0x639   :  { %v3693_v34 = vpop.eup %3692  ;;  %v2709_v4 = vpack.c.bf16 %v3691_v40, %v3689_v13  ;;  %v2518_v20 = vadd.f32 %v2517_v54, %v4652_v41 }
 0x63a   :  { %v2536_v0 = vpop.f32.mrf.mxu3  ;;  %v3695_v56 = vpop.eup %3694 }
 0x63b   :  { %v3697_v6 = vpop.eup %3696  ;;  %2781 = vmatpush.bf16.msrb.mxu0 %v2709_v4  ;;  %v2710_v8 = vpack.c.bf16 %v3695_v56, %v3693_v34  ;;  %v2537_v15 = vadd.f32 %v2536_v0, %v4652_v41 }
 0x63c   :  { %v2702_v17 = vpack.c.bf16 %v3697_v6, %v3687_v57 }
 0x63d   :  { %2794 = vmatpush.bf16.msrb.mxu1 %v2710_v8  ;;  %v3699_v29 = vpop.eup %3698 }
 0x63e   :  { %v3701_v31 = vpop.eup %3700 }
 0x63f   :  { %2782 = vmatpush.bf16.msrb.mxu0 %v2701_v12  ;;  %v2699_v44 = vpack.c.bf16 %v3701_v31, %v3699_v29 }
 0x640   :  { %v2519_v48 = vpop.f32.mrf.mxu2 }
 0x641   :  { %v2520_v52 = vadd.f32 %v2519_v48, %v4660_v47  ;;  %2795 = vmatpush.bf16.msrb.mxu1 %v2702_v17 }
 0x642   :  { %v2538_v16 = vpop.f32.mrf.mxu3  ;;  %3127 = vmatmul.msk.bf16.vlgmr.msrb.gmra.mxu0 %vm400_vm2, %v4671_v39 }
 0x643   :  { %v2627_v19 = vpack.c.bf16 %v2520_v52, %v2518_v20  ;;  %v2539_v18 = vadd.f32 %v2538_v16, %v4660_v47 }
 0x644   :  { %3128 = vmatmul.msk.bf16.vlgmr.msrb.gmra.mxu1 %vm400_vm2, %v4671_v39 }
 0x645   :  { %v2651_v32 = vunpack.c.l.bf16 %v2627_v19  ;;  %v2659_v23 = vunpack.c.h.bf16 %v2627_v19  ;;  %v2628_v59 = vpack.c.bf16 %v2539_v18, %v2537_v15 }
 0x647   :  { %3702 = vtanh.f32 %v2651_v32  ;;  %v2652_v26 = vunpack.c.l.bf16 %v2628_v59  ;;  %v2660_v37 = vunpack.c.h.bf16 %v2628_v59 }
 0x648   :  { %3704 = vtanh.f32 %v2659_v23  ;;  %v2588_v27 = vpop.f32.mrf.mxu2 }
 0x649   :  { %3706 = vtanh.f32 %v2652_v26  ;;  %v2589_v22 = vadd.f32 %v2588_v27, %v4657_v21 }
 0x64a   :  { %3708 = vtanh.f32 %v2660_v37  ;;  %v2607_v28 = vpop.f32.mrf.mxu3 }
 0x64b   :  { %3710 = vtanh.f32 %v2636_v24  ;;  %v2608_v50 = vadd.f32 %v2607_v28, %v4657_v21 }
 0x64c   :  { %3712 = vtanh.f32 %v2644_v5 }
 0x64d   :  { %v3703_v9 = vpop.eup %3702 }
 0x64e   :  { %v3705_v33 = vpop.eup %3704 }
 0x64f   :  { %v3707_v30 = vpop.eup %3706  ;;  %v2707_v36 = vpack.c.bf16 %v3705_v33, %v3703_v9 }
 0x650   :  { %v3709_v10 = vpop.eup %3708  ;;  %v2590_v53 = vpop.f32.mrf.mxu2 }
 0x651   :  { %v3711_v38 = vpop.eup %3710  ;;  %2755 = vmatpush.bf16.msra.mxu2 %v2707_v36  ;;  %v2708_v25 = vpack.c.bf16 %v3709_v10, %v3707_v30  ;;  %v2591_v58 = vadd.f32 %v2590_v53, %v4654_v45 }
 0x652   :  { %v3713_v43 = vpop.eup %3712  ;;  %v2609_v61 = vpop.f32.mrf.mxu3 }
 0x653   :  { %2768 = vmatpush.bf16.msra.mxu3 %v2708_v25  ;;  %v2700_v7 = vpack.c.bf16 %v3713_v43, %v3711_v38  ;;  %v2623_v42 = vpack.c.bf16 %v2591_v58, %v2589_v22  ;;  %v2610_v49 = vadd.f32 %v2609_v61, %v4654_v45 }
 0x655   :  { %2756 = vmatpush.bf16.msra.mxu2 %v2699_v44  ;;  %v2639_v54 = vunpack.c.l.bf16 %v2623_v42  ;;  %v2647_v57 = vunpack.c.h.bf16 %v2623_v42  ;;  %v2624_v13 = vpack.c.bf16 %v2610_v49, %v2608_v50 }
 0x657   :  { %2769 = vmatpush.bf16.msra.mxu3 %v2700_v7  ;;  %3714 = vtanh.f32 %v2639_v54  ;;  %v2640_v56 = vunpack.c.l.bf16 %v2624_v13  ;;  %v2648_v63 = vunpack.c.h.bf16 %v2624_v13 }
 0x658   :  { %3125 = vmatmul.msk.bf16.vlgmr.msra.gmra.mxu2 %vm400_vm2, %v4671_v39  ;;  %v2593_v11 = vpop.f32.mrf.mxu2  ;;  %3716 = vtanh.f32 %v2647_v57 }
 0x659   :  { %v2594_v55 = vadd.f32 %v2593_v11, %v4652_v41 }
 0x65a   :  { %3126 = vmatmul.msk.bf16.vlgmr.msra.gmra.mxu3 %vm400_vm2, %v4671_v39  ;;  %v2612_v46 = vpop.f32.mrf.mxu3 }
 0x65b   :  { %v2613_v1 = vadd.f32 %v2612_v46, %v4652_v41 }
 0x65d   :  { %v3715_v8 = vpop.eup %3714 }
 0x65e   :  { %v3717_v3 = vpop.eup %3716 }
 0x65f   :  { %v2703_v17 = vpack.c.bf16 %v3717_v3, %v3715_v8 }
 0x660   :  { %v2595_v51 = vpop.f32.mrf.mxu2 }
 0x661   :  { %v2596_v35 = vadd.f32 %v2595_v51, %v4660_v47 }
 0x662   :  { %v2614_v0 = vpop.f32.mrf.mxu3 }
 0x663   :  { %v2631_v40 = vpack.c.bf16 %v2596_v35, %v2594_v55  ;;  %v2615_v34 = vadd.f32 %v2614_v0, %v4660_v47 }
 0x665   :  { %v2655_v2 = vunpack.c.l.bf16 %v2631_v40  ;;  %v2663_v4 = vunpack.c.h.bf16 %v2631_v40  ;;  %v2632_v45 = vpack.c.bf16 %v2615_v34, %v2613_v1 }
 0x667   :  { %3718 = vtanh.f32 %v2655_v2  ;;  %v2656_v21 = vunpack.c.l.bf16 %v2632_v45  ;;  %v2664_v6 = vunpack.c.h.bf16 %v2632_v45 }
 0x668   :  { %3720 = vtanh.f32 %v2663_v4 }
 0x669   :  { %3722 = vtanh.f32 %v2656_v21 }
 0x66a   :  { %3724 = vtanh.f32 %v2664_v6 }
 0x66b   :  { %3726 = vtanh.f32 %v2640_v56 }
 0x66c   :  { %3728 = vtanh.f32 %v2648_v63 }
 0x66d   :  { %v3719_v41 = vpop.eup %3718 }
 0x66e   :  { %v3721_v48 = vpop.eup %3720 }
 0x66f   :  { %v3723_v47 = vpop.eup %3722  ;;  %v2711_v60 = vpack.c.bf16 %v3721_v48, %v3719_v41 }
 0x670   :  { %v3725_v20 = vpop.eup %3724 }
 0x671   :  { %v3727_v12 = vpop.eup %3726  ;;  %2807 = vmatpush.bf16.msrb.mxu2 %v2711_v60  ;;  %v2712_v52 = vpack.c.bf16 %v3725_v20, %v3723_v47 }
 0x672   :  { %v3729_v14 = vpop.eup %3728 }
 0x673   :  { %2820 = vmatpush.bf16.msrb.mxu3 %v2712_v52  ;;  %v2704_v16 = vpack.c.bf16 %v3729_v14, %v3727_v12 }
 0x675   :  { %2808 = vmatpush.bf16.msrb.mxu2 %v2703_v17 }
 0x677   :  { %2821 = vmatpush.bf16.msrb.mxu3 %v2704_v16 }
 0x678   :  { %3129 = vmatmul.msk.bf16.vlgmr.msrb.gmra.mxu2 %vm400_vm2, %v4671_v39 }
 0x67a   :  { %3130 = vmatmul.msk.bf16.vlgmr.msrb.gmra.mxu3 %vm400_vm2, %v4671_v39 }
 0x69b   :  { %v2732_v15 = vpop.f32.mrf.mxu0 }
 0x69c   :  { %v2733_v19 = vadd.f32 %v2732_v15, %v2718_v62 }
 0x69e   :  { %2827 = vst [vmem:[#allocation2] sm:$0xff] %v2733_v19  ;;  %v2745_v18 = vpop.f32.mrf.mxu1 }
 0x69f   :  { %v2746_v32 = vadd.f32 %v2745_v18, %v2718_v62 }
 0x6a1   :  { %2828 = vst [vmem:[#allocation2 + $0x8] sm:$0xff] %v2746_v32 }
 0x6a3   :  { %v2734_v23 = vpop.f32.mrf.mxu0 }
 0x6a6   :  { %v2747_v59 = vpop.f32.mrf.mxu1 }
 0x6bf   :  { %v2784_v24 = vpop.f32.mrf.mxu0 }
 0x6c0   :  { %v2785_v26 = vadd.f32 %v2784_v24, %v2718_v62 }
 0x6c1   :  { %v2797_v37 = vpop.f32.mrf.mxu1 }
 0x6c2   :  { %2831 = vst [vmem:[#allocation2 + $0x20] sm:$0xff] %v2785_v26  ;;  %v2798_v5 = vadd.f32 %v2797_v37, %v2718_v62 }
 0x6c4   :  { %2832 = vst [vmem:[#allocation2 + $0x28] sm:$0xff] %v2798_v5 }
 0x6c7   :  { %v2786_v27 = vpop.f32.mrf.mxu0 }
 0x6c9   :  { %v2799_v28 = vpop.f32.mrf.mxu1 }
 0x6db   :  { %v2758_v29 = vpop.f32.mrf.mxu2 }
 0x6dc   :  { %v2759_v31 = vadd.f32 %v2758_v29, %v2718_v62 }
 0x6dd   :  { %v2771_v39 = vpop.f32.mrf.mxu3 }
 0x6de   :  { %2829 = vst [vmem:[#allocation2 + $0x10] sm:$0xff] %v2759_v31  ;;  %v2772_v9 = vadd.f32 %v2771_v39, %v2718_v62 }
 0x6e0   :  { %2830 = vst [vmem:[#allocation2 + $0x18] sm:$0xff] %v2772_v9 }
 0x6e3   :  { %v2760_v33 = vpop.f32.mrf.mxu2 }
 0x6e5   :  { %v2773_v30 = vpop.f32.mrf.mxu3 }
 0x6fb   :  { %v2810_v36 = vpop.f32.mrf.mxu2 }
 0x6fc   :  { %v2811_v10 = vadd.f32 %v2810_v36, %v2718_v62 }
 0x6fd   :  { %v2823_v53 = vpop.f32.mrf.mxu3 }
 0x6fe   :  { %2833 = vst [vmem:[#allocation2 + $0x30] sm:$0xff] %v2811_v10  ;;  %v2824_v38 = vadd.f32 %v2823_v53, %v2718_v62 }
 0x700   :  { %2834 = vst [vmem:[#allocation2 + $0x38] sm:$0xff] %v2824_v38 }
 0x701   :  { %2845 = dma.vmem_to_hbm [thread:$0]  %s2841_s20, 1024, %s2843_s23, [#allocation3]  }
 0x703   :  { %v2812_v25 = vpop.f32.mrf.mxu2 }
 0x705   :  { %v2825_v43 = vpop.f32.mrf.mxu3 }
 0x706   :  { %3754 = dma.done.wait [#allocation3], 1024  }
 0x707   :  { %3755 = vsyncadd [#allocation3], 4294966272 }
 0x708   :  { %2850 = vsyncpa [#allocation3], 1 }

</bundles_post_ra>
